<compile_context>
chip_gen: v7x
topology: tpu7x:2x2x1
jax: 0.10.0
libtpu: 0.0.40
codegen_flags: <defaults>
</compile_context>

<pallas_src>
import functools

import jax
import jax.numpy as jnp
from jax import lax
from jax.experimental import pallas as pl
from jax.experimental.pallas import tpu as pltpu

NUM_GROUPS = 8   # KAT_Group default number of groups
LN_EPS = 1e-5    # torch.nn.LayerNorm default


# ------------------------------ tiling helpers -------------------------------

def _row_tile(m, target=512):
    """Row (sublane) tile: full dim if small, else a multiple of 8 <= target.

    Used with pl.cdiv grids, so it does NOT need to divide m (remainder tiles
    are masked on store).
    """
    if m <= target:
        return m
    return max(8, (target // 8) * 8)


def _col_tile(n, target=512):
    """Lane tile: full dim if small, else a multiple of 128 <= target."""
    if n <= target:
        return n
    return max(128, (target // 128) * 128)


def _k_tile(k, target=1024, full_limit=2048):
    """Reduction tile: take full K when it fits comfortably in VMEM (drops the
    reduction grid axis entirely); otherwise pick an exact divisor (a partial
    boundary K tile would accumulate garbage)."""
    if k <= full_limit:
        return k
    t = (target // 128) * 128
    while t >= 128:
        if k % t == 0:
            return t
        t -= 128
    return k


# ------------------------------ rational activation --------------------------

def _rational(x, num, den):
    """Grouped rational activation  P(x) / (1 + |x * Q(x)|)  in f32.

    num: (6, C) per-channel numerator coeffs, den: (4, C) per-channel
    denominator coeffs, x: (M, C).  Exact division (trained rational
    coefficients are sensitive to the denominator precision).
    """
    p = num[5:6, :]
    for i in range(4, -1, -1):
        p = p * x + num[i:i + 1, :]
    q = den[3:4, :]
    for i in range(2, -1, -1):
        q = q * x + den[i:i + 1, :]
    q = q * x
    return p / (1.0 + jnp.abs(q))


# ------------------------------ kernels ---------------------------------------

def _linear_kernel(*refs, n_k, has_post):
    # refs = x, w, b, [post_num, post_den], o, [acc (only when n_k > 1)]
    x_ref, w_ref, b_ref = refs[:3]
    idx = 3
    post_num_ref = post_den_ref = None
    if has_post:
        post_num_ref, post_den_ref = refs[idx], refs[idx + 1]
        idx += 2
    o_ref = refs[idx]
    acc_ref = refs[idx + 1] if n_k > 1 else None

    x = x_ref[...]
    if x.dtype != jnp.bfloat16:
        x = x.astype(jnp.bfloat16)          # in-VMEM cast: no extra HBM pass
    w = w_ref[...]
    if w.dtype != jnp.bfloat16:
        w = w.astype(jnp.bfloat16)
    part = jnp.dot(x, w, preferred_element_type=jnp.float32)

    def epilogue(acc):
        y = acc + b_ref[...].astype(jnp.float32)
        if has_post:
            # KAT act2 epilogue on the f32 accumulator (per-N-channel coeffs).
            y = _rational(y, post_num_ref[...], post_den_ref[...])
        o_ref[...] = y.astype(o_ref.dtype)

    if n_k == 1:
        epilogue(part)
    else:
        k = pl.program_id(2)

        @pl.when(k == 0)
        def _():
            acc_ref[...] = jnp.zeros_like(acc_ref)

        acc_ref[...] += part

        @pl.when(k == n_k - 1)
        def _():
            epilogue(acc_ref[...])


def _add_ln_kernel(*refs, eps, has_act):
    # refs = x, res, gamma, beta, [act_num, act_den], ln_out, [act_out]
    x_ref, r_ref, g_ref, b_ref = refs[:4]
    if has_act:
        num_ref, den_ref, o_ref, a_ref = refs[4:]
    else:
        o_ref = refs[4]
    x = x_ref[...].astype(jnp.float32) + r_ref[...].astype(jnp.float32)
    mu = jnp.mean(x, axis=-1, keepdims=True)
    xc = x - mu
    var = jnp.mean(xc * xc, axis=-1, keepdims=True)
    y = xc * lax.rsqrt(var + eps) * g_ref[...] + b_ref[...]
    o_ref[...] = y.astype(o_ref.dtype)
    if has_act:
        # KAT act1 fused on the f32 LN output (fc1 input) -> computed once,
        # not once per fc1 N-tile, and applied to f32 (not bf16-rounded) data.
        a_ref[...] = _rational(y, num_ref[...], den_ref[...]).astype(a_ref.dtype)


def _attn_kernel(q_ref, k_ref, v_ref, o_ref, *, num_heads, scale):
    # q_ref: (tq, D) query rows; k_ref/v_ref: (T, D) full keys/values.
    # All heads packed along the lane axis.
    q = q_ref[...]
    k = k_ref[...]
    v = v_ref[...]
    D = q.shape[-1]
    dh = D // num_heads
    parts = []
    # TODO(synk): for very long sequences a head/kv grid axis with an online
    # softmax would bound VMEM further; full-T k/v per q-tile is kept here.
    for h in range(num_heads):
        lo = h * dh
        qh = q[:, lo:lo + dh]
        kh = k[:, lo:lo + dh]
        vh = v[:, lo:lo + dh]
        s = lax.dot_general(qh, kh, (((1,), (1,)), ((), ())),
                            preferred_element_type=jnp.float32) * scale
        s = s - jnp.max(s, axis=-1, keepdims=True)
        p = jnp.exp(s)
        p = p * pl.reciprocal(jnp.sum(p, axis=-1, keepdims=True), approx=True)
        parts.append(jnp.dot(p.astype(vh.dtype), vh,
                             preferred_element_type=jnp.float32))
    o = parts[0] if num_heads == 1 else jnp.concatenate(parts, axis=-1)
    o_ref[...] = o.astype(o_ref.dtype)   # single lane-dense full-width store


def _embed_kernel(x_ref, w_ref, b_ref, pos_ref, o_ref):
    x = x_ref[...]
    if x.dtype != jnp.bfloat16:
        x = x.astype(jnp.bfloat16)
    w = w_ref[...]
    if w.dtype != jnp.bfloat16:
        w = w.astype(jnp.bfloat16)
    y = jnp.dot(x, w, preferred_element_type=jnp.float32)
    y = y + b_ref[...].astype(jnp.float32) + pos_ref[...].astype(jnp.float32)
    o_ref[...] = y.astype(o_ref.dtype)


# ------------------------------ wrappers --------------------------------------

def pallas_linear(x, w, b, *, post_kat=None, out_dtype=jnp.bfloat16):
    """y = KAT_post( x @ W + b ), tiled & pipelined, bf16 MXU / f32 accumulate."""
    M, K = x.shape
    N = w.shape[1]
    tm = _row_tile(M, 512)
    tn = _col_tile(N, 512)
    tk = _k_tile(K)
    n_k = K // tk
    gm, gn = pl.cdiv(M, tm), pl.cdiv(N, tn)

    if n_k == 1:
        grid = (gm, gn)
        x_spec = pl.BlockSpec((tm, tk), lambda i, j: (i, 0))
        w_spec = pl.BlockSpec((tk, tn), lambda i, j: (0, j))
        b_spec = pl.BlockSpec((1, tn), lambda i, j: (0, j))
        cn_spec = pl.BlockSpec((6, tn), lambda i, j: (0, j))
        cd_spec = pl.BlockSpec((4, tn), lambda i, j: (0, j))
        o_spec = pl.BlockSpec((tm, tn), lambda i, j: (i, j))
        scratch = []
        sem = ("parallel", "parallel")
    else:
        grid = (gm, gn, n_k)
        x_spec = pl.BlockSpec((tm, tk), lambda i, j, k: (i, k))
        w_spec = pl.BlockSpec((tk, tn), lambda i, j, k: (k, j))
        b_spec = pl.BlockSpec((1, tn), lambda i, j, k: (0, j))
        cn_spec = pl.BlockSpec((6, tn), lambda i, j, k: (0, j))
        cd_spec = pl.BlockSpec((4, tn), lambda i, j, k: (0, j))
        o_spec = pl.BlockSpec((tm, tn), lambda i, j, k: (i, j))
        scratch = [pltpu.VMEM((tm, tn), jnp.float32)]
        sem = ("parallel", "parallel", "arbitrary")

    in_specs = [x_spec, w_spec, b_spec]
    args = [x, w, b.reshape(1, N)]
    if post_kat is not None:
        in_specs += [cn_spec, cd_spec]
        args += list(post_kat)

    kernel = functools.partial(_linear_kernel, n_k=n_k,
                               has_post=post_kat is not None)
    xb = jnp.dtype(x.dtype).itemsize
    wb = jnp.dtype(w.dtype).itemsize
    ob = jnp.dtype(out_dtype).itemsize
    return pl.pallas_call(
        kernel,
        out_shape=jax.ShapeDtypeStruct((M, N), out_dtype),
        grid=grid,
        in_specs=in_specs,
        out_specs=o_spec,
        scratch_shapes=scratch,
        compiler_params=pltpu.CompilerParams(dimension_semantics=sem),
        cost_estimate=pl.CostEstimate(
            flops=2 * M * N * K, transcendentals=0,
            bytes_accessed=xb * M * K + wb * K * N + ob * M * N),
    )(*args)


def pallas_add_layernorm(x, res, g, b, *, post_kat=None,
                         out_dtype=jnp.bfloat16):
    """LayerNorm(x + res) with f32 math; optionally also emits the KAT act1
    rational of the LN output as a second lane-dense output."""
    M, D = x.shape
    tm = _row_tile(M, 512)
    grid = (pl.cdiv(M, tm),)
    row_spec = pl.BlockSpec((tm, D), lambda i: (i, 0))
    vec_spec = pl.BlockSpec((1, D), lambda i: (0, 0))
    in_specs = [row_spec, row_spec, vec_spec, vec_spec]
    args = [x, res, g.reshape(1, D), b.reshape(1, D)]
    has_act = post_kat is not None
    if has_act:
        in_specs += [pl.BlockSpec((6, D), lambda i: (0, 0)),
                     pl.BlockSpec((4, D), lambda i: (0, 0))]
        args += list(post_kat)
        out_shape = (jax.ShapeDtypeStruct((M, D), out_dtype),
                     jax.ShapeDtypeStruct((M, D), out_dtype))
        out_specs = (row_spec, row_spec)
    else:
        out_shape = jax.ShapeDtypeStruct((M, D), out_dtype)
        out_specs = row_spec
    return pl.pallas_call(
        functools.partial(_add_ln_kernel, eps=LN_EPS, has_act=has_act),
        out_shape=out_shape,
        grid=grid,
        in_specs=in_specs,
        out_specs=out_specs,
        compiler_params=pltpu.CompilerParams(dimension_semantics=("parallel",)),
    )(*args)


def pallas_attention(qkv, num_heads, scale, out_dtype=jnp.bfloat16):
    """Multi-head SDPA straight from the fused (B, T, 3D) QKV tensor.

    Grid = (B, q_tiles), both parallel.  q/k/v are sliced at lane-block
    offsets 0 / D / 2D directly by the BlockSpecs when D is 128-aligned.
    """
    B, T, threeD = qkv.shape
    D = threeD // 3
    tq = _row_tile(T, 256)
    grid = (B, pl.cdiv(T, tq))
    q_blk = (pl.Squeezed(), tq, D)
    kv_blk = (pl.Squeezed(), T, D)
    if D % 128 == 0:
        in_specs = [pl.BlockSpec(q_blk, lambda b, i: (b, i, 0)),
                    pl.BlockSpec(kv_blk, lambda b, i: (b, 0, 1)),
                    pl.BlockSpec(kv_blk, lambda b, i: (b, 0, 2))]
        operands = (qkv, qkv, qkv)          # same array, three DMA views
    else:
        # Lane-unaligned d_model: fall back to wrapper slices.
        in_specs = [pl.BlockSpec(q_blk, lambda b, i: (b, i, 0)),
                    pl.BlockSpec(kv_blk, lambda b, i: (b, 0, 0)),
                    pl.BlockSpec(kv_blk, lambda b, i: (b, 0, 0))]
        operands = (qkv[:, :, :D], qkv[:, :, D:2 * D], qkv[:, :, 2 * D:])
    o_spec = pl.BlockSpec((pl.Squeezed(), tq, D), lambda b, i: (b, i, 0))
    return pl.pallas_call(
        functools.partial(_attn_kernel, num_heads=num_heads, scale=scale),
        out_shape=jax.ShapeDtypeStruct((B, T, D), out_dtype),
        grid=grid,
        in_specs=in_specs,
        out_specs=o_spec,
        compiler_params=pltpu.CompilerParams(
            dimension_semantics=("parallel", "parallel")),
        cost_estimate=pl.CostEstimate(
            flops=4 * B * T * T * D,
            transcendentals=B * num_heads * T * T,
            bytes_accessed=3 * 2 * B * T * D + 2 * B * T * D),
    )(*operands)


def pallas_embed_linear(x, w, b, pos, out_dtype=jnp.bfloat16):
    """Input embedding with the positional-encoding add fused in the epilogue.

    x: (B, T, K); pos: (T, N).  Grid = (B, T-tiles, N-tiles).
    """
    B, T, K = x.shape
    N = w.shape[1]
    if K > 2048:
        # Rare fallback for huge input_dim: unfused positional add.
        y = pallas_linear(x.reshape(B * T, K), w, b, out_dtype=jnp.float32)
        return (y.reshape(B, T, N) + pos[None, :, :]).astype(out_dtype)
    tt = _row_tile(T, 256)
    tn = _col_tile(N, 512)
    grid = (B, pl.cdiv(T, tt), pl.cdiv(N, tn))
    return pl.pallas_call(
        _embed_kernel,
        out_shape=jax.ShapeDtypeStruct((B, T, N), out_dtype),
        grid=grid,
        in_specs=[
            pl.BlockSpec((pl.Squeezed(), tt, K), lambda bb, i, j: (bb, i, 0)),
            pl.BlockSpec((K, tn), lambda bb, i, j: (0, j)),
            pl.BlockSpec((1, tn), lambda bb, i, j: (0, j)),
            pl.BlockSpec((tt, tn), lambda bb, i, j: (i, j)),
        ],
        out_specs=pl.BlockSpec((pl.Squeezed(), tt, tn),
                               lambda bb, i, j: (bb, i, j)),
        compiler_params=pltpu.CompilerParams(
            dimension_semantics=("parallel", "parallel", "parallel")),
    )(x, w, b.reshape(1, N), pos)


# ------------------------------ model pieces ----------------------------------

def mha_forward(x2, p, num_heads, B, T, D):
    # nn.MultiheadAttention(batch_first=True), eval mode, no masks.
    dh = D // num_heads
    qkv = pallas_linear(x2, p["w_qkv"], p["b_qkv"],
                        out_dtype=jnp.bfloat16).reshape(B, T, 3 * D)
    o = pallas_attention(qkv, num_heads, 1.0 / float(dh) ** 0.5)
    return pallas_linear(o.reshape(B * T, D), p["w_o"], p["b_o"],
                         out_dtype=jnp.bfloat16)


def block_forward(x2, p, num_heads, B, T, D):
    # x2: (B*T, D) bf16 activations.
    attn_out = mha_forward(x2, p, num_heads, B, T, D)
    # LN1(x + attn) -> (residual, act1(residual)); act1 fused in the LN epilogue.
    ln1, act1 = pallas_add_layernorm(x2, attn_out, p["ln1_g"], p["ln1_b"],
                                     post_kat=(p["kat1_num"], p["kat1_den"]))
    # KAN MLP: fc1 with act2 (gelu-init rational) fused as its epilogue, fc2.
    # (dropout p=0 and norm=Identity are no-ops.)
    h = pallas_linear(act1, p["fc1_w"], p["fc1_b"],
                      post_kat=(p["kat2_num"], p["kat2_den"]),
                      out_dtype=jnp.bfloat16)
    h = pallas_linear(h, p["fc2_w"], p["fc2_b"], out_dtype=jnp.bfloat16)
    return pallas_add_layernorm(ln1, h, p["ln2_g"], p["ln2_b"])


def kan_transformer_forward(x, params, num_heads):
    B, C, T, F = x.shape
    h = x.reshape(B, T, C * F)          # == torch .view(batch, num_frames, -1)
    # Input embedding + positional encoding in one fused pass.
    h = pallas_embed_linear(h, params["emb_w"], params["emb_b"],
                            params["pos"][:T, :])
    D = h.shape[-1]
    h2 = h.reshape(B * T, D)
    for p in params["blocks"]:
        h2 = block_forward(h2, p, num_heads, B, T, D)
    out = pallas_linear(h2, params["fc_out_w"], params["fc_out_b"],
                        out_dtype=jnp.float32)
    return out.reshape(B, T, -1)


# ------------------------------ parameters ------------------------------------

IDENTITY_NUM = jnp.array([0.0, 1.0, 0.0, 0.0, 0.0, 0.0], jnp.float32)
IDENTITY_DEN = jnp.zeros((NUM_GROUPS, 4), jnp.float32)
# TODO(synk): KAT_Group('gelu') loads rational coefficients fitted to GELU from
# a packaged init.json; replaced here with deterministic placeholder
# coefficients of the correct shape/order ((5,4) safe rational).
GELU_NUM = jnp.array([-0.004, 0.5, 0.37, 0.08, 0.006, 0.0002], jnp.float32)
GELU_DEN = jnp.tile(
    jnp.array([[0.02, 0.12, 0.005, 0.001]], jnp.float32), (NUM_GROUPS, 1))


def expand_rational(num, den, dim, num_groups):
    # num: (6,) shared numerator; den: (num_groups, 4) per-group denominator.
    gsize = dim // num_groups
    group_of_ch = jnp.arange(dim) // gsize
    num_exp = jnp.broadcast_to(num[:, None], (6, dim)).astype(jnp.float32)
    den_exp = den[group_of_ch, :].T.astype(jnp.float32)  # (4, dim)
    return num_exp, den_exp


def init_params(key, input_dim, d_model, num_heads, num_layers, num_frames,
                output_dim, mlp_ratio=4.0, num_groups=NUM_GROUPS):
    hidden = int(d_model * mlp_ratio)
    keys = iter(jax.random.split(key, 2 + num_layers * 6))

    def dense(k, fi, fo):
        kw, kb = jax.random.split(k)
        w = jax.random.normal(kw, (fi, fo), jnp.float32) * (1.0 / float(fi) ** 0.5)
        b = jax.random.normal(kb, (fo,), jnp.float32) * 0.01
        # Weights are stored bf16 once (no per-call cast passes); biases f32.
        return w.astype(jnp.bfloat16), b

    params = {}
    params["emb_w"], params["emb_b"] = dense(next(keys), input_dim, d_model)
    params["pos"] = jnp.zeros((num_frames, d_model), jnp.float32)  # torch.zeros

    blocks = []
    for _ in range(num_layers):
        p = {}
        # Fused QKV projection (q | k | v along the output axis).
        p["w_qkv"], p["b_qkv"] = dense(next(keys), d_model, 3 * d_model)
        p["w_o"], p["b_o"] = dense(next(keys), d_model, d_model)
        p["ln1_g"] = jnp.ones((d_model,), jnp.float32)
        p["ln1_b"] = jnp.zeros((d_model,), jnp.float32)
        p["ln2_g"] = jnp.ones((d_model,), jnp.float32)
        p["ln2_b"] = jnp.zeros((d_model,), jnp.float32)
        p["fc1_w"], p["fc1_b"] = dense(next(keys), d_model, hidden)
        p["fc2_w"], p["fc2_b"] = dense(next(keys), hidden, d_model)
        p["kat1_num"], p["kat1_den"] = expand_rational(
            IDENTITY_NUM, IDENTITY_DEN, d_model, num_groups)
        p["kat2_num"], p["kat2_den"] = expand_rational(
            GELU_NUM, GELU_DEN, hidden, num_groups)
        blocks.append(p)
    params["blocks"] = blocks

    params["fc_out_w"], params["fc_out_b"] = dense(next(keys), d_model, output_dim)
    return params


# ------------------------------ main ------------------------------------------

if __name__ == "__main__":
    # Small config consistent with the forward pass:
    # x: (B, C, T, F) with input_dim = C*F, num_frames = T.
    # d_model is 128 so the lane-block q/k/v slicing of the fused QKV tensor is
    # exercised (the fallback path handles unaligned d_model).
    B, C, T, F = 2, 2, 8, 8
    input_dim = C * F        # 16
    d_model = 128
    num_heads = 4
    num_layers = 2
    num_frames = T
    output_dim = 3

    key = jax.random.PRNGKey(0)
    kx, kp = jax.random.split(key)
    x = jax.random.normal(kx, (B, C, T, F), jnp.float32)
    params = init_params(kp, input_dim, d_model, num_heads, num_layers,
                         num_frames, output_dim)

    fwd = jax.jit(functools.partial(kan_transformer_forward,
                                    num_heads=num_heads))
    out = fwd(x, params)
    jax.block_until_ready(out)
    assert out.shape == (B, T, output_dim), out.shape
    assert bool(jnp.all(jnp.isfinite(out)))
    print("KERNEL_OK")
</pallas_src>

<mosaic_0001>
module attributes {stable_mosaic.version = 11 : i64} {
  func.func @_embed_kernel(%arg0: i32, %arg1: i32, %arg2: i32, %arg3: memref<1x8x16xf32, #tpu.memory_space<vmem>>, %arg4: memref<16x128xbf16, #tpu.memory_space<vmem>>, %arg5: memref<1x128xf32, #tpu.memory_space<vmem>>, %arg6: memref<8x128xf32, #tpu.memory_space<vmem>>, %arg7: memref<1x8x128xbf16, #tpu.memory_space<vmem>>) attributes {dimension_semantics = [#tpu.dimension_semantics<parallel>, #tpu.dimension_semantics<parallel>, #tpu.dimension_semantics<parallel>], iteration_bounds = array<i64: 2, 1, 1>, scalar_prefetch = 0 : i64, scratch_operands = 0 : i64, tpu.core_type = #tpu.core_type<tc>, window_params = [{transform_indices = @transform_0, window_bounds = array<i64: 1, 8, 16>}, {transform_indices = @transform_1, window_bounds = array<i64: 16, 128>}, {transform_indices = @transform_2, window_bounds = array<i64: 1, 128>}, {transform_indices = @transform_3, window_bounds = array<i64: 8, 128>}, {transform_indices = @transform_4, window_bounds = array<i64: 1, 8, 128>}]} {
    %c0 = arith.constant 0 : index
    %c0_0 = arith.constant 0 : index
    %c0_1 = arith.constant 0 : index
    %0 = vector.load %arg3[%c0, %c0_0, %c0_1] : memref<1x8x16xf32, #tpu.memory_space<vmem>>, vector<1x8x16xf32>
    %1 = vector.shape_cast %0 : vector<1x8x16xf32> to vector<8x16xf32>
    %2 = arith.truncf %1 : vector<8x16xf32> to vector<8x16xbf16>
    %c0_2 = arith.constant 0 : index
    %c0_3 = arith.constant 0 : index
    %3 = vector.load %arg4[%c0_2, %c0_3] : memref<16x128xbf16, #tpu.memory_space<vmem>>, vector<16x128xbf16>
    %cst = arith.constant dense<0.000000e+00> : vector<8x128xf32>
    %4 = tpu.matmul %2, %3, %cst {dimension_numbers = #tpu.dot_dimension_numbers<[1], [0], [0], [1], [0, 0, 1, 1], [], []>} : vector<8x16xbf16>, vector<16x128xbf16>, vector<8x128xf32> -> vector<8x128xf32>
    %c0_4 = arith.constant 0 : index
    %c0_5 = arith.constant 0 : index
    %5 = vector.load %arg5[%c0_4, %c0_5] : memref<1x128xf32, #tpu.memory_space<vmem>>, vector<1x128xf32>
    %6 = vector.broadcast %5 : vector<1x128xf32> to vector<8x128xf32>
    %7 = arith.addf %4, %6 : vector<8x128xf32>
    %c0_6 = arith.constant 0 : index
    %c0_7 = arith.constant 0 : index
    %8 = vector.load %arg6[%c0_6, %c0_7] : memref<8x128xf32, #tpu.memory_space<vmem>>, vector<8x128xf32>
    %9 = arith.addf %7, %8 : vector<8x128xf32>
    %10 = arith.truncf %9 : vector<8x128xf32> to vector<8x128xbf16>
    %c0_8 = arith.constant 0 : index
    %c0_9 = arith.constant 0 : index
    %c0_10 = arith.constant 0 : index
    %11 = vector.load %arg7[%c0_8, %c0_9, %c0_10] : memref<1x8x128xbf16, #tpu.memory_space<vmem>>, vector<1x8x128xbf16>
    %12 = vector.shape_cast %11 : vector<1x8x128xbf16> to vector<8x128xbf16>
    %13 = vector.shape_cast %10 : vector<8x128xbf16> to vector<1x8x128xbf16>
    tpu.vector_store %arg7[%c0_8, %c0_9, %c0_10], %13 {strides = array<i32>} : memref<1x8x128xbf16, #tpu.memory_space<vmem>>, vector<1x8x128xbf16>,
    return
  }
  func.func @transform_0(%arg0: i32, %arg1: i32, %arg2: i32) -> (i32, i32, i32) {
    %c0_i32 = arith.constant 0 : i32
    %c0_i32_0 = arith.constant 0 : i32
    return %arg0, %arg1, %c0_i32 : i32, i32, i32
  }
  func.func @transform_1(%arg0: i32, %arg1: i32, %arg2: i32) -> (i32, i32) {
    %c0_i32 = arith.constant 0 : i32
    %c0_i32_0 = arith.constant 0 : i32
    return %c0_i32, %arg2 : i32, i32
  }
  func.func @transform_2(%arg0: i32, %arg1: i32, %arg2: i32) -> (i32, i32) {
    %c0_i32 = arith.constant 0 : i32
    %c0_i32_0 = arith.constant 0 : i32
    return %c0_i32, %arg2 : i32, i32
  }
  func.func @transform_3(%arg0: i32, %arg1: i32, %arg2: i32) -> (i32, i32) {
    %c0_i32 = arith.constant 0 : i32
    return %arg1, %arg2 : i32, i32
  }
  func.func @transform_4(%arg0: i32, %arg1: i32, %arg2: i32) -> (i32, i32, i32) {
    %c0_i32 = arith.constant 0 : i32
    return %arg0, %arg1, %arg2 : i32, i32, i32
  }
}

module attributes {stable_mosaic.version = 11 : i64} {
  func.func @_linear_kernel(%arg0: i32, %arg1: i32, %arg2: memref<16x128xbf16, #tpu.memory_space<vmem>>, %arg3: memref<128x384xbf16, #tpu.memory_space<vmem>>, %arg4: memref<1x384xf32, #tpu.memory_space<vmem>>, %arg5: memref<16x384xbf16, #tpu.memory_space<vmem>>) attributes {dimension_semantics = [#tpu.dimension_semantics<parallel>, #tpu.dimension_semantics<parallel>], iteration_bounds = array<i64: 1, 1>, scalar_prefetch = 0 : i64, scratch_operands = 0 : i64, tpu.core_type = #tpu.core_type<tc>, window_params = [{transform_indices = @transform_0, window_bounds = array<i64: 16, 128>}, {transform_indices = @transform_1, window_bounds = array<i64: 128, 384>}, {transform_indices = @transform_2, window_bounds = array<i64: 1, 384>}, {transform_indices = @transform_3, window_bounds = array<i64: 16, 384>}]} {
    %c0 = arith.constant 0 : index
    %c0_0 = arith.constant 0 : index
    %0 = vector.load %arg2[%c0, %c0_0] : memref<16x128xbf16, #tpu.memory_space<vmem>>, vector<16x128xbf16>
    %c0_1 = arith.constant 0 : index
    %c0_2 = arith.constant 0 : index
    %1 = vector.load %arg3[%c0_1, %c0_2] : memref<128x384xbf16, #tpu.memory_space<vmem>>, vector<128x384xbf16>
    %cst = arith.constant dense<0.000000e+00> : vector<16x384xf32>
    %2 = tpu.matmul %0, %1, %cst {dimension_numbers = #tpu.dot_dimension_numbers<[1], [0], [0], [1], [0, 0, 1, 1], [], []>} : vector<16x128xbf16>, vector<128x384xbf16>, vector<16x384xf32> -> vector<16x384xf32>
    %c0_3 = arith.constant 0 : index
    %c0_4 = arith.constant 0 : index
    %3 = vector.load %arg4[%c0_3, %c0_4] : memref<1x384xf32, #tpu.memory_space<vmem>>, vector<1x384xf32>
    %4 = vector.broadcast %3 : vector<1x384xf32> to vector<16x384xf32>
    %5 = arith.addf %2, %4 : vector<16x384xf32>
    %6 = arith.truncf %5 : vector<16x384xf32> to vector<16x384xbf16>
    %c0_5 = arith.constant 0 : index
    %c0_6 = arith.constant 0 : index
    %7 = vector.load %arg5[%c0_5, %c0_6] : memref<16x384xbf16, #tpu.memory_space<vmem>>, vector<16x384xbf16>
    tpu.vector_store %arg5[%c0_5, %c0_6], %6 {strides = array<i32>} : memref<16x384xbf16, #tpu.memory_space<vmem>>, vector<16x384xbf16>,
    return
  }
  func.func @transform_0(%arg0: i32, %arg1: i32) -> (i32, i32) {
    %c0_i32 = arith.constant 0 : i32
    %c0_i32_0 = arith.constant 0 : i32
    return %arg0, %c0_i32 : i32, i32
  }
  func.func @transform_1(%arg0: i32, %arg1: i32) -> (i32, i32) {
    %c0_i32 = arith.constant 0 : i32
    %c0_i32_0 = arith.constant 0 : i32
    return %c0_i32, %arg1 : i32, i32
  }
  func.func @transform_2(%arg0: i32, %arg1: i32) -> (i32, i32) {
    %c0_i32 = arith.constant 0 : i32
    %c0_i32_0 = arith.constant 0 : i32
    return %c0_i32, %arg1 : i32, i32
  }
  func.func @transform_3(%arg0: i32, %arg1: i32) -> (i32, i32) {
    %c0_i32 = arith.constant 0 : i32
    return %arg0, %arg1 : i32, i32
  }
}

module attributes {stable_mosaic.version = 11 : i64} {
  func.func @_linear_kernel(%arg0: i32, %arg1: i32, %arg2: memref<16x128xbf16, #tpu.memory_space<vmem>>, %arg3: memref<128x128xbf16, #tpu.memory_space<vmem>>, %arg4: memref<1x128xf32, #tpu.memory_space<vmem>>, %arg5: memref<16x128xbf16, #tpu.memory_space<vmem>>) attributes {dimension_semantics = [#tpu.dimension_semantics<parallel>, #tpu.dimension_semantics<parallel>], iteration_bounds = array<i64: 1, 1>, scalar_prefetch = 0 : i64, scratch_operands = 0 : i64, tpu.core_type = #tpu.core_type<tc>, window_params = [{transform_indices = @transform_0, window_bounds = array<i64: 16, 128>}, {transform_indices = @transform_1, window_bounds = array<i64: 128, 128>}, {transform_indices = @transform_2, window_bounds = array<i64: 1, 128>}, {transform_indices = @transform_3, window_bounds = array<i64: 16, 128>}]} {
    %c0 = arith.constant 0 : index
    %c0_0 = arith.constant 0 : index
    %0 = vector.load %arg2[%c0, %c0_0] : memref<16x128xbf16, #tpu.memory_space<vmem>>, vector<16x128xbf16>
    %c0_1 = arith.constant 0 : index
    %c0_2 = arith.constant 0 : index
    %1 = vector.load %arg3[%c0_1, %c0_2] : memref<128x128xbf16, #tpu.memory_space<vmem>>, vector<128x128xbf16>
    %cst = arith.constant dense<0.000000e+00> : vector<16x128xf32>
    %2 = tpu.matmul %0, %1, %cst {dimension_numbers = #tpu.dot_dimension_numbers<[1], [0], [0], [1], [0, 0, 1, 1], [], []>} : vector<16x128xbf16>, vector<128x128xbf16>, vector<16x128xf32> -> vector<16x128xf32>
    %c0_3 = arith.constant 0 : index
    %c0_4 = arith.constant 0 : index
    %3 = vector.load %arg4[%c0_3, %c0_4] : memref<1x128xf32, #tpu.memory_space<vmem>>, vector<1x128xf32>
    %4 = vector.broadcast %3 : vector<1x128xf32> to vector<16x128xf32>
    %5 = arith.addf %2, %4 : vector<16x128xf32>
    %6 = arith.truncf %5 : vector<16x128xf32> to vector<16x128xbf16>
    %c0_5 = arith.constant 0 : index
    %c0_6 = arith.constant 0 : index
    %7 = vector.load %arg5[%c0_5, %c0_6] : memref<16x128xbf16, #tpu.memory_space<vmem>>, vector<16x128xbf16>
    tpu.vector_store %arg5[%c0_5, %c0_6], %6 {strides = array<i32>} : memref<16x128xbf16, #tpu.memory_space<vmem>>, vector<16x128xbf16>,
    return
  }
  func.func @transform_0(%arg0: i32, %arg1: i32) -> (i32, i32) {
    %c0_i32 = arith.constant 0 : i32
    %c0_i32_0 = arith.constant 0 : i32
    return %arg0, %c0_i32 : i32, i32
  }
  func.func @transform_1(%arg0: i32, %arg1: i32) -> (i32, i32) {
    %c0_i32 = arith.constant 0 : i32
    %c0_i32_0 = arith.constant 0 : i32
    return %c0_i32, %arg1 : i32, i32
  }
  func.func @transform_2(%arg0: i32, %arg1: i32) -> (i32, i32) {
    %c0_i32 = arith.constant 0 : i32
    %c0_i32_0 = arith.constant 0 : i32
    return %c0_i32, %arg1 : i32, i32
  }
  func.func @transform_3(%arg0: i32, %arg1: i32) -> (i32, i32) {
    %c0_i32 = arith.constant 0 : i32
    return %arg0, %arg1 : i32, i32
  }
}

module attributes {stable_mosaic.version = 11 : i64} {
  func.func @_attn_kernel(%arg0: i32, %arg1: i32, %arg2: memref<1x8x128xbf16, #tpu.memory_space<vmem>>, %arg3: memref<1x8x128xbf16, #tpu.memory_space<vmem>>, %arg4: memref<1x8x128xbf16, #tpu.memory_space<vmem>>, %arg5: memref<1x8x128xbf16, #tpu.memory_space<vmem>>) attributes {dimension_semantics = [#tpu.dimension_semantics<parallel>, #tpu.dimension_semantics<parallel>], iteration_bounds = array<i64: 2, 1>, scalar_prefetch = 0 : i64, scratch_operands = 0 : i64, tpu.core_type = #tpu.core_type<tc>, window_params = [{transform_indices = @transform_0, window_bounds = array<i64: 1, 8, 128>}, {transform_indices = @transform_1, window_bounds = array<i64: 1, 8, 128>}, {transform_indices = @transform_2, window_bounds = array<i64: 1, 8, 128>}, {transform_indices = @transform_3, window_bounds = array<i64: 1, 8, 128>}]} {
    %c0 = arith.constant 0 : index
    %c0_0 = arith.constant 0 : index
    %c0_1 = arith.constant 0 : index
    %0 = vector.load %arg2[%c0, %c0_0, %c0_1] : memref<1x8x128xbf16, #tpu.memory_space<vmem>>, vector<1x8x128xbf16>
    %1 = vector.shape_cast %0 : vector<1x8x128xbf16> to vector<8x128xbf16>
    %c0_2 = arith.constant 0 : index
    %c0_3 = arith.constant 0 : index
    %c0_4 = arith.constant 0 : index
    %2 = vector.load %arg3[%c0_2, %c0_3, %c0_4] : memref<1x8x128xbf16, #tpu.memory_space<vmem>>, vector<1x8x128xbf16>
    %3 = vector.shape_cast %2 : vector<1x8x128xbf16> to vector<8x128xbf16>
    %c0_5 = arith.constant 0 : index
    %c0_6 = arith.constant 0 : index
    %c0_7 = arith.constant 0 : index
    %4 = vector.load %arg4[%c0_5, %c0_6, %c0_7] : memref<1x8x128xbf16, #tpu.memory_space<vmem>>, vector<1x8x128xbf16>
    %5 = vector.shape_cast %4 : vector<1x8x128xbf16> to vector<8x128xbf16>
    %6 = vector.extract_strided_slice %1 {offsets = [0, 0], sizes = [8, 32], strides = [1, 1]} : vector<8x128xbf16> to vector<8x32xbf16>
    %7 = vector.extract_strided_slice %3 {offsets = [0, 0], sizes = [8, 32], strides = [1, 1]} : vector<8x128xbf16> to vector<8x32xbf16>
    %8 = vector.extract_strided_slice %5 {offsets = [0, 0], sizes = [8, 32], strides = [1, 1]} : vector<8x128xbf16> to vector<8x32xbf16>
    %cst = arith.constant dense<0.000000e+00> : vector<8x8xf32>
    %9 = tpu.matmul %6, %7, %cst {dimension_numbers = #tpu.dot_dimension_numbers<[1], [1], [0], [0], [0, 0, 1, 0], [], []>} : vector<8x32xbf16>, vector<8x32xbf16>, vector<8x8xf32> -> vector<8x8xf32>
    %cst_8 = arith.constant 0.176776692 : f32
    %10 = vector.broadcast %cst_8 : f32 to vector<8x8xf32>
    %11 = arith.mulf %9, %10 : vector<8x8xf32>
    %cst_9 = arith.constant dense<0xFF800000> : vector<8xf32>
    %12 = vector.multi_reduction <maximumf>, %11, %cst_9 [1] : vector<8x8xf32> to vector<8xf32>
    %13 = vector.shape_cast %12 : vector<8xf32> to vector<8x1xf32>
    %14 = vector.broadcast %13 : vector<8x1xf32> to vector<8x8xf32>
    %15 = arith.subf %11, %14 : vector<8x8xf32>
    %16 = math.exp %15 : vector<8x8xf32>
    %cst_10 = arith.constant dense<0.000000e+00> : vector<8xf32>
    %17 = vector.multi_reduction <add>, %16, %cst_10 [1] : vector<8x8xf32> to vector<8xf32>
    %18 = vector.shape_cast %17 : vector<8xf32> to vector<8x1xf32>
    %19 = tpu.reciprocal %18 {approx = true} : vector<8x1xf32> -> vector<8x1xf32>
    %20 = vector.broadcast %19 : vector<8x1xf32> to vector<8x8xf32>
    %21 = arith.mulf %16, %20 : vector<8x8xf32>
    %22 = arith.truncf %21 : vector<8x8xf32> to vector<8x8xbf16>
    %cst_11 = arith.constant dense<0.000000e+00> : vector<8x32xf32>
    %23 = tpu.matmul %22, %8, %cst_11 {dimension_numbers = #tpu.dot_dimension_numbers<[1], [0], [0], [1], [0, 0, 1, 1], [], []>} : vector<8x8xbf16>, vector<8x32xbf16>, vector<8x32xf32> -> vector<8x32xf32>
    %24 = vector.extract_strided_slice %1 {offsets = [0, 32], sizes = [8, 32], strides = [1, 1]} : vector<8x128xbf16> to vector<8x32xbf16>
    %25 = vector.extract_strided_slice %3 {offsets = [0, 32], sizes = [8, 32], strides = [1, 1]} : vector<8x128xbf16> to vector<8x32xbf16>
    %26 = vector.extract_strided_slice %5 {offsets = [0, 32], sizes = [8, 32], strides = [1, 1]} : vector<8x128xbf16> to vector<8x32xbf16>
    %cst_12 = arith.constant dense<0.000000e+00> : vector<8x8xf32>
    %27 = tpu.matmul %24, %25, %cst_12 {dimension_numbers = #tpu.dot_dimension_numbers<[1], [1], [0], [0], [0, 0, 1, 0], [], []>} : vector<8x32xbf16>, vector<8x32xbf16>, vector<8x8xf32> -> vector<8x8xf32>
    %cst_13 = arith.constant 0.176776692 : f32
    %28 = vector.broadcast %cst_13 : f32 to vector<8x8xf32>
    %29 = arith.mulf %27, %28 : vector<8x8xf32>
    %cst_14 = arith.constant dense<0xFF800000> : vector<8xf32>
    %30 = vector.multi_reduction <maximumf>, %29, %cst_14 [1] : vector<8x8xf32> to vector<8xf32>
    %31 = vector.shape_cast %30 : vector<8xf32> to vector<8x1xf32>
    %32 = vector.broadcast %31 : vector<8x1xf32> to vector<8x8xf32>
    %33 = arith.subf %29, %32 : vector<8x8xf32>
    %34 = math.exp %33 : vector<8x8xf32>
    %cst_15 = arith.constant dense<0.000000e+00> : vector<8xf32>
    %35 = vector.multi_reduction <add>, %34, %cst_15 [1] : vector<8x8xf32> to vector<8xf32>
    %36 = vector.shape_cast %35 : vector<8xf32> to vector<8x1xf32>
    %37 = tpu.reciprocal %36 {approx = true} : vector<8x1xf32> -> vector<8x1xf32>
    %38 = vector.broadcast %37 : vector<8x1xf32> to vector<8x8xf32>
    %39 = arith.mulf %34, %38 : vector<8x8xf32>
    %40 = arith.truncf %39 : vector<8x8xf32> to vector<8x8xbf16>
    %cst_16 = arith.constant dense<0.000000e+00> : vector<8x32xf32>
    %41 = tpu.matmul %40, %26, %cst_16 {dimension_numbers = #tpu.dot_dimension_numbers<[1], [0], [0], [1], [0, 0, 1, 1], [], []>} : vector<8x8xbf16>, vector<8x32xbf16>, vector<8x32xf32> -> vector<8x32xf32>
    %42 = vector.extract_strided_slice %1 {offsets = [0, 64], sizes = [8, 32], strides = [1, 1]} : vector<8x128xbf16> to vector<8x32xbf16>
    %43 = vector.extract_strided_slice %3 {offsets = [0, 64], sizes = [8, 32], strides = [1, 1]} : vector<8x128xbf16> to vector<8x32xbf16>
    %44 = vector.extract_strided_slice %5 {offsets = [0, 64], sizes = [8, 32], strides = [1, 1]} : vector<8x128xbf16> to vector<8x32xbf16>
    %cst_17 = arith.constant dense<0.000000e+00> : vector<8x8xf32>
    %45 = tpu.matmul %42, %43, %cst_17 {dimension_numbers = #tpu.dot_dimension_numbers<[1], [1], [0], [0], [0, 0, 1, 0], [], []>} : vector<8x32xbf16>, vector<8x32xbf16>, vector<8x8xf32> -> vector<8x8xf32>
    %cst_18 = arith.constant 0.176776692 : f32
    %46 = vector.broadcast %cst_18 : f32 to vector<8x8xf32>
    %47 = arith.mulf %45, %46 : vector<8x8xf32>
    %cst_19 = arith.constant dense<0xFF800000> : vector<8xf32>
    %48 = vector.multi_reduction <maximumf>, %47, %cst_19 [1] : vector<8x8xf32> to vector<8xf32>
    %49 = vector.shape_cast %48 : vector<8xf32> to vector<8x1xf32>
    %50 = vector.broadcast %49 : vector<8x1xf32> to vector<8x8xf32>
    %51 = arith.subf %47, %50 : vector<8x8xf32>
    %52 = math.exp %51 : vector<8x8xf32>
    %cst_20 = arith.constant dense<0.000000e+00> : vector<8xf32>
    %53 = vector.multi_reduction <add>, %52, %cst_20 [1] : vector<8x8xf32> to vector<8xf32>
    %54 = vector.shape_cast %53 : vector<8xf32> to vector<8x1xf32>
    %55 = tpu.reciprocal %54 {approx = true} : vector<8x1xf32> -> vector<8x1xf32>
    %56 = vector.broadcast %55 : vector<8x1xf32> to vector<8x8xf32>
    %57 = arith.mulf %52, %56 : vector<8x8xf32>
    %58 = arith.truncf %57 : vector<8x8xf32> to vector<8x8xbf16>
    %cst_21 = arith.constant dense<0.000000e+00> : vector<8x32xf32>
    %59 = tpu.matmul %58, %44, %cst_21 {dimension_numbers = #tpu.dot_dimension_numbers<[1], [0], [0], [1], [0, 0, 1, 1], [], []>} : vector<8x8xbf16>, vector<8x32xbf16>, vector<8x32xf32> -> vector<8x32xf32>
    %60 = vector.extract_strided_slice %1 {offsets = [0, 96], sizes = [8, 32], strides = [1, 1]} : vector<8x128xbf16> to vector<8x32xbf16>
    %61 = vector.extract_strided_slice %3 {offsets = [0, 96], sizes = [8, 32], strides = [1, 1]} : vector<8x128xbf16> to vector<8x32xbf16>
    %62 = vector.extract_strided_slice %5 {offsets = [0, 96], sizes = [8, 32], strides = [1, 1]} : vector<8x128xbf16> to vector<8x32xbf16>
    %cst_22 = arith.constant dense<0.000000e+00> : vector<8x8xf32>
    %63 = tpu.matmul %60, %61, %cst_22 {dimension_numbers = #tpu.dot_dimension_numbers<[1], [1], [0], [0], [0, 0, 1, 0], [], []>} : vector<8x32xbf16>, vector<8x32xbf16>, vector<8x8xf32> -> vector<8x8xf32>
    %cst_23 = arith.constant 0.176776692 : f32
    %64 = vector.broadcast %cst_23 : f32 to vector<8x8xf32>
    %65 = arith.mulf %63, %64 : vector<8x8xf32>
    %cst_24 = arith.constant dense<0xFF800000> : vector<8xf32>
    %66 = vector.multi_reduction <maximumf>, %65, %cst_24 [1] : vector<8x8xf32> to vector<8xf32>
    %67 = vector.shape_cast %66 : vector<8xf32> to vector<8x1xf32>
    %68 = vector.broadcast %67 : vector<8x1xf32> to vector<8x8xf32>
    %69 = arith.subf %65, %68 : vector<8x8xf32>
    %70 = math.exp %69 : vector<8x8xf32>
    %cst_25 = arith.constant dense<0.000000e+00> : vector<8xf32>
    %71 = vector.multi_reduction <add>, %70, %cst_25 [1] : vector<8x8xf32> to vector<8xf32>
    %72 = vector.shape_cast %71 : vector<8xf32> to vector<8x1xf32>
    %73 = tpu.reciprocal %72 {approx = true} : vector<8x1xf32> -> vector<8x1xf32>
    %74 = vector.broadcast %73 : vector<8x1xf32> to vector<8x8xf32>
    %75 = arith.mulf %70, %74 : vector<8x8xf32>
    %76 = arith.truncf %75 : vector<8x8xf32> to vector<8x8xbf16>
    %cst_26 = arith.constant dense<0.000000e+00> : vector<8x32xf32>
    %77 = tpu.matmul %76, %62, %cst_26 {dimension_numbers = #tpu.dot_dimension_numbers<[1], [0], [0], [1], [0, 0, 1, 1], [], []>} : vector<8x8xbf16>, vector<8x32xbf16>, vector<8x32xf32> -> vector<8x32xf32>
    %78 = tpu.concatenate %23, %41, %59, %77 in 1 : vector<8x32xf32>, vector<8x32xf32>, vector<8x32xf32>, vector<8x32xf32> -> vector<8x128xf32>
    %79 = arith.truncf %78 : vector<8x128xf32> to vector<8x128xbf16>
    %c0_27 = arith.constant 0 : index
    %c0_28 = arith.constant 0 : index
    %c0_29 = arith.constant 0 : index
    %80 = vector.load %arg5[%c0_27, %c0_28, %c0_29] : memref<1x8x128xbf16, #tpu.memory_space<vmem>>, vector<1x8x128xbf16>
    %81 = vector.shape_cast %80 : vector<1x8x128xbf16> to vector<8x128xbf16>
    %82 = vector.shape_cast %79 : vector<8x128xbf16> to vector<1x8x128xbf16>
    tpu.vector_store %arg5[%c0_27, %c0_28, %c0_29], %82 {strides = array<i32>} : memref<1x8x128xbf16, #tpu.memory_space<vmem>>, vector<1x8x128xbf16>,
    return
  }
  func.func @transform_0(%arg0: i32, %arg1: i32) -> (i32, i32, i32) {
    %c0_i32 = arith.constant 0 : i32
    %c0_i32_0 = arith.constant 0 : i32
    return %arg0, %arg1, %c0_i32 : i32, i32, i32
  }
  func.func @transform_1(%arg0: i32, %arg1: i32) -> (i32, i32, i32) {
    %c0_i32 = arith.constant 0 : i32
    %c1_i32 = arith.constant 1 : i32
    %c0_i32_0 = arith.constant 0 : i32
    return %arg0, %c0_i32, %c1_i32 : i32, i32, i32
  }
  func.func @transform_2(%arg0: i32, %arg1: i32) -> (i32, i32, i32) {
    %c0_i32 = arith.constant 0 : i32
    %c2_i32 = arith.constant 2 : i32
    %c0_i32_0 = arith.constant 0 : i32
    return %arg0, %c0_i32, %c2_i32 : i32, i32, i32
  }
  func.func @transform_3(%arg0: i32, %arg1: i32) -> (i32, i32, i32) {
    %c0_i32 = arith.constant 0 : i32
    %c0_i32_0 = arith.constant 0 : i32
    return %arg0, %arg1, %c0_i32 : i32, i32, i32
  }
}

module attributes {stable_mosaic.version = 11 : i64} {
  func.func @_linear_kernel(%arg0: i32, %arg1: i32, %arg2: memref<16x128xbf16, #tpu.memory_space<vmem>>, %arg3: memref<128x512xbf16, #tpu.memory_space<vmem>>, %arg4: memref<1x512xf32, #tpu.memory_space<vmem>>, %arg5: memref<6x512xf32, #tpu.memory_space<vmem>>, %arg6: memref<4x512xf32, #tpu.memory_space<vmem>>, %arg7: memref<16x512xbf16, #tpu.memory_space<vmem>>) attributes {dimension_semantics = [#tpu.dimension_semantics<parallel>, #tpu.dimension_semantics<parallel>], iteration_bounds = array<i64: 1, 1>, scalar_prefetch = 0 : i64, scratch_operands = 0 : i64, tpu.core_type = #tpu.core_type<tc>, window_params = [{transform_indices = @transform_0, window_bounds = array<i64: 16, 128>}, {transform_indices = @transform_1, window_bounds = array<i64: 128, 512>}, {transform_indices = @transform_2, window_bounds = array<i64: 1, 512>}, {transform_indices = @transform_3, window_bounds = array<i64: 6, 512>}, {transform_indices = @transform_4, window_bounds = array<i64: 4, 512>}, {transform_indices = @transform_5, window_bounds = array<i64: 16, 512>}]} {
    %c0 = arith.constant 0 : index
    %c0_0 = arith.constant 0 : index
    %0 = vector.load %arg2[%c0, %c0_0] : memref<16x128xbf16, #tpu.memory_space<vmem>>, vector<16x128xbf16>
    %c0_1 = arith.constant 0 : index
    %c0_2 = arith.constant 0 : index
    %1 = vector.load %arg3[%c0_1, %c0_2] : memref<128x512xbf16, #tpu.memory_space<vmem>>, vector<128x512xbf16>
    %cst = arith.constant dense<0.000000e+00> : vector<16x512xf32>
    %2 = tpu.matmul %0, %1, %cst {dimension_numbers = #tpu.dot_dimension_numbers<[1], [0], [0], [1], [0, 0, 1, 1], [], []>} : vector<16x128xbf16>, vector<128x512xbf16>, vector<16x512xf32> -> vector<16x512xf32>
    %c0_3 = arith.constant 0 : index
    %c0_4 = arith.constant 0 : index
    %3 = vector.load %arg4[%c0_3, %c0_4] : memref<1x512xf32, #tpu.memory_space<vmem>>, vector<1x512xf32>
    %4 = vector.broadcast %3 : vector<1x512xf32> to vector<16x512xf32>
    %5 = arith.addf %2, %4 : vector<16x512xf32>
    %c0_5 = arith.constant 0 : index
    %c0_6 = arith.constant 0 : index
    %6 = vector.load %arg5[%c0_5, %c0_6] : memref<6x512xf32, #tpu.memory_space<vmem>>, vector<6x512xf32>
    %c0_7 = arith.constant 0 : index
    %c0_8 = arith.constant 0 : index
    %7 = vector.load %arg6[%c0_7, %c0_8] : memref<4x512xf32, #tpu.memory_space<vmem>>, vector<4x512xf32>
    %8 = vector.extract_strided_slice %6 {offsets = [5, 0], sizes = [1, 512], strides = [1, 1]} : vector<6x512xf32> to vector<1x512xf32>
    %9 = vector.broadcast %8 : vector<1x512xf32> to vector<16x512xf32>
    %10 = arith.mulf %9, %5 : vector<16x512xf32>
    %11 = vector.extract_strided_slice %6 {offsets = [4, 0], sizes = [1, 512], strides = [1, 1]} : vector<6x512xf32> to vector<1x512xf32>
    %12 = vector.broadcast %11 : vector<1x512xf32> to vector<16x512xf32>
    %13 = arith.addf %10, %12 : vector<16x512xf32>
    %14 = arith.mulf %13, %5 : vector<16x512xf32>
    %15 = vector.extract_strided_slice %6 {offsets = [3, 0], sizes = [1, 512], strides = [1, 1]} : vector<6x512xf32> to vector<1x512xf32>
    %16 = vector.broadcast %15 : vector<1x512xf32> to vector<16x512xf32>
    %17 = arith.addf %14, %16 : vector<16x512xf32>
    %18 = arith.mulf %17, %5 : vector<16x512xf32>
    %19 = vector.extract_strided_slice %6 {offsets = [2, 0], sizes = [1, 512], strides = [1, 1]} : vector<6x512xf32> to vector<1x512xf32>
    %20 = vector.broadcast %19 : vector<1x512xf32> to vector<16x512xf32>
    %21 = arith.addf %18, %20 : vector<16x512xf32>
    %22 = arith.mulf %21, %5 : vector<16x512xf32>
    %23 = vector.extract_strided_slice %6 {offsets = [1, 0], sizes = [1, 512], strides = [1, 1]} : vector<6x512xf32> to vector<1x512xf32>
    %24 = vector.broadcast %23 : vector<1x512xf32> to vector<16x512xf32>
    %25 = arith.addf %22, %24 : vector<16x512xf32>
    %26 = arith.mulf %25, %5 : vector<16x512xf32>
    %27 = vector.extract_strided_slice %6 {offsets = [0, 0], sizes = [1, 512], strides = [1, 1]} : vector<6x512xf32> to vector<1x512xf32>
    %28 = vector.broadcast %27 : vector<1x512xf32> to vector<16x512xf32>
    %29 = arith.addf %26, %28 : vector<16x512xf32>
    %30 = vector.extract_strided_slice %7 {offsets = [3, 0], sizes = [1, 512], strides = [1, 1]} : vector<4x512xf32> to vector<1x512xf32>
    %31 = vector.broadcast %30 : vector<1x512xf32> to vector<16x512xf32>
    %32 = arith.mulf %31, %5 : vector<16x512xf32>
    %33 = vector.extract_strided_slice %7 {offsets = [2, 0], sizes = [1, 512], strides = [1, 1]} : vector<4x512xf32> to vector<1x512xf32>
    %34 = vector.broadcast %33 : vector<1x512xf32> to vector<16x512xf32>
    %35 = arith.addf %32, %34 : vector<16x512xf32>
    %36 = arith.mulf %35, %5 : vector<16x512xf32>
    %37 = vector.extract_strided_slice %7 {offsets = [1, 0], sizes = [1, 512], strides = [1, 1]} : vector<4x512xf32> to vector<1x512xf32>
    %38 = vector.broadcast %37 : vector<1x512xf32> to vector<16x512xf32>
    %39 = arith.addf %36, %38 : vector<16x512xf32>
    %40 = arith.mulf %39, %5 : vector<16x512xf32>
    %41 = vector.extract_strided_slice %7 {offsets = [0, 0], sizes = [1, 512], strides = [1, 1]} : vector<4x512xf32> to vector<1x512xf32>
    %42 = vector.broadcast %41 : vector<1x512xf32> to vector<16x512xf32>
    %43 = arith.addf %40, %42 : vector<16x512xf32>
    %44 = arith.mulf %43, %5 : vector<16x512xf32>
    %45 = math.absf %44 : vector<16x512xf32>
    %cst_9 = arith.constant 1.000000e+00 : f32
    %46 = vector.broadcast %cst_9 : f32 to vector<16x512xf32>
    %47 = arith.addf %46, %45 : vector<16x512xf32>
    %48 = arith.divf %29, %47 : vector<16x512xf32>
    %49 = arith.truncf %48 : vector<16x512xf32> to vector<16x512xbf16>
    %c0_10 = arith.constant 0 : index
    %c0_11 = arith.constant 0 : index
    %50 = vector.load %arg7[%c0_10, %c0_11] : memref<16x512xbf16, #tpu.memory_space<vmem>>, vector<16x512xbf16>
    tpu.vector_store %arg7[%c0_10, %c0_11], %49 {strides = array<i32>} : memref<16x512xbf16, #tpu.memory_space<vmem>>, vector<16x512xbf16>,
    return
  }
  func.func @transform_0(%arg0: i32, %arg1: i32) -> (i32, i32) {
    %c0_i32 = arith.constant 0 : i32
    %c0_i32_0 = arith.constant 0 : i32
    return %arg0, %c0_i32 : i32, i32
  }
  func.func @transform_1(%arg0: i32, %arg1: i32) -> (i32, i32) {
    %c0_i32 = arith.constant 0 : i32
    %c0_i32_0 = arith.constant 0 : i32
    return %c0_i32, %arg1 : i32, i32
  }
  func.func @transform_2(%arg0: i32, %arg1: i32) -> (i32, i32) {
    %c0_i32 = arith.constant 0 : i32
    %c0_i32_0 = arith.constant 0 : i32
    return %c0_i32, %arg1 : i32, i32
  }
  func.func @transform_3(%arg0: i32, %arg1: i32) -> (i32, i32) {
    %c0_i32 = arith.constant 0 : i32
    %c0_i32_0 = arith.constant 0 : i32
    return %c0_i32, %arg1 : i32, i32
  }
  func.func @transform_4(%arg0: i32, %arg1: i32) -> (i32, i32) {
    %c0_i32 = arith.constant 0 : i32
    %c0_i32_0 = arith.constant 0 : i32
    return %c0_i32, %arg1 : i32, i32
  }
  func.func @transform_5(%arg0: i32, %arg1: i32) -> (i32, i32) {
    %c0_i32 = arith.constant 0 : i32
    return %arg0, %arg1 : i32, i32
  }
}

module attributes {stable_mosaic.version = 11 : i64} {
  func.func @_add_ln_kernel(%arg0: i32, %arg1: memref<16x128xbf16, #tpu.memory_space<vmem>>, %arg2: memref<16x128xbf16, #tpu.memory_space<vmem>>, %arg3: memref<1x128xf32, #tpu.memory_space<vmem>>, %arg4: memref<1x128xf32, #tpu.memory_space<vmem>>, %arg5: memref<6x128xf32, #tpu.memory_space<vmem>>, %arg6: memref<4x128xf32, #tpu.memory_space<vmem>>, %arg7: memref<16x128xbf16, #tpu.memory_space<vmem>>, %arg8: memref<16x128xbf16, #tpu.memory_space<vmem>>) attributes {dimension_semantics = [#tpu.dimension_semantics<parallel>], iteration_bounds = array<i64: 1>, scalar_prefetch = 0 : i64, scratch_operands = 0 : i64, tpu.core_type = #tpu.core_type<tc>, window_params = [{transform_indices = @transform_0, window_bounds = array<i64: 16, 128>}, {transform_indices = @transform_1, window_bounds = array<i64: 16, 128>}, {pipeline_mode = #tpu.pipeline_mode<synchronous>, transform_indices = @transform_2, window_bounds = array<i64: 1, 128>}, {pipeline_mode = #tpu.pipeline_mode<synchronous>, transform_indices = @transform_3, window_bounds = array<i64: 1, 128>}, {pipeline_mode = #tpu.pipeline_mode<synchronous>, transform_indices = @transform_4, window_bounds = array<i64: 6, 128>}, {pipeline_mode = #tpu.pipeline_mode<synchronous>, transform_indices = @transform_5, window_bounds = array<i64: 4, 128>}, {transform_indices = @transform_6, window_bounds = array<i64: 16, 128>}, {transform_indices = @transform_7, window_bounds = array<i64: 16, 128>}]} {
    %c0 = arith.constant 0 : index
    %c0_0 = arith.constant 0 : index
    %0 = vector.load %arg1[%c0, %c0_0] : memref<16x128xbf16, #tpu.memory_space<vmem>>, vector<16x128xbf16>
    %1 = arith.extf %0 : vector<16x128xbf16> to vector<16x128xf32>
    %c0_1 = arith.constant 0 : index
    %c0_2 = arith.constant 0 : index
    %2 = vector.load %arg2[%c0_1, %c0_2] : memref<16x128xbf16, #tpu.memory_space<vmem>>, vector<16x128xbf16>
    %3 = arith.extf %2 : vector<16x128xbf16> to vector<16x128xf32>
    %4 = arith.addf %1, %3 : vector<16x128xf32>
    %cst = arith.constant dense<0.000000e+00> : vector<16xf32>
    %5 = vector.multi_reduction <add>, %4, %cst [1] : vector<16x128xf32> to vector<16xf32>
    %6 = vector.shape_cast %5 : vector<16xf32> to vector<16x1xf32>
    %cst_3 = arith.constant 1.280000e+02 : f32
    %7 = vector.broadcast %cst_3 : f32 to vector<16x1xf32>
    %8 = arith.divf %6, %7 : vector<16x1xf32>
    %9 = vector.broadcast %8 : vector<16x1xf32> to vector<16x128xf32>
    %10 = arith.subf %4, %9 : vector<16x128xf32>
    %11 = arith.mulf %10, %10 : vector<16x128xf32>
    %cst_4 = arith.constant dense<0.000000e+00> : vector<16xf32>
    %12 = vector.multi_reduction <add>, %11, %cst_4 [1] : vector<16x128xf32> to vector<16xf32>
    %13 = vector.shape_cast %12 : vector<16xf32> to vector<16x1xf32>
    %cst_5 = arith.constant 1.280000e+02 : f32
    %14 = vector.broadcast %cst_5 : f32 to vector<16x1xf32>
    %15 = arith.divf %13, %14 : vector<16x1xf32>
    %cst_6 = arith.constant 9.99999974E-6 : f32
    %16 = vector.broadcast %cst_6 : f32 to vector<16x1xf32>
    %17 = arith.addf %15, %16 : vector<16x1xf32>
    %18 = math.rsqrt %17 : vector<16x1xf32>
    %19 = vector.broadcast %18 : vector<16x1xf32> to vector<16x128xf32>
    %20 = arith.mulf %10, %19 : vector<16x128xf32>
    %c0_7 = arith.constant 0 : index
    %c0_8 = arith.constant 0 : index
    %21 = vector.load %arg3[%c0_7, %c0_8] : memref<1x128xf32, #tpu.memory_space<vmem>>, vector<1x128xf32>
    %22 = vector.broadcast %21 : vector<1x128xf32> to vector<16x128xf32>
    %23 = arith.mulf %20, %22 : vector<16x128xf32>
    %c0_9 = arith.constant 0 : index
    %c0_10 = arith.constant 0 : index
    %24 = vector.load %arg4[%c0_9, %c0_10] : memref<1x128xf32, #tpu.memory_space<vmem>>, vector<1x128xf32>
    %25 = vector.broadcast %24 : vector<1x128xf32> to vector<16x128xf32>
    %26 = arith.addf %23, %25 : vector<16x128xf32>
    %27 = arith.truncf %26 : vector<16x128xf32> to vector<16x128xbf16>
    %c0_11 = arith.constant 0 : index
    %c0_12 = arith.constant 0 : index
    %28 = vector.load %arg7[%c0_11, %c0_12] : memref<16x128xbf16, #tpu.memory_space<vmem>>, vector<16x128xbf16>
    tpu.vector_store %arg7[%c0_11, %c0_12], %27 {strides = array<i32>} : memref<16x128xbf16, #tpu.memory_space<vmem>>, vector<16x128xbf16>,
    %c0_13 = arith.constant 0 : index
    %c0_14 = arith.constant 0 : index
    %29 = vector.load %arg5[%c0_13, %c0_14] : memref<6x128xf32, #tpu.memory_space<vmem>>, vector<6x128xf32>
    %c0_15 = arith.constant 0 : index
    %c0_16 = arith.constant 0 : index
    %30 = vector.load %arg6[%c0_15, %c0_16] : memref<4x128xf32, #tpu.memory_space<vmem>>, vector<4x128xf32>
    %31 = vector.extract_strided_slice %29 {offsets = [5, 0], sizes = [1, 128], strides = [1, 1]} : vector<6x128xf32> to vector<1x128xf32>
    %32 = vector.broadcast %31 : vector<1x128xf32> to vector<16x128xf32>
    %33 = arith.mulf %32, %26 : vector<16x128xf32>
    %34 = vector.extract_strided_slice %29 {offsets = [4, 0], sizes = [1, 128], strides = [1, 1]} : vector<6x128xf32> to vector<1x128xf32>
    %35 = vector.broadcast %34 : vector<1x128xf32> to vector<16x128xf32>
    %36 = arith.addf %33, %35 : vector<16x128xf32>
    %37 = arith.mulf %36, %26 : vector<16x128xf32>
    %38 = vector.extract_strided_slice %29 {offsets = [3, 0], sizes = [1, 128], strides = [1, 1]} : vector<6x128xf32> to vector<1x128xf32>
    %39 = vector.broadcast %38 : vector<1x128xf32> to vector<16x128xf32>
    %40 = arith.addf %37, %39 : vector<16x128xf32>
    %41 = arith.mulf %40, %26 : vector<16x128xf32>
    %42 = vector.extract_strided_slice %29 {offsets = [2, 0], sizes = [1, 128], strides = [1, 1]} : vector<6x128xf32> to vector<1x128xf32>
    %43 = vector.broadcast %42 : vector<1x128xf32> to vector<16x128xf32>
    %44 = arith.addf %41, %43 : vector<16x128xf32>
    %45 = arith.mulf %44, %26 : vector<16x128xf32>
    %46 = vector.extract_strided_slice %29 {offsets = [1, 0], sizes = [1, 128], strides = [1, 1]} : vector<6x128xf32> to vector<1x128xf32>
    %47 = vector.broadcast %46 : vector<1x128xf32> to vector<16x128xf32>
    %48 = arith.addf %45, %47 : vector<16x128xf32>
    %49 = arith.mulf %48, %26 : vector<16x128xf32>
    %50 = vector.extract_strided_slice %29 {offsets = [0, 0], sizes = [1, 128], strides = [1, 1]} : vector<6x128xf32> to vector<1x128xf32>
    %51 = vector.broadcast %50 : vector<1x128xf32> to vector<16x128xf32>
    %52 = arith.addf %49, %51 : vector<16x128xf32>
    %53 = vector.extract_strided_slice %30 {offsets = [3, 0], sizes = [1, 128], strides = [1, 1]} : vector<4x128xf32> to vector<1x128xf32>
    %54 = vector.broadcast %53 : vector<1x128xf32> to vector<16x128xf32>
    %55 = arith.mulf %54, %26 : vector<16x128xf32>
    %56 = vector.extract_strided_slice %30 {offsets = [2, 0], sizes = [1, 128], strides = [1, 1]} : vector<4x128xf32> to vector<1x128xf32>
    %57 = vector.broadcast %56 : vector<1x128xf32> to vector<16x128xf32>
    %58 = arith.addf %55, %57 : vector<16x128xf32>
    %59 = arith.mulf %58, %26 : vector<16x128xf32>
    %60 = vector.extract_strided_slice %30 {offsets = [1, 0], sizes = [1, 128], strides = [1, 1]} : vector<4x128xf32> to vector<1x128xf32>
    %61 = vector.broadcast %60 : vector<1x128xf32> to vector<16x128xf32>
    %62 = arith.addf %59, %61 : vector<16x128xf32>
    %63 = arith.mulf %62, %26 : vector<16x128xf32>
    %64 = vector.extract_strided_slice %30 {offsets = [0, 0], sizes = [1, 128], strides = [1, 1]} : vector<4x128xf32> to vector<1x128xf32>
    %65 = vector.broadcast %64 : vector<1x128xf32> to vector<16x128xf32>
    %66 = arith.addf %63, %65 : vector<16x128xf32>
    %67 = arith.mulf %66, %26 : vector<16x128xf32>
    %68 = math.absf %67 : vector<16x128xf32>
    %cst_17 = arith.constant 1.000000e+00 : f32
    %69 = vector.broadcast %cst_17 : f32 to vector<16x128xf32>
    %70 = arith.addf %69, %68 : vector<16x128xf32>
    %71 = arith.divf %52, %70 : vector<16x128xf32>
    %72 = arith.truncf %71 : vector<16x128xf32> to vector<16x128xbf16>
    %c0_18 = arith.constant 0 : index
    %c0_19 = arith.constant 0 : index
    %73 = vector.load %arg8[%c0_18, %c0_19] : memref<16x128xbf16, #tpu.memory_space<vmem>>, vector<16x128xbf16>
    tpu.vector_store %arg8[%c0_18, %c0_19], %72 {strides = array<i32>} : memref<16x128xbf16, #tpu.memory_space<vmem>>, vector<16x128xbf16>,
    return
  }
  func.func @transform_0(%arg0: i32) -> (i32, i32) {
    %c0_i32 = arith.constant 0 : i32
    %c0_i32_0 = arith.constant 0 : i32
    return %arg0, %c0_i32 : i32, i32
  }
  func.func @transform_1(%arg0: i32) -> (i32, i32) {
    %c0_i32 = arith.constant 0 : i32
    %c0_i32_0 = arith.constant 0 : i32
    return %arg0, %c0_i32 : i32, i32
  }
  func.func @transform_2(%arg0: i32) -> (i32, i32) {
    %c0_i32 = arith.constant 0 : i32
    %c0_i32_0 = arith.constant 0 : i32
    %c0_i32_1 = arith.constant 0 : i32
    return %c0_i32, %c0_i32_0 : i32, i32
  }
  func.func @transform_3(%arg0: i32) -> (i32, i32) {
    %c0_i32 = arith.constant 0 : i32
    %c0_i32_0 = arith.constant 0 : i32
    %c0_i32_1 = arith.constant 0 : i32
    return %c0_i32, %c0_i32_0 : i32, i32
  }
  func.func @transform_4(%arg0: i32) -> (i32, i32) {
    %c0_i32 = arith.constant 0 : i32
    %c0_i32_0 = arith.constant 0 : i32
    %c0_i32_1 = arith.constant 0 : i32
    return %c0_i32, %c0_i32_0 : i32, i32
  }
  func.func @transform_5(%arg0: i32) -> (i32, i32) {
    %c0_i32 = arith.constant 0 : i32
    %c0_i32_0 = arith.constant 0 : i32
    %c0_i32_1 = arith.constant 0 : i32
    return %c0_i32, %c0_i32_0 : i32, i32
  }
  func.func @transform_6(%arg0: i32) -> (i32, i32) {
    %c0_i32 = arith.constant 0 : i32
    %c0_i32_0 = arith.constant 0 : i32
    return %arg0, %c0_i32 : i32, i32
  }
  func.func @transform_7(%arg0: i32) -> (i32, i32) {
    %c0_i32 = arith.constant 0 : i32
    %c0_i32_0 = arith.constant 0 : i32
    return %arg0, %c0_i32 : i32, i32
  }
}

module attributes {stable_mosaic.version = 11 : i64} {
  func.func @_add_ln_kernel(%arg0: i32, %arg1: memref<16x128xbf16, #tpu.memory_space<vmem>>, %arg2: memref<16x128xbf16, #tpu.memory_space<vmem>>, %arg3: memref<1x128xf32, #tpu.memory_space<vmem>>, %arg4: memref<1x128xf32, #tpu.memory_space<vmem>>, %arg5: memref<16x128xbf16, #tpu.memory_space<vmem>>) attributes {dimension_semantics = [#tpu.dimension_semantics<parallel>], iteration_bounds = array<i64: 1>, scalar_prefetch = 0 : i64, scratch_operands = 0 : i64, tpu.core_type = #tpu.core_type<tc>, window_params = [{transform_indices = @transform_0, window_bounds = array<i64: 16, 128>}, {transform_indices = @transform_1, window_bounds = array<i64: 16, 128>}, {pipeline_mode = #tpu.pipeline_mode<synchronous>, transform_indices = @transform_2, window_bounds = array<i64: 1, 128>}, {pipeline_mode = #tpu.pipeline_mode<synchronous>, transform_indices = @transform_3, window_bounds = array<i64: 1, 128>}, {transform_indices = @transform_4, window_bounds = array<i64: 16, 128>}]} {
    %c0 = arith.constant 0 : index
    %c0_0 = arith.constant 0 : index
    %0 = vector.load %arg1[%c0, %c0_0] : memref<16x128xbf16, #tpu.memory_space<vmem>>, vector<16x128xbf16>
    %1 = arith.extf %0 : vector<16x128xbf16> to vector<16x128xf32>
    %c0_1 = arith.constant 0 : index
    %c0_2 = arith.constant 0 : index
    %2 = vector.load %arg2[%c0_1, %c0_2] : memref<16x128xbf16, #tpu.memory_space<vmem>>, vector<16x128xbf16>
    %3 = arith.extf %2 : vector<16x128xbf16> to vector<16x128xf32>
    %4 = arith.addf %1, %3 : vector<16x128xf32>
    %cst = arith.constant dense<0.000000e+00> : vector<16xf32>
    %5 = vector.multi_reduction <add>, %4, %cst [1] : vector<16x128xf32> to vector<16xf32>
    %6 = vector.shape_cast %5 : vector<16xf32> to vector<16x1xf32>
    %cst_3 = arith.constant 1.280000e+02 : f32
    %7 = vector.broadcast %cst_3 : f32 to vector<16x1xf32>
    %8 = arith.divf %6, %7 : vector<16x1xf32>
    %9 = vector.broadcast %8 : vector<16x1xf32> to vector<16x128xf32>
    %10 = arith.subf %4, %9 : vector<16x128xf32>
    %11 = arith.mulf %10, %10 : vector<16x128xf32>
    %cst_4 = arith.constant dense<0.000000e+00> : vector<16xf32>
    %12 = vector.multi_reduction <add>, %11, %cst_4 [1] : vector<16x128xf32> to vector<16xf32>
    %13 = vector.shape_cast %12 : vector<16xf32> to vector<16x1xf32>
    %cst_5 = arith.constant 1.280000e+02 : f32
    %14 = vector.broadcast %cst_5 : f32 to vector<16x1xf32>
    %15 = arith.divf %13, %14 : vector<16x1xf32>
    %cst_6 = arith.constant 9.99999974E-6 : f32
    %16 = vector.broadcast %cst_6 : f32 to vector<16x1xf32>
    %17 = arith.addf %15, %16 : vector<16x1xf32>
    %18 = math.rsqrt %17 : vector<16x1xf32>
    %19 = vector.broadcast %18 : vector<16x1xf32> to vector<16x128xf32>
    %20 = arith.mulf %10, %19 : vector<16x128xf32>
    %c0_7 = arith.constant 0 : index
    %c0_8 = arith.constant 0 : index
    %21 = vector.load %arg3[%c0_7, %c0_8] : memref<1x128xf32, #tpu.memory_space<vmem>>, vector<1x128xf32>
    %22 = vector.broadcast %21 : vector<1x128xf32> to vector<16x128xf32>
    %23 = arith.mulf %20, %22 : vector<16x128xf32>
    %c0_9 = arith.constant 0 : index
    %c0_10 = arith.constant 0 : index
    %24 = vector.load %arg4[%c0_9, %c0_10] : memref<1x128xf32, #tpu.memory_space<vmem>>, vector<1x128xf32>
    %25 = vector.broadcast %24 : vector<1x128xf32> to vector<16x128xf32>
    %26 = arith.addf %23, %25 : vector<16x128xf32>
    %27 = arith.truncf %26 : vector<16x128xf32> to vector<16x128xbf16>
    %c0_11 = arith.constant 0 : index
    %c0_12 = arith.constant 0 : index
    %28 = vector.load %arg5[%c0_11, %c0_12] : memref<16x128xbf16, #tpu.memory_space<vmem>>, vector<16x128xbf16>
    tpu.vector_store %arg5[%c0_11, %c0_12], %27 {strides = array<i32>} : memref<16x128xbf16, #tpu.memory_space<vmem>>, vector<16x128xbf16>,
    return
  }
  func.func @transform_0(%arg0: i32) -> (i32, i32) {
    %c0_i32 = arith.constant 0 : i32
    %c0_i32_0 = arith.constant 0 : i32
    return %arg0, %c0_i32 : i32, i32
  }
  func.func @transform_1(%arg0: i32) -> (i32, i32) {
    %c0_i32 = arith.constant 0 : i32
    %c0_i32_0 = arith.constant 0 : i32
    return %arg0, %c0_i32 : i32, i32
  }
  func.func @transform_2(%arg0: i32) -> (i32, i32) {
    %c0_i32 = arith.constant 0 : i32
    %c0_i32_0 = arith.constant 0 : i32
    %c0_i32_1 = arith.constant 0 : i32
    return %c0_i32, %c0_i32_0 : i32, i32
  }
  func.func @transform_3(%arg0: i32) -> (i32, i32) {
    %c0_i32 = arith.constant 0 : i32
    %c0_i32_0 = arith.constant 0 : i32
    %c0_i32_1 = arith.constant 0 : i32
    return %c0_i32, %c0_i32_0 : i32, i32
  }
  func.func @transform_4(%arg0: i32) -> (i32, i32) {
    %c0_i32 = arith.constant 0 : i32
    %c0_i32_0 = arith.constant 0 : i32
    return %arg0, %c0_i32 : i32, i32
  }
}

module attributes {stable_mosaic.version = 11 : i64} {
  func.func @_linear_kernel(%arg0: i32, %arg1: i32, %arg2: memref<16x512xbf16, #tpu.memory_space<vmem>>, %arg3: memref<512x128xbf16, #tpu.memory_space<vmem>>, %arg4: memref<1x128xf32, #tpu.memory_space<vmem>>, %arg5: memref<16x128xbf16, #tpu.memory_space<vmem>>) attributes {dimension_semantics = [#tpu.dimension_semantics<parallel>, #tpu.dimension_semantics<parallel>], iteration_bounds = array<i64: 1, 1>, scalar_prefetch = 0 : i64, scratch_operands = 0 : i64, tpu.core_type = #tpu.core_type<tc>, window_params = [{transform_indices = @transform_0, window_bounds = array<i64: 16, 512>}, {transform_indices = @transform_1, window_bounds = array<i64: 512, 128>}, {transform_indices = @transform_2, window_bounds = array<i64: 1, 128>}, {transform_indices = @transform_3, window_bounds = array<i64: 16, 128>}]} {
    %c0 = arith.constant 0 : index
    %c0_0 = arith.constant 0 : index
    %0 = vector.load %arg2[%c0, %c0_0] : memref<16x512xbf16, #tpu.memory_space<vmem>>, vector<16x512xbf16>
    %c0_1 = arith.constant 0 : index
    %c0_2 = arith.constant 0 : index
    %1 = vector.load %arg3[%c0_1, %c0_2] : memref<512x128xbf16, #tpu.memory_space<vmem>>, vector<512x128xbf16>
    %cst = arith.constant dense<0.000000e+00> : vector<16x128xf32>
    %2 = tpu.matmul %0, %1, %cst {dimension_numbers = #tpu.dot_dimension_numbers<[1], [0], [0], [1], [0, 0, 1, 1], [], []>} : vector<16x512xbf16>, vector<512x128xbf16>, vector<16x128xf32> -> vector<16x128xf32>
    %c0_3 = arith.constant 0 : index
    %c0_4 = arith.constant 0 : index
    %3 = vector.load %arg4[%c0_3, %c0_4] : memref<1x128xf32, #tpu.memory_space<vmem>>, vector<1x128xf32>
    %4 = vector.broadcast %3 : vector<1x128xf32> to vector<16x128xf32>
    %5 = arith.addf %2, %4 : vector<16x128xf32>
    %6 = arith.truncf %5 : vector<16x128xf32> to vector<16x128xbf16>
    %c0_5 = arith.constant 0 : index
    %c0_6 = arith.constant 0 : index
    %7 = vector.load %arg5[%c0_5, %c0_6] : memref<16x128xbf16, #tpu.memory_space<vmem>>, vector<16x128xbf16>
    tpu.vector_store %arg5[%c0_5, %c0_6], %6 {strides = array<i32>} : memref<16x128xbf16, #tpu.memory_space<vmem>>, vector<16x128xbf16>,
    return
  }
  func.func @transform_0(%arg0: i32, %arg1: i32) -> (i32, i32) {
    %c0_i32 = arith.constant 0 : i32
    %c0_i32_0 = arith.constant 0 : i32
    return %arg0, %c0_i32 : i32, i32
  }
  func.func @transform_1(%arg0: i32, %arg1: i32) -> (i32, i32) {
    %c0_i32 = arith.constant 0 : i32
    %c0_i32_0 = arith.constant 0 : i32
    return %c0_i32, %arg1 : i32, i32
  }
  func.func @transform_2(%arg0: i32, %arg1: i32) -> (i32, i32) {
    %c0_i32 = arith.constant 0 : i32
    %c0_i32_0 = arith.constant 0 : i32
    return %c0_i32, %arg1 : i32, i32
  }
  func.func @transform_3(%arg0: i32, %arg1: i32) -> (i32, i32) {
    %c0_i32 = arith.constant 0 : i32
    return %arg0, %arg1 : i32, i32
  }
}

module attributes {stable_mosaic.version = 11 : i64} {
  func.func @_linear_kernel(%arg0: i32, %arg1: i32, %arg2: memref<16x128xbf16, #tpu.memory_space<vmem>>, %arg3: memref<128x128xbf16, #tpu.memory_space<vmem>>, %arg4: memref<1x128xf32, #tpu.memory_space<vmem>>, %arg5: memref<16x128xbf16, #tpu.memory_space<vmem>>) attributes {dimension_semantics = [#tpu.dimension_semantics<parallel>, #tpu.dimension_semantics<parallel>], iteration_bounds = array<i64: 1, 1>, scalar_prefetch = 0 : i64, scratch_operands = 0 : i64, tpu.core_type = #tpu.core_type<tc>, window_params = [{transform_indices = @transform_0, window_bounds = array<i64: 16, 128>}, {transform_indices = @transform_1, window_bounds = array<i64: 128, 128>}, {transform_indices = @transform_2, window_bounds = array<i64: 1, 128>}, {transform_indices = @transform_3, window_bounds = array<i64: 16, 128>}]} {
    %c0 = arith.constant 0 : index
    %c0_0 = arith.constant 0 : index
    %0 = vector.load %arg2[%c0, %c0_0] : memref<16x128xbf16, #tpu.memory_space<vmem>>, vector<16x128xbf16>
    %c0_1 = arith.constant 0 : index
    %c0_2 = arith.constant 0 : index
    %1 = vector.load %arg3[%c0_1, %c0_2] : memref<128x128xbf16, #tpu.memory_space<vmem>>, vector<128x128xbf16>
    %cst = arith.constant dense<0.000000e+00> : vector<16x128xf32>
    %2 = tpu.matmul %0, %1, %cst {dimension_numbers = #tpu.dot_dimension_numbers<[1], [0], [0], [1], [0, 0, 1, 1], [], []>} : vector<16x128xbf16>, vector<128x128xbf16>, vector<16x128xf32> -> vector<16x128xf32>
    %c0_3 = arith.constant 0 : index
    %c0_4 = arith.constant 0 : index
    %3 = vector.load %arg4[%c0_3, %c0_4] : memref<1x128xf32, #tpu.memory_space<vmem>>, vector<1x128xf32>
    %4 = vector.broadcast %3 : vector<1x128xf32> to vector<16x128xf32>
    %5 = arith.addf %2, %4 : vector<16x128xf32>
    %6 = arith.truncf %5 : vector<16x128xf32> to vector<16x128xbf16>
    %c0_5 = arith.constant 0 : index
    %c0_6 = arith.constant 0 : index
    %7 = vector.load %arg5[%c0_5, %c0_6] : memref<16x128xbf16, #tpu.memory_space<vmem>>, vector<16x128xbf16>
    tpu.vector_store %arg5[%c0_5, %c0_6], %6 {strides = array<i32>} : memref<16x128xbf16, #tpu.memory_space<vmem>>, vector<16x128xbf16>,
    return
  }
  func.func @transform_0(%arg0: i32, %arg1: i32) -> (i32, i32) {
    %c0_i32 = arith.constant 0 : i32
    %c0_i32_0 = arith.constant 0 : i32
    return %arg0, %c0_i32 : i32, i32
  }
  func.func @transform_1(%arg0: i32, %arg1: i32) -> (i32, i32) {
    %c0_i32 = arith.constant 0 : i32
    %c0_i32_0 = arith.constant 0 : i32
    return %c0_i32, %arg1 : i32, i32
  }
  func.func @transform_2(%arg0: i32, %arg1: i32) -> (i32, i32) {
    %c0_i32 = arith.constant 0 : i32
    %c0_i32_0 = arith.constant 0 : i32
    return %c0_i32, %arg1 : i32, i32
  }
  func.func @transform_3(%arg0: i32, %arg1: i32) -> (i32, i32) {
    %c0_i32 = arith.constant 0 : i32
    return %arg0, %arg1 : i32, i32
  }
}

module attributes {stable_mosaic.version = 11 : i64} {
  func.func @_add_ln_kernel(%arg0: i32, %arg1: memref<16x128xbf16, #tpu.memory_space<vmem>>, %arg2: memref<16x128xbf16, #tpu.memory_space<vmem>>, %arg3: memref<1x128xf32, #tpu.memory_space<vmem>>, %arg4: memref<1x128xf32, #tpu.memory_space<vmem>>, %arg5: memref<6x128xf32, #tpu.memory_space<vmem>>, %arg6: memref<4x128xf32, #tpu.memory_space<vmem>>, %arg7: memref<16x128xbf16, #tpu.memory_space<vmem>>, %arg8: memref<16x128xbf16, #tpu.memory_space<vmem>>) attributes {dimension_semantics = [#tpu.dimension_semantics<parallel>], iteration_bounds = array<i64: 1>, scalar_prefetch = 0 : i64, scratch_operands = 0 : i64, tpu.core_type = #tpu.core_type<tc>, window_params = [{transform_indices = @transform_0, window_bounds = array<i64: 16, 128>}, {transform_indices = @transform_1, window_bounds = array<i64: 16, 128>}, {pipeline_mode = #tpu.pipeline_mode<synchronous>, transform_indices = @transform_2, window_bounds = array<i64: 1, 128>}, {pipeline_mode = #tpu.pipeline_mode<synchronous>, transform_indices = @transform_3, window_bounds = array<i64: 1, 128>}, {pipeline_mode = #tpu.pipeline_mode<synchronous>, transform_indices = @transform_4, window_bounds = array<i64: 6, 128>}, {pipeline_mode = #tpu.pipeline_mode<synchronous>, transform_indices = @transform_5, window_bounds = array<i64: 4, 128>}, {transform_indices = @transform_6, window_bounds = array<i64: 16, 128>}, {transform_indices = @transform_7, window_bounds = array<i64: 16, 128>}]} {
    %c0 = arith.constant 0 : index
    %c0_0 = arith.constant 0 : index
    %0 = vector.load %arg1[%c0, %c0_0] : memref<16x128xbf16, #tpu.memory_space<vmem>>, vector<16x128xbf16>
    %1 = arith.extf %0 : vector<16x128xbf16> to vector<16x128xf32>
    %c0_1 = arith.constant 0 : index
    %c0_2 = arith.constant 0 : index
    %2 = vector.load %arg2[%c0_1, %c0_2] : memref<16x128xbf16, #tpu.memory_space<vmem>>, vector<16x128xbf16>
    %3 = arith.extf %2 : vector<16x128xbf16> to vector<16x128xf32>
    %4 = arith.addf %1, %3 : vector<16x128xf32>
    %cst = arith.constant dense<0.000000e+00> : vector<16xf32>
    %5 = vector.multi_reduction <add>, %4, %cst [1] : vector<16x128xf32> to vector<16xf32>
    %6 = vector.shape_cast %5 : vector<16xf32> to vector<16x1xf32>
    %cst_3 = arith.constant 1.280000e+02 : f32
    %7 = vector.broadcast %cst_3 : f32 to vector<16x1xf32>
    %8 = arith.divf %6, %7 : vector<16x1xf32>
    %9 = vector.broadcast %8 : vector<16x1xf32> to vector<16x128xf32>
    %10 = arith.subf %4, %9 : vector<16x128xf32>
    %11 = arith.mulf %10, %10 : vector<16x128xf32>
    %cst_4 = arith.constant dense<0.000000e+00> : vector<16xf32>
    %12 = vector.multi_reduction <add>, %11, %cst_4 [1] : vector<16x128xf32> to vector<16xf32>
    %13 = vector.shape_cast %12 : vector<16xf32> to vector<16x1xf32>
    %cst_5 = arith.constant 1.280000e+02 : f32
    %14 = vector.broadcast %cst_5 : f32 to vector<16x1xf32>
    %15 = arith.divf %13, %14 : vector<16x1xf32>
    %cst_6 = arith.constant 9.99999974E-6 : f32
    %16 = vector.broadcast %cst_6 : f32 to vector<16x1xf32>
    %17 = arith.addf %15, %16 : vector<16x1xf32>
    %18 = math.rsqrt %17 : vector<16x1xf32>
    %19 = vector.broadcast %18 : vector<16x1xf32> to vector<16x128xf32>
    %20 = arith.mulf %10, %19 : vector<16x128xf32>
    %c0_7 = arith.constant 0 : index
    %c0_8 = arith.constant 0 : index
    %21 = vector.load %arg3[%c0_7, %c0_8] : memref<1x128xf32, #tpu.memory_space<vmem>>, vector<1x128xf32>
    %22 = vector.broadcast %21 : vector<1x128xf32> to vector<16x128xf32>
    %23 = arith.mulf %20, %22 : vector<16x128xf32>
    %c0_9 = arith.constant 0 : index
    %c0_10 = arith.constant 0 : index
    %24 = vector.load %arg4[%c0_9, %c0_10] : memref<1x128xf32, #tpu.memory_space<vmem>>, vector<1x128xf32>
    %25 = vector.broadcast %24 : vector<1x128xf32> to vector<16x128xf32>
    %26 = arith.addf %23, %25 : vector<16x128xf32>
    %27 = arith.truncf %26 : vector<16x128xf32> to vector<16x128xbf16>
    %c0_11 = arith.constant 0 : index
    %c0_12 = arith.constant 0 : index
    %28 = vector.load %arg7[%c0_11, %c0_12] : memref<16x128xbf16, #tpu.memory_space<vmem>>, vector<16x128xbf16>
    tpu.vector_store %arg7[%c0_11, %c0_12], %27 {strides = array<i32>} : memref<16x128xbf16, #tpu.memory_space<vmem>>, vector<16x128xbf16>,
    %c0_13 = arith.constant 0 : index
    %c0_14 = arith.constant 0 : index
    %29 = vector.load %arg5[%c0_13, %c0_14] : memref<6x128xf32, #tpu.memory_space<vmem>>, vector<6x128xf32>
    %c0_15 = arith.constant 0 : index
    %c0_16 = arith.constant 0 : index
    %30 = vector.load %arg6[%c0_15, %c0_16] : memref<4x128xf32, #tpu.memory_space<vmem>>, vector<4x128xf32>
    %31 = vector.extract_strided_slice %29 {offsets = [5, 0], sizes = [1, 128], strides = [1, 1]} : vector<6x128xf32> to vector<1x128xf32>
    %32 = vector.broadcast %31 : vector<1x128xf32> to vector<16x128xf32>
    %33 = arith.mulf %32, %26 : vector<16x128xf32>
    %34 = vector.extract_strided_slice %29 {offsets = [4, 0], sizes = [1, 128], strides = [1, 1]} : vector<6x128xf32> to vector<1x128xf32>
    %35 = vector.broadcast %34 : vector<1x128xf32> to vector<16x128xf32>
    %36 = arith.addf %33, %35 : vector<16x128xf32>
    %37 = arith.mulf %36, %26 : vector<16x128xf32>
    %38 = vector.extract_strided_slice %29 {offsets = [3, 0], sizes = [1, 128], strides = [1, 1]} : vector<6x128xf32> to vector<1x128xf32>
    %39 = vector.broadcast %38 : vector<1x128xf32> to vector<16x128xf32>
    %40 = arith.addf %37, %39 : vector<16x128xf32>
    %41 = arith.mulf %40, %26 : vector<16x128xf32>
    %42 = vector.extract_strided_slice %29 {offsets = [2, 0], sizes = [1, 128], strides = [1, 1]} : vector<6x128xf32> to vector<1x128xf32>
    %43 = vector.broadcast %42 : vector<1x128xf32> to vector<16x128xf32>
    %44 = arith.addf %41, %43 : vector<16x128xf32>
    %45 = arith.mulf %44, %26 : vector<16x128xf32>
    %46 = vector.extract_strided_slice %29 {offsets = [1, 0], sizes = [1, 128], strides = [1, 1]} : vector<6x128xf32> to vector<1x128xf32>
    %47 = vector.broadcast %46 : vector<1x128xf32> to vector<16x128xf32>
    %48 = arith.addf %45, %47 : vector<16x128xf32>
    %49 = arith.mulf %48, %26 : vector<16x128xf32>
    %50 = vector.extract_strided_slice %29 {offsets = [0, 0], sizes = [1, 128], strides = [1, 1]} : vector<6x128xf32> to vector<1x128xf32>
    %51 = vector.broadcast %50 : vector<1x128xf32> to vector<16x128xf32>
    %52 = arith.addf %49, %51 : vector<16x128xf32>
    %53 = vector.extract_strided_slice %30 {offsets = [3, 0], sizes = [1, 128], strides = [1, 1]} : vector<4x128xf32> to vector<1x128xf32>
    %54 = vector.broadcast %53 : vector<1x128xf32> to vector<16x128xf32>
    %55 = arith.mulf %54, %26 : vector<16x128xf32>
    %56 = vector.extract_strided_slice %30 {offsets = [2, 0], sizes = [1, 128], strides = [1, 1]} : vector<4x128xf32> to vector<1x128xf32>
    %57 = vector.broadcast %56 : vector<1x128xf32> to vector<16x128xf32>
    %58 = arith.addf %55, %57 : vector<16x128xf32>
    %59 = arith.mulf %58, %26 : vector<16x128xf32>
    %60 = vector.extract_strided_slice %30 {offsets = [1, 0], sizes = [1, 128], strides = [1, 1]} : vector<4x128xf32> to vector<1x128xf32>
    %61 = vector.broadcast %60 : vector<1x128xf32> to vector<16x128xf32>
    %62 = arith.addf %59, %61 : vector<16x128xf32>
    %63 = arith.mulf %62, %26 : vector<16x128xf32>
    %64 = vector.extract_strided_slice %30 {offsets = [0, 0], sizes = [1, 128], strides = [1, 1]} : vector<4x128xf32> to vector<1x128xf32>
    %65 = vector.broadcast %64 : vector<1x128xf32> to vector<16x128xf32>
    %66 = arith.addf %63, %65 : vector<16x128xf32>
    %67 = arith.mulf %66, %26 : vector<16x128xf32>
    %68 = math.absf %67 : vector<16x128xf32>
    %cst_17 = arith.constant 1.000000e+00 : f32
    %69 = vector.broadcast %cst_17 : f32 to vector<16x128xf32>
    %70 = arith.addf %69, %68 : vector<16x128xf32>
    %71 = arith.divf %52, %70 : vector<16x128xf32>
    %72 = arith.truncf %71 : vector<16x128xf32> to vector<16x128xbf16>
    %c0_18 = arith.constant 0 : index
    %c0_19 = arith.constant 0 : index
    %73 = vector.load %arg8[%c0_18, %c0_19] : memref<16x128xbf16, #tpu.memory_space<vmem>>, vector<16x128xbf16>
    tpu.vector_store %arg8[%c0_18, %c0_19], %72 {strides = array<i32>} : memref<16x128xbf16, #tpu.memory_space<vmem>>, vector<16x128xbf16>,
    return
  }
  func.func @transform_0(%arg0: i32) -> (i32, i32) {
    %c0_i32 = arith.constant 0 : i32
    %c0_i32_0 = arith.constant 0 : i32
    return %arg0, %c0_i32 : i32, i32
  }
  func.func @transform_1(%arg0: i32) -> (i32, i32) {
    %c0_i32 = arith.constant 0 : i32
    %c0_i32_0 = arith.constant 0 : i32
    return %arg0, %c0_i32 : i32, i32
  }
  func.func @transform_2(%arg0: i32) -> (i32, i32) {
    %c0_i32 = arith.constant 0 : i32
    %c0_i32_0 = arith.constant 0 : i32
    %c0_i32_1 = arith.constant 0 : i32
    return %c0_i32, %c0_i32_0 : i32, i32
  }
  func.func @transform_3(%arg0: i32) -> (i32, i32) {
    %c0_i32 = arith.constant 0 : i32
    %c0_i32_0 = arith.constant 0 : i32
    %c0_i32_1 = arith.constant 0 : i32
    return %c0_i32, %c0_i32_0 : i32, i32
  }
  func.func @transform_4(%arg0: i32) -> (i32, i32) {
    %c0_i32 = arith.constant 0 : i32
    %c0_i32_0 = arith.constant 0 : i32
    %c0_i32_1 = arith.constant 0 : i32
    return %c0_i32, %c0_i32_0 : i32, i32
  }
  func.func @transform_5(%arg0: i32) -> (i32, i32) {
    %c0_i32 = arith.constant 0 : i32
    %c0_i32_0 = arith.constant 0 : i32
    %c0_i32_1 = arith.constant 0 : i32
    return %c0_i32, %c0_i32_0 : i32, i32
  }
  func.func @transform_6(%arg0: i32) -> (i32, i32) {
    %c0_i32 = arith.constant 0 : i32
    %c0_i32_0 = arith.constant 0 : i32
    return %arg0, %c0_i32 : i32, i32
  }
  func.func @transform_7(%arg0: i32) -> (i32, i32) {
    %c0_i32 = arith.constant 0 : i32
    %c0_i32_0 = arith.constant 0 : i32
    return %arg0, %c0_i32 : i32, i32
  }
}

module attributes {stable_mosaic.version = 11 : i64} {
  func.func @_linear_kernel(%arg0: i32, %arg1: i32, %arg2: memref<16x128xbf16, #tpu.memory_space<vmem>>, %arg3: memref<128x512xbf16, #tpu.memory_space<vmem>>, %arg4: memref<1x512xf32, #tpu.memory_space<vmem>>, %arg5: memref<6x512xf32, #tpu.memory_space<vmem>>, %arg6: memref<4x512xf32, #tpu.memory_space<vmem>>, %arg7: memref<16x512xbf16, #tpu.memory_space<vmem>>) attributes {dimension_semantics = [#tpu.dimension_semantics<parallel>, #tpu.dimension_semantics<parallel>], iteration_bounds = array<i64: 1, 1>, scalar_prefetch = 0 : i64, scratch_operands = 0 : i64, tpu.core_type = #tpu.core_type<tc>, window_params = [{transform_indices = @transform_0, window_bounds = array<i64: 16, 128>}, {transform_indices = @transform_1, window_bounds = array<i64: 128, 512>}, {transform_indices = @transform_2, window_bounds = array<i64: 1, 512>}, {transform_indices = @transform_3, window_bounds = array<i64: 6, 512>}, {transform_indices = @transform_4, window_bounds = array<i64: 4, 512>}, {transform_indices = @transform_5, window_bounds = array<i64: 16, 512>}]} {
    %c0 = arith.constant 0 : index
    %c0_0 = arith.constant 0 : index
    %0 = vector.load %arg2[%c0, %c0_0] : memref<16x128xbf16, #tpu.memory_space<vmem>>, vector<16x128xbf16>
    %c0_1 = arith.constant 0 : index
    %c0_2 = arith.constant 0 : index
    %1 = vector.load %arg3[%c0_1, %c0_2] : memref<128x512xbf16, #tpu.memory_space<vmem>>, vector<128x512xbf16>
    %cst = arith.constant dense<0.000000e+00> : vector<16x512xf32>
    %2 = tpu.matmul %0, %1, %cst {dimension_numbers = #tpu.dot_dimension_numbers<[1], [0], [0], [1], [0, 0, 1, 1], [], []>} : vector<16x128xbf16>, vector<128x512xbf16>, vector<16x512xf32> -> vector<16x512xf32>
    %c0_3 = arith.constant 0 : index
    %c0_4 = arith.constant 0 : index
    %3 = vector.load %arg4[%c0_3, %c0_4] : memref<1x512xf32, #tpu.memory_space<vmem>>, vector<1x512xf32>
    %4 = vector.broadcast %3 : vector<1x512xf32> to vector<16x512xf32>
    %5 = arith.addf %2, %4 : vector<16x512xf32>
    %c0_5 = arith.constant 0 : index
    %c0_6 = arith.constant 0 : index
    %6 = vector.load %arg5[%c0_5, %c0_6] : memref<6x512xf32, #tpu.memory_space<vmem>>, vector<6x512xf32>
    %c0_7 = arith.constant 0 : index
    %c0_8 = arith.constant 0 : index
    %7 = vector.load %arg6[%c0_7, %c0_8] : memref<4x512xf32, #tpu.memory_space<vmem>>, vector<4x512xf32>
    %8 = vector.extract_strided_slice %6 {offsets = [5, 0], sizes = [1, 512], strides = [1, 1]} : vector<6x512xf32> to vector<1x512xf32>
    %9 = vector.broadcast %8 : vector<1x512xf32> to vector<16x512xf32>
    %10 = arith.mulf %9, %5 : vector<16x512xf32>
    %11 = vector.extract_strided_slice %6 {offsets = [4, 0], sizes = [1, 512], strides = [1, 1]} : vector<6x512xf32> to vector<1x512xf32>
    %12 = vector.broadcast %11 : vector<1x512xf32> to vector<16x512xf32>
    %13 = arith.addf %10, %12 : vector<16x512xf32>
    %14 = arith.mulf %13, %5 : vector<16x512xf32>
    %15 = vector.extract_strided_slice %6 {offsets = [3, 0], sizes = [1, 512], strides = [1, 1]} : vector<6x512xf32> to vector<1x512xf32>
    %16 = vector.broadcast %15 : vector<1x512xf32> to vector<16x512xf32>
    %17 = arith.addf %14, %16 : vector<16x512xf32>
    %18 = arith.mulf %17, %5 : vector<16x512xf32>
    %19 = vector.extract_strided_slice %6 {offsets = [2, 0], sizes = [1, 512], strides = [1, 1]} : vector<6x512xf32> to vector<1x512xf32>
    %20 = vector.broadcast %19 : vector<1x512xf32> to vector<16x512xf32>
    %21 = arith.addf %18, %20 : vector<16x512xf32>
    %22 = arith.mulf %21, %5 : vector<16x512xf32>
    %23 = vector.extract_strided_slice %6 {offsets = [1, 0], sizes = [1, 512], strides = [1, 1]} : vector<6x512xf32> to vector<1x512xf32>
    %24 = vector.broadcast %23 : vector<1x512xf32> to vector<16x512xf32>
    %25 = arith.addf %22, %24 : vector<16x512xf32>
    %26 = arith.mulf %25, %5 : vector<16x512xf32>
    %27 = vector.extract_strided_slice %6 {offsets = [0, 0], sizes = [1, 512], strides = [1, 1]} : vector<6x512xf32> to vector<1x512xf32>
    %28 = vector.broadcast %27 : vector<1x512xf32> to vector<16x512xf32>
    %29 = arith.addf %26, %28 : vector<16x512xf32>
    %30 = vector.extract_strided_slice %7 {offsets = [3, 0], sizes = [1, 512], strides = [1, 1]} : vector<4x512xf32> to vector<1x512xf32>
    %31 = vector.broadcast %30 : vector<1x512xf32> to vector<16x512xf32>
    %32 = arith.mulf %31, %5 : vector<16x512xf32>
    %33 = vector.extract_strided_slice %7 {offsets = [2, 0], sizes = [1, 512], strides = [1, 1]} : vector<4x512xf32> to vector<1x512xf32>
    %34 = vector.broadcast %33 : vector<1x512xf32> to vector<16x512xf32>
    %35 = arith.addf %32, %34 : vector<16x512xf32>
    %36 = arith.mulf %35, %5 : vector<16x512xf32>
    %37 = vector.extract_strided_slice %7 {offsets = [1, 0], sizes = [1, 512], strides = [1, 1]} : vector<4x512xf32> to vector<1x512xf32>
    %38 = vector.broadcast %37 : vector<1x512xf32> to vector<16x512xf32>
    %39 = arith.addf %36, %38 : vector<16x512xf32>
    %40 = arith.mulf %39, %5 : vector<16x512xf32>
    %41 = vector.extract_strided_slice %7 {offsets = [0, 0], sizes = [1, 512], strides = [1, 1]} : vector<4x512xf32> to vector<1x512xf32>
    %42 = vector.broadcast %41 : vector<1x512xf32> to vector<16x512xf32>
    %43 = arith.addf %40, %42 : vector<16x512xf32>
    %44 = arith.mulf %43, %5 : vector<16x512xf32>
    %45 = math.absf %44 : vector<16x512xf32>
    %cst_9 = arith.constant 1.000000e+00 : f32
    %46 = vector.broadcast %cst_9 : f32 to vector<16x512xf32>
    %47 = arith.addf %46, %45 : vector<16x512xf32>
    %48 = arith.divf %29, %47 : vector<16x512xf32>
    %49 = arith.truncf %48 : vector<16x512xf32> to vector<16x512xbf16>
    %c0_10 = arith.constant 0 : index
    %c0_11 = arith.constant 0 : index
    %50 = vector.load %arg7[%c0_10, %c0_11] : memref<16x512xbf16, #tpu.memory_space<vmem>>, vector<16x512xbf16>
    tpu.vector_store %arg7[%c0_10, %c0_11], %49 {strides = array<i32>} : memref<16x512xbf16, #tpu.memory_space<vmem>>, vector<16x512xbf16>,
    return
  }
  func.func @transform_0(%arg0: i32, %arg1: i32) -> (i32, i32) {
    %c0_i32 = arith.constant 0 : i32
    %c0_i32_0 = arith.constant 0 : i32
    return %arg0, %c0_i32 : i32, i32
  }
  func.func @transform_1(%arg0: i32, %arg1: i32) -> (i32, i32) {
    %c0_i32 = arith.constant 0 : i32
    %c0_i32_0 = arith.constant 0 : i32
    return %c0_i32, %arg1 : i32, i32
  }
  func.func @transform_2(%arg0: i32, %arg1: i32) -> (i32, i32) {
    %c0_i32 = arith.constant 0 : i32
    %c0_i32_0 = arith.constant 0 : i32
    return %c0_i32, %arg1 : i32, i32
  }
  func.func @transform_3(%arg0: i32, %arg1: i32) -> (i32, i32) {
    %c0_i32 = arith.constant 0 : i32
    %c0_i32_0 = arith.constant 0 : i32
    return %c0_i32, %arg1 : i32, i32
  }
  func.func @transform_4(%arg0: i32, %arg1: i32) -> (i32, i32) {
    %c0_i32 = arith.constant 0 : i32
    %c0_i32_0 = arith.constant 0 : i32
    return %c0_i32, %arg1 : i32, i32
  }
  func.func @transform_5(%arg0: i32, %arg1: i32) -> (i32, i32) {
    %c0_i32 = arith.constant 0 : i32
    return %arg0, %arg1 : i32, i32
  }
}

module attributes {stable_mosaic.version = 11 : i64} {
  func.func @_linear_kernel(%arg0: i32, %arg1: i32, %arg2: memref<16x128xbf16, #tpu.memory_space<vmem>>, %arg3: memref<128x3xbf16, #tpu.memory_space<vmem>>, %arg4: memref<1x3xf32, #tpu.memory_space<vmem>>, %arg5: memref<16x3xf32, #tpu.memory_space<vmem>>) attributes {dimension_semantics = [#tpu.dimension_semantics<parallel>, #tpu.dimension_semantics<parallel>], iteration_bounds = array<i64: 1, 1>, scalar_prefetch = 0 : i64, scratch_operands = 0 : i64, tpu.core_type = #tpu.core_type<tc>, window_params = [{transform_indices = @transform_0, window_bounds = array<i64: 16, 128>}, {transform_indices = @transform_1, window_bounds = array<i64: 128, 3>}, {transform_indices = @transform_2, window_bounds = array<i64: 1, 3>}, {transform_indices = @transform_3, window_bounds = array<i64: 16, 3>}]} {
    %c0 = arith.constant 0 : index
    %c0_0 = arith.constant 0 : index
    %0 = vector.load %arg2[%c0, %c0_0] : memref<16x128xbf16, #tpu.memory_space<vmem>>, vector<16x128xbf16>
    %c0_1 = arith.constant 0 : index
    %c0_2 = arith.constant 0 : index
    %1 = vector.load %arg3[%c0_1, %c0_2] : memref<128x3xbf16, #tpu.memory_space<vmem>>, vector<128x3xbf16>
    %cst = arith.constant dense<0.000000e+00> : vector<16x3xf32>
    %2 = tpu.matmul %0, %1, %cst {dimension_numbers = #tpu.dot_dimension_numbers<[1], [0], [0], [1], [0, 0, 1, 1], [], []>} : vector<16x128xbf16>, vector<128x3xbf16>, vector<16x3xf32> -> vector<16x3xf32>
    %c0_3 = arith.constant 0 : index
    %c0_4 = arith.constant 0 : index
    %3 = vector.load %arg4[%c0_3, %c0_4] : memref<1x3xf32, #tpu.memory_space<vmem>>, vector<1x3xf32>
    %4 = vector.broadcast %3 : vector<1x3xf32> to vector<16x3xf32>
    %5 = arith.addf %2, %4 : vector<16x3xf32>
    %c0_5 = arith.constant 0 : index
    %c0_6 = arith.constant 0 : index
    %6 = vector.load %arg5[%c0_5, %c0_6] : memref<16x3xf32, #tpu.memory_space<vmem>>, vector<16x3xf32>
    tpu.vector_store %arg5[%c0_5, %c0_6], %5 {strides = array<i32>} : memref<16x3xf32, #tpu.memory_space<vmem>>, vector<16x3xf32>,
    return
  }
  func.func @transform_0(%arg0: i32, %arg1: i32) -> (i32, i32) {
    %c0_i32 = arith.constant 0 : i32
    %c0_i32_0 = arith.constant 0 : i32
    return %arg0, %c0_i32 : i32, i32
  }
  func.func @transform_1(%arg0: i32, %arg1: i32) -> (i32, i32) {
    %c0_i32 = arith.constant 0 : i32
    %c0_i32_0 = arith.constant 0 : i32
    return %c0_i32, %arg1 : i32, i32
  }
  func.func @transform_2(%arg0: i32, %arg1: i32) -> (i32, i32) {
    %c0_i32 = arith.constant 0 : i32
    %c0_i32_0 = arith.constant 0 : i32
    return %c0_i32, %arg1 : i32, i32
  }
  func.func @transform_3(%arg0: i32, %arg1: i32) -> (i32, i32) {
    %c0_i32 = arith.constant 0 : i32
    return %arg0, %arg1 : i32, i32
  }
}

</mosaic_0001>

<bundles_post_ra>
// kernel: kan_transformer_forward.16
= control target key start
LH: loop header
LB: loop body
LE: loop exit
PB: predicated region body
PF: predicated region fallthrough
CT: control target
= control target key end

     0   :  { %s598_s15 = smov 0   ;;  %s600_s16 = smov 0   ;;  %s640_s0 = inlined_call_operand.vmem [shape: f32[2,8,16], index: 0, kind: input, shape index: {}]   ;;  %s641_s1 = inlined_call_operand.vmem [shape: bf16[16,128], index: 1, kind: input, shape index: {}]   ;;  %s642_s2 = inlined_call_operand.vmem [shape: f32[1,128], index: 2, kind: input, shape index: {}]   ;;  %s643_s3 = inlined_call_operand.vmem [shape: f32[8,128], index: 3, kind: input, shape index: {}]   ;;  %s644_s4 = inlined_call_operand.vmem [shape: bf16[2,8,128], index: 4, kind: output, shape index: {}]  }
   0x1   :  { %s602_s17 = smov 0  }
   0x2 LB: > { %s33_s18 = sadd.s32 1, %s565_s16  ;;  %p504_p0 = scmp.ge.s32.totalorder %s569_s17, 1  ;;  %s569_s17 = sphi %s602_s17, %s14_s17   ;;  %s565_s16 = sphi %s600_s16, %s646_s16   ;;  %s561_s15 = sphi %s598_s15, %s645_s15  }
   0x3   : > { %p35_p1 = scmp.ge.s32.totalorder %s33_s18, 2  ;;  %p220_p2 = scmp.lt.s32.totalorder %s569_s17, 3 }
   0x5   : > { %s648_s18 = smov (%p35_p1, %s33_s18), 0  ;;  %p221_p3 = pnand %p504_p0, %p220_p2 }
   0x6   : > { %v546_v0 = vld [vmem:[%s641_s1] sm:$0xff] (!%p221_p3)   ;;  %v571_v1 = vmov (!%p221_p3), 0.0   ;;  %p267_p4 = scmp.lt.s32.totalorder (!%p221_p3), %s561_s15, 1  ;;  %vm572_vm0 = vmmov (!%p221_p3), 0   ;;  %vm316_vm1 = vcmask (!%p221_p3), 130048  }
   0x7   : > { %224 = sbr.rel (%p221_p3) target bundleno = 239 (0xef), region = 36  ;;  %514 = vmatprep.subr.bf16.mxu0 (!%p221_p3), %v571_v1  ;;  %516 = vmatprep.mubr.msk.bf16.mxu0 (!%p221_p3), %vm572_vm0, %v571_v1  ;;  %v507_v4 = vld [vmem:[%s642_s2] ss:$0 sm:$0xff] (!%p221_p3) }
   0x8   : > { %515 = vmatpush3.bf16.msra.mxu0 (!%p221_p3), %v546_v0  ;;  %v360_v6 = vld [vmem:[%s643_s3] sm:$0xff] (!%p221_p3) }
   0xe   : > { %s650_s15 = smov (!%p267_p4, %s561_s15), 1 }
   0xf   : > { %s505_s21 = sshll.u32 %s650_s15, 3  ;;  %s506_s29 = sshll.u32 %s650_s15, 2 }
  0x10   : > { %s273_s24 = scalar_lea.vmem %s640_s0, %s505_s21  ;;  %s297_s6 = scalar_lea.vmem %s644_s4, %s506_s29 }
  0x11   : > { %v299_v2 = vld [vmem:[%s273_s24] sm:$0xff] }
  0x12   : > { %v300_v3 = vpack.c.bf16 %v299_v2, %v299_v2 }
  0x14   : > { %517 = vmatmul.mubr.msk.bf16.vlgmr.msra.gmra.mrb[0].mxu0 %vm316_vm1, %v300_v3 }
  0xe7   : > { %v354_v5 = vpop.f32.mrb[0].mxu0 }
  0xe8   : > { %v355_v7 = vadd.f32 %v507_v4, %v354_v5  ;;  %v518_v8 = vpop.f32.mrb[1].mxu0 }
  0xe9   : > { %v357_v9 = vpop.f32.mrb[2].mxu0 }
  0xea   : > { %v361_v10 = vadd.f32 %v360_v6, %v355_v7  ;;  %v519_v11 = vpop.f32.mrb[3].mxu0 }
  0xec   : > { %v362_v12 = vpack.c.bf16 %v361_v10, %v361_v10 }
  0xee   : > { %363 = vst [vmem:[%s297_s6] sm:$0xf] %v362_v12 }
  0xef PF: > { %s14_s17 = sadd.s32 1, %s569_s17   ;;  %s645_s15 = smov %s565_s16 }
  0xf0   : > { %p11_p5 = scmp.ge.s32.totalorder %s14_s17, 4   ;;  %s646_s16 = smov %s648_s18 }
  0xf2   :  { %13 = sbr.rel (!%p11_p5) target bundleno = 2 (0x2), region = 75 }

// kernel: kan_transformer_forward.17
= control target key start
LH: loop header
LB: loop body
LE: loop exit
PB: predicated region body
PF: predicated region fallthrough
CT: control target
= control target key end

     0   :  { %v410_v0 = vmov 0.0   ;;  %vm411_vm0 = vmmov 0   ;;  %v412_v3 = vmov 0   ;;  %v51_v27 = vlaneseq  ;;  %s523_s1 = inlined_call_operand.vmem [shape: bf16[128,384], index: 1, kind: input, shape index: {}]   ;;  %s524_s0 = inlined_call_operand.vmem [shape: bf16[16,128], index: 0, kind: input, shape index: {}]   ;;  %s525_s2 = inlined_call_operand.vmem [shape: f32[1,384], index: 2, kind: input, shape index: {}]   ;;  %s526_s3 = inlined_call_operand.vmem [shape: bf16[16,384], index: 3, kind: output, shape index: {}]  }
   0x1   :  { %354 = vmatprep.subr.bf16.mxu1 %v410_v0  ;;  %v377_v1 = vld [vmem:[%s523_s1 + $0x4] ss:$12 sps:$4 sm:$0xff]   ;;  %370 = vmatprep.mubr.msk.bf16.mxu1 %vm411_vm0, %v410_v0  ;;  %v379_v2 = vld [vmem:[%s523_s1 + $0x8] ss:$12 sps:$4 sm:$0xff]   ;;  %v380_v4 = vld [vmem:[%s523_s1] ss:$12 sps:$4 sm:$0xff]  }
   0x2   :  { %232 = vmatprep.mubr.bf16.mxu0 %v412_v3  ;;  %200 = vmatprep.subr.bf16.mxu0 %v377_v1  ;;  %v381_v5 = vld [vmem:[%s523_s1 + $0x1c] ss:$12 sps:$4 sm:$0xff]   ;;  %v383_v6 = vld [vmem:[%s523_s1 + $0x20] ss:$12 sps:$4 sm:$0xff]   ;;  %v384_v7 = vld [vmem:[%s523_s1 + $0x18] ss:$12 sps:$4 sm:$0xff]  }
   0x3   :  { %355 = vmatpush3.bf16.msra.mxu1 %v379_v2  ;;  %201 = vmatpush1.bf16.msra.mxu0 %v380_v4  ;;  %v385_v8 = vld [vmem:[%s523_s1 + $0x34] ss:$12 sps:$4 sm:$0xff]   ;;  %v387_v9 = vld [vmem:[%s523_s1 + $0x38] ss:$12 sps:$4 sm:$0xff]   ;;  %v388_v10 = vld [vmem:[%s523_s1 + $0x30] ss:$12 sps:$4 sm:$0xff]  }
   0x4   :  { %356 = vmatprep.subr.bf16.mxu1 %v410_v0  ;;  %202 = vmatprep.subr.bf16.mxu0 %v381_v5  ;;  %v389_v11 = vld [vmem:[%s523_s1 + $0x4c] ss:$12 sps:$4 sm:$0xff]   ;;  %v391_v12 = vld [vmem:[%s523_s1 + $0x50] ss:$12 sps:$4 sm:$0xff]   ;;  %v392_v13 = vld [vmem:[%s523_s1 + $0x48] ss:$12 sps:$4 sm:$0xff]  }
   0x5   :  { %v393_v14 = vld [vmem:[%s523_s1 + $0x64] ss:$12 sps:$4 sm:$0xff]   ;;  %v395_v15 = vld [vmem:[%s523_s1 + $0x68] ss:$12 sps:$4 sm:$0xff]   ;;  %v396_v16 = vld [vmem:[%s523_s1 + $0x60] ss:$12 sps:$4 sm:$0xff]  }
   0x6   :  { %v397_v17 = vld [vmem:[%s523_s1 + $0x7c] ss:$12 sps:$4 sm:$0xff]   ;;  %v399_v18 = vld [vmem:[%s523_s1 + $0x80] ss:$12 sps:$4 sm:$0xff]   ;;  %v400_v19 = vld [vmem:[%s523_s1 + $0x78] ss:$12 sps:$4 sm:$0xff]  }
   0x7   :  { %357 = vmatpush3.bf16.msra.mxu1 %v383_v6  ;;  %203 = vmatpush1.bf16.msra.mxu0 %v384_v7  ;;  %v401_v20 = vld [vmem:[%s523_s1 + $0x94] ss:$12 sps:$4 sm:$0xff]   ;;  %v403_v21 = vld [vmem:[%s523_s1 + $0x98] ss:$12 sps:$4 sm:$0xff]   ;;  %v404_v22 = vld [vmem:[%s523_s1 + $0x90] ss:$12 sps:$4 sm:$0xff]  }
   0x8   :  { %358 = vmatprep.subr.bf16.mxu1 %v410_v0  ;;  %204 = vmatprep.subr.bf16.mxu0 %v385_v8  ;;  %v405_v23 = vld [vmem:[%s523_s1 + $0xac] ss:$12 sps:$4 sm:$0xff]   ;;  %v407_v24 = vld [vmem:[%s523_s1 + $0xb0] ss:$12 sps:$4 sm:$0xff]   ;;  %v408_v25 = vld [vmem:[%s523_s1 + $0xa8] ss:$12 sps:$4 sm:$0xff]  }
   0x9   :  { %v409_v26 = vld [vmem:[%s524_s0] sm:$0xff]   ;;  %v52_v28 = vshrl.u32 %v51_v27, 7 }
   0xa   :  { %v49_v30 = vld [vmem:[%s525_s2] sm:$0x7] }
   0xb   :  { %359 = vmatpush3.bf16.msra.mxu1 %v387_v9  ;;  %205 = vmatpush1.bf16.msra.mxu0 %v388_v10  ;;  %v61_v29 = vsub.s32 2, %v52_v28  ;;  %v53_v31 = vsub.s32 0, %v52_v28  ;;  %v57_v32 = vsub.s32 1, %v52_v28 }
   0xc   :  { %360 = vmatprep.subr.bf16.mxu1 %v410_v0  ;;  %206 = vmatprep.subr.bf16.mxu0 %v389_v11 }
   0xd   :  { %v62_v33 = vrot.slane %v49_v30, %v61_v29  ;;  %v54_v34 = vrot.slane %v49_v30, %v53_v31  ;;  %v58_v35 = vrot.slane %v49_v30, %v57_v32 }
   0xf   :  { %361 = vmatpush3.bf16.msra.mxu1 %v391_v12  ;;  %207 = vmatpush1.bf16.msra.mxu0 %v392_v13 }
  0x10   :  { %362 = vmatprep.subr.bf16.mxu1 %v410_v0  ;;  %208 = vmatprep.subr.bf16.mxu0 %v393_v14 }
  0x13   :  { %363 = vmatpush3.bf16.msra.mxu1 %v395_v15  ;;  %209 = vmatpush1.bf16.msra.mxu0 %v396_v16 }
  0x14   :  { %364 = vmatprep.subr.bf16.mxu1 %v410_v0  ;;  %210 = vmatprep.subr.bf16.mxu0 %v397_v17 }
  0x17   :  { %365 = vmatpush3.bf16.msra.mxu1 %v399_v18  ;;  %211 = vmatpush1.bf16.msra.mxu0 %v400_v19 }
  0x18   :  { %366 = vmatprep.subr.bf16.mxu1 %v410_v0  ;;  %212 = vmatprep.subr.bf16.mxu0 %v401_v20 }
  0x1b   :  { %367 = vmatpush3.bf16.msra.mxu1 %v403_v21  ;;  %213 = vmatpush1.bf16.msra.mxu0 %v404_v22 }
  0x1c   :  { %368 = vmatprep.subr.bf16.mxu1 %v410_v0  ;;  %214 = vmatprep.subr.bf16.mxu0 %v405_v23 }
  0x1f   :  { %369 = vmatpush3.bf16.msra.mxu1 %v407_v24  ;;  %215 = vmatpush1.bf16.msra.mxu0 %v408_v25 }
  0x22   :  { %371 = vmatmul.mubr.bf16.vlgmr.msra.gmra.mrb[0].mxu1 %v409_v26  ;;  %233 = vmatmul.mubr.bf16.vlgmr.msra.gmra.mrb[0].mxu0 %v409_v26 }
  0xf5   :  { %v277_v36 = vpop.f32.mrb[0].mxu1  ;;  %v234_v38 = vpop.f32.mrb[0].mxu0 }
  0xf6   :  { %v278_v37 = vadd.f32 %v277_v36, %v62_v33  ;;  %v372_v39 = vpop.f32.mrb[1].mxu1  ;;  %v235_v40 = vadd.f32 %v234_v38, %v54_v34  ;;  %v236_v41 = vpop.f32.mrb[1].mxu0 }
  0xf7   :  { %v280_v42 = vpop.f32.mrb[2].mxu1  ;;  %v237_v44 = vadd.f32 %v236_v41, %v58_v35  ;;  %v238_v46 = vpop.f32.mrb[2].mxu0 }
  0xf8   :  { %v342_v43 = vpack.c.bf16 %v278_v37, %v278_v37  ;;  %v281_v45 = vadd.f32 %v280_v42, %v62_v33  ;;  %v373_v47 = vpop.f32.mrb[3].mxu1  ;;  %v239_v48 = vadd.f32 %v238_v46, %v54_v34  ;;  %v240_v49 = vpop.f32.mrb[3].mxu0 }
  0xf9   :  { %v341_v50 = vpack.c.bf16 %v237_v44, %v235_v40  ;;  %v241_v52 = vadd.f32 %v240_v49, %v58_v35 }
  0xfa   :  { %305 = vst [vmem:[%s526_s3 + $0x8] sm:$0xf] %v342_v43  ;;  %v344_v51 = vpack.c.bf16 %v281_v45, %v281_v45 }
  0xfb   :  { %304 = vst [vmem:[%s526_s3] sm:$0xff] %v341_v50  ;;  %v343_v53 = vpack.c.bf16 %v241_v52, %v239_v48 }
  0xfc   :  { %307 = vst [vmem:[%s526_s3 + $0x14] sm:$0xf] %v344_v51 }
  0xfd   :  { %306 = vst [vmem:[%s526_s3 + $0xc] sm:$0xff] %v343_v53 }

// kernel: kan_transformer_forward.19
= control target key start
LH: loop header
LB: loop body
LE: loop exit
PB: predicated region body
PF: predicated region fallthrough
CT: control target
= control target key end

     0   :  { %8 = vsyncpa [#allocation3], 0  ;;  %s246_s12 = smov [#allocation2]   ;;  %s311_s0 = inlined_call_operand.vmem [shape: bf16[16,128], index: 0, kind: input, shape index: {}]   ;;  %s312_s1 = inlined_call_operand.vmem [shape: bf16[128,128], index: 1, kind: input, shape index: {}]   ;;  %s313_s2 = inlined_call_operand.hbm [shape: f32[1,128], index: 2, kind: input, shape index: {}]   ;;  %s314_s3 = inlined_call_operand.vmem [shape: bf16[16,128], index: 3, kind: output, shape index: {}]  }
   0x1   :  { %s19_s13 = sshll.u32 %s246_s12, 4  ;;  %s222_s16 = scalar_lea.hbm %s313_s2, 16  ;;  %s20_s13 = int_to_ptr.vmem [resolvable:$true] %s19_s13 }
   0x2   :  { %p223_p0 = scmp.ne.s32.totalorder %s313_s2, %s222_s16  ;;  %p226_p1 = scmp.lt.u32.totalorder %s222_s16, %s313_s2 }
   0x4   :  { %p228_p2 = pnand %p226_p1, %p223_p0 }
   0x6   :  { %231 = shalt.err (!%p228_p2)
}
   0x7   :  { %s232_s21 = scalar_lea.vmem %s20_s13, 16  ;;  %s236_s22 = scalar_lea.vmem %s20_s13, 32 }
   0x8   :  { %p233_p3 = scmp.ne.s32.totalorder %s20_s13, %s232_s21  ;;  %p237_p4 = scmp.lt.s32.totalorder %s20_s13, %s20_s13 }
   0x9   :  { %p238_p5 = scmp.lt.s32.totalorder %s236_s22, %s232_s21 }
   0xb   :  { %p239_p6 = por %p238_p5, %p237_p4 }
   0xd   :  { %p240_p7 = pnand %p239_p6, %p233_p3 }
   0xf   :  { %243 = shalt.err (!%p240_p7)
}
  0x10   :  { %22 = dma.hbm_to_vmem [thread:$0]  %s313_s2, 16, %s20_s13, [#allocation3]  }
  0x11   :  { %244 = dma.done.wait [#allocation3], 16  }
  0x12   :  { %245 = vsyncadd [#allocation3], 4294967280  ;;  %v247_v0 = vmov 0.0   ;;  %vm248_vm0 = vmmov 0   ;;  %v213_v1 = vld [vmem:[%s312_s1] sm:$0xff]   ;;  %v214_v2 = vld [vmem:[%s312_s1 + $0x8] sm:$0xff]  }
  0x13   :  { %190 = vmatprep.subr.bf16.mxu0 %v247_v0  ;;  %206 = vmatprep.mubr.msk.bf16.mxu0 %vm248_vm0, %v247_v0  ;;  %v215_v3 = vld [vmem:[%s312_s1 + $0x10] sm:$0xff]   ;;  %v216_v4 = vld [vmem:[%s312_s1 + $0x18] sm:$0xff]   ;;  %v217_v5 = vld [vmem:[%s312_s1 + $0x20] sm:$0xff]  }
  0x14   :  { %191 = vmatpush3.bf16.msra.mxu0 %v213_v1  ;;  %v218_v6 = vld [vmem:[%s312_s1 + $0x28] sm:$0xff]   ;;  %v219_v7 = vld [vmem:[%s312_s1 + $0x30] sm:$0xff]   ;;  %v220_v8 = vld [vmem:[%s312_s1 + $0x38] sm:$0xff]  }
  0x15   :  { %192 = vmatprep.subr.bf16.mxu0 %v247_v0  ;;  %v221_v9 = vld [vmem:[%s311_s0] sm:$0xff]  }
  0x16   :  { %v162_v10 = vld [vmem:[#allocation2] ss:$0 sm:$0xff] }
  0x18   :  { %193 = vmatpush3.bf16.msra.mxu0 %v214_v2 }
  0x19   :  { %194 = vmatprep.subr.bf16.mxu0 %v247_v0 }
  0x1c   :  { %195 = vmatpush3.bf16.msra.mxu0 %v215_v3 }
  0x1d   :  { %196 = vmatprep.subr.bf16.mxu0 %v247_v0 }
  0x20   :  { %197 = vmatpush3.bf16.msra.mxu0 %v216_v4 }
  0x21   :  { %198 = vmatprep.subr.bf16.mxu0 %v247_v0 }
  0x24   :  { %199 = vmatpush3.bf16.msra.mxu0 %v217_v5 }
  0x25   :  { %200 = vmatprep.subr.bf16.mxu0 %v247_v0 }
  0x28   :  { %201 = vmatpush3.bf16.msra.mxu0 %v218_v6 }
  0x29   :  { %202 = vmatprep.subr.bf16.mxu0 %v247_v0 }
  0x2c   :  { %203 = vmatpush3.bf16.msra.mxu0 %v219_v7 }
  0x2d   :  { %204 = vmatprep.subr.bf16.mxu0 %v247_v0 }
  0x30   :  { %205 = vmatpush3.bf16.msra.mxu0 %v220_v8 }
  0x33   :  { %207 = vmatmul.mubr.bf16.vlgmr.msra.gmra.mrb[0].mxu0 %v221_v9 }
 0x106   :  { %v140_v11 = vpop.f32.mrb[0].mxu0 }
 0x107   :  { %v208_v12 = vpop.f32.mrb[1].mxu0  ;;  %v141_v14 = vadd.f32 %v162_v10, %v140_v11 }
 0x108   :  { %v143_v13 = vpop.f32.mrb[2].mxu0 }
 0x109   :  { %v144_v15 = vadd.f32 %v162_v10, %v143_v13  ;;  %v209_v16 = vpop.f32.mrb[3].mxu0 }
 0x10b   :  { %v179_v17 = vpack.c.bf16 %v144_v15, %v141_v14 }
 0x10d   :  { %180 = vst [vmem:[%s314_s3] sm:$0xff] %v179_v17  }
 0x10e   :  { %161 = vsyncpa [#allocation3], 1 }

// kernel: kan_transformer_forward.18
= control target key start
LH: loop header
LB: loop body
LE: loop exit
PB: predicated region body
PF: predicated region fallthrough
CT: control target
= control target key end

     0   :  { %s1024_s12 = smov 0   ;;  %s1026_s13 = smov 0   ;;  %s1141_s0 = inlined_call_operand.vmem [shape: bf16[2,8,384], index: 0, kind: input, shape index: {}, may-alias: {0,1,2}]   ;;  %s1142_s1 = inlined_call_operand.vmem [shape: bf16[2,8,384], index: 1, kind: input, shape index: {}, may-alias: {0,1,2}]   ;;  %s1143_s2 = inlined_call_operand.vmem [shape: bf16[2,8,384], index: 2, kind: input, shape index: {}, may-alias: {0,1,2}]   ;;  %s1144_s3 = inlined_call_operand.vmem [shape: bf16[2,8,128], index: 3, kind: output, shape index: {}]  }
   0x1   :  { %s1028_s14 = smov 0  }
   0x2 LB: > { %s25_s15 = sadd.s32 1, %s993_s13  ;;  %p842_p0 = scmp.ge.s32.totalorder %s997_s14, 1  ;;  %s997_s14 = sphi %s1028_s14, %s13_s14   ;;  %s993_s13 = sphi %s1026_s13, %s1146_s13   ;;  %s989_s12 = sphi %s1024_s12, %s1145_s12  }
   0x3   : > { %p27_p1 = scmp.ge.s32.totalorder %s25_s15, 2  ;;  %p179_p2 = scmp.lt.s32.totalorder %s997_s14, 3 }
   0x5   : > { %s1148_s15 = smov (%p27_p1, %s25_s15), 0  ;;  %p180_p3 = pnand %p842_p0, %p179_p2 }
   0x6   : > { %p221_p4 = scmp.lt.s32.totalorder (!%p180_p3), %s989_s12, 1  ;;  %v999_v0 = vmov (!%p180_p3), 0.0   ;;  %vm1000_vm0 = vmmov (!%p180_p3), 0   ;;  %vm253_vm1 = vcmask (!%p180_p3), 261120   ;;  %vm301_vm2 = vcmask (!%p180_p3), 64512   ;;  %s1001_s23 = smov (!%p180_p3), 96  }
   0x7   : > { %183 = sbr.rel (%p180_p3) target bundleno = 1479 (0x5c7), region = 32  ;;  %878 = vmatprep.subr.bf16.mxu0 (!%p180_p3), %v999_v0  ;;  %880 = vmatprep.mubr.msk.bf16.mxu0 (!%p180_p3), %vm1000_vm0, %v999_v0  ;;  %s1002_s24 = smov (!%p180_p3), 64   ;;  %vm317_vm3 = vcmask (!%p180_p3), 1043456   ;;  %vm716_vm4 = vcmask (!%p180_p3), 523264   ;;  %vm718_vm5 = vcmask (!%p180_p3), 785408  }
   0x8   : > { %884 = vmatprep.subr.bf16.mxu1 (!%p180_p3), %v999_v0  ;;  %886 = vmatprep.mubr.msk.bf16.mxu1 (!%p180_p3), %vm1000_vm0, %v999_v0  ;;  %s1003_s25 = smov (!%p180_p3), 32  }
   0xe   : > { %s1150_s12 = smov (!%p221_p4, %s989_s12), 1 }
   0xf   : > { %s1051_s16 = smul.u32 12, %s1150_s12  ;;  %s846_s29 = sshll.u32 %s1150_s12, 2 }
  0x10   : > { %s248_s5 = scalar_lea.vmem %s1144_s3, %s846_s29 }
  0x11   : > { %s783_s19 = scalar_lea.vmem %s1142_s1, %s1051_s16  ;;  %s229_s22 = scalar_lea.vmem %s1141_s0, %s1051_s16 }
  0x12   : > { %v847_v1 = vld [vmem:[%s783_s19 + $0x4] sm:$0xf]  ;;  %v250_v3 = vld [vmem:[%s229_s22] sm:$0xf]  ;;  %s787_s28 = scalar_lea.vmem %s1143_s2, %s1051_s16 }
  0x13   : > { %v258_v2 = vsel %vm253_vm1, %v847_v1, 0  ;;  %v852_v10 = vcombine.low %v847_v1, %v847_v1  ;;  %v851_v11 = vcombine.low %v250_v3, %v250_v3  ;;  %v1077_v17 = vld [vmem:[%s787_s28 + $0x8] sm:$0xf] }
  0x14   : > { %879 = vmatpush3.bf16.xpose.msra.mxu0 %v258_v2  ;;  %v319_v18 = vsel %vm317_vm3, %v1077_v17, 0  ;;  %v854_v1 = vcombine.low %v1077_v17, %v1077_v17 }
  0x15   : > { %896 = vmatprep.subr.bf16.mxu0 %v999_v0  ;;  %369 = vrot.lane.b32.xlu1 %v852_v10, %s1001_s23 }
  0x16   : > { %885 = vmatpush3.bf16.msra.mxu1 %v319_v18 }
  0x17   : > { %890 = vmatprep.subr.bf16.mxu1 %v999_v0 }
  0x19   : > { %364 = vrot.lane.b32.xlu1 %v851_v11, %s1001_s23 }
  0x1b   : > { %881 = vmatmul.mubr.msk.bf16.vlgmr.msra.gmra.mrb[0].mxu0 %vm253_vm1, %v250_v3 }
  0x1c   : > { %898 = vmatprep.mubr.msk.bf16.mxu0 %vm1000_vm0, %v999_v0 }
  0x1d   : > { %481 = vrot.lane.b32.xlu1 %v851_v11, %s1002_s24 }
  0x21   : > { %594 = vrot.lane.b32.xlu1 %v852_v10, %s1003_s25 }
  0x25   : > { %592 = vrot.lane.b32.xlu1 %v851_v11, %s1003_s25 }
  0x87   : > { %v370_v21 = vpop.permute.xlu1 %369 }
  0x88   : > { %v375_v23 = vsel %vm253_vm1, %v370_v21, 0 }
  0x8b   : > { %v365_v25 = vpop.permute.xlu1 %364 }
  0x8f   : > { %v482_v27 = vpop.permute.xlu1 %481 }
  0x93   : > { %v595_v29 = vpop.permute.xlu1 %594 }
  0x94   : > { %v600_v30 = vsel %vm253_vm1, %v595_v29, 0 }
  0x97   : > { %v593_v31 = vpop.permute.xlu1 %592 }
  0xee   : > { %v294_v4 = vpop.f32.mrb[0].mxu0 }
  0xef   : > { %v300_v5 = vmul.f32 0.17677669, %v294_v4  ;;  %v882_v6 = vpop.f32.mrb[1].mxu0 }
  0xf0   : > { %v297_v7 = vpop.f32.mrb[2].mxu0 }
  0xf1   : > { %v883_v8 = vpop.f32.mrb[3].mxu0  ;;  %v302_v9 = vsel %vm301_vm2, %v300_v5, -inf }
  0xf2   : > { %303 = vmax.xlane.f32.xlu0 %v302_v9 }
 0x17f   : > { %v304_v12 = vpop.xlane.xlu0 %303 }
 0x180   : > { %v305_v13 = vsub.f32 %v300_v5, %v304_v12 }
 0x182   : > { %v306_v14 = vmul.f32 1.442695, %v305_v13 }
 0x184   : > { %959 = vpow2.f32 %v306_v14 }
 0x18e   : > { %v960_v15 = vpop.eup %959 }
 0x18f   : > { %v308_v16 = vsel %vm301_vm2, %v960_v15, 0.0 }
 0x190   : > { %309 = vadd.xlane.f32.xlu0 %v308_v16 }
 0x1a6   : > { %483 = vrot.lane.b32.xlu0 %v852_v10, %s1002_s24 }
 0x21d   : > { %v310_v19 = vpop.xlane.xlu0 %309 }
 0x21e   : > { %961 = vrcp.f32 %v310_v19 }
 0x221   : > { %v484_v26 = vpop.permute.xlu0 %483 }
 0x222   : > { %v489_v28 = vsel %vm253_vm1, %v484_v26, 0 }
 0x228   : > { %v962_v20 = vpop.eup %961 }
 0x229   : > { %v312_v22 = vmul.f32 %v962_v20, %v960_v15 }
 0x22b   : > { %v313_v24 = vpack.c.bf16 %v312_v22, %v312_v22 }
 0x22d   : > { %887 = vmatmul.mubr.msk.bf16.vlgmr.msra.gmra.mrb[0].mxu1 %vm301_vm2, %v313_v24 }
 0x22e   : > { %891 = vmatpush3.bf16.xpose.msra.mxu1 %v375_v23  ;;  %892 = vmatprep.mubr.msk.bf16.mxu1 %vm1000_vm0, %v999_v0 }
 0x22f   : > { %902 = vmatprep.subr.bf16.mxu1 %v999_v0 }
 0x235   : > { %893 = vmatmul.mubr.msk.bf16.vlgmr.msra.gmra.mrb[4].mxu1 %vm253_vm1, %v365_v25 }
 0x236   : > { %903 = vmatpush3.bf16.xpose.msra.mxu1 %v489_v28  ;;  %904 = vmatprep.mubr.msk.bf16.mxu1 %vm1000_vm0, %v999_v0 }
 0x237   : > { %914 = vmatprep.subr.bf16.mxu1 %v999_v0 }
 0x23d   : > { %905 = vmatmul.mubr.msk.bf16.vlgmr.msra.gmra.mrb[8].mxu1 %vm253_vm1, %v482_v27 }
 0x23e   : > { %915 = vmatpush3.bf16.xpose.msra.mxu1 %v600_v30  ;;  %916 = vmatprep.mubr.msk.bf16.mxu1 %vm1000_vm0, %v999_v0 }
 0x245   : > { %917 = vmatmul.mubr.msk.bf16.vlgmr.msra.gmra.mrb[12].mxu1 %vm253_vm1, %v593_v31 }
 0x300   : > { %v1098_v32 = vpop.f32.mrb[0].mxu1 }
 0x301   : > { %v888_v33 = vpop.f32.mrb[1].mxu1 }
 0x302   : > { %v358_v34 = vpop.f32.mrb[2].mxu1 }
 0x303   : > { %v889_v35 = vpop.f32.mrb[3].mxu1 }
 0x308   : > { %v411_v36 = vpop.f32.mrb[4].mxu1 }
 0x309   : > { %v417_v37 = vmul.f32 0.17677669, %v411_v36  ;;  %v894_v38 = vpop.f32.mrb[5].mxu1 }
 0x30a   : > { %v414_v39 = vpop.f32.mrb[6].mxu1 }
 0x30b   : > { %v895_v40 = vpop.f32.mrb[7].mxu1  ;;  %v418_v41 = vsel %vm301_vm2, %v417_v37, -inf }
 0x30c   : > { %419 = vmax.xlane.f32.xlu1 %v418_v41 }
 0x310   : > { %v525_v42 = vpop.f32.mrb[8].mxu1 }
 0x311   : > { %v531_v43 = vmul.f32 0.17677669, %v525_v42  ;;  %v906_v44 = vpop.f32.mrb[9].mxu1 }
 0x312   : > { %v528_v45 = vpop.f32.mrb[10].mxu1 }
 0x313   : > { %v532_v46 = vsel %vm301_vm2, %v531_v43, -inf  ;;  %v907_v47 = vpop.f32.mrb[11].mxu1 }
 0x314   : > { %533 = vmax.xlane.f32.xlu0 %v532_v46 }
 0x318   : > { %v636_v48 = vpop.f32.mrb[12].mxu1 }
 0x319   : > { %v642_v49 = vmul.f32 0.17677669, %v636_v48  ;;  %v918_v50 = vpop.f32.mrb[13].mxu1 }
 0x31a   : > { %v639_v51 = vpop.f32.mrb[14].mxu1 }
 0x31b   : > { %v643_v52 = vsel %vm301_vm2, %v642_v49, -inf  ;;  %v919_v53 = vpop.f32.mrb[15].mxu1 }
 0x31c   : > { %644 = vmax.xlane.f32.xlu1 %v643_v52 }
 0x399   : > { %v420_v54 = vpop.xlane.xlu1 %419 }
 0x39a   : > { %v421_v55 = vsub.f32 %v417_v37, %v420_v54 }
 0x39c   : > { %v422_v56 = vmul.f32 1.442695, %v421_v55 }
 0x39e   : > { %963 = vpow2.f32 %v422_v56 }
 0x3a1   : > { %v534_v57 = vpop.xlane.xlu0 %533 }
 0x3a2   : > { %v535_v58 = vsub.f32 %v531_v43, %v534_v57 }
 0x3a4   : > { %v536_v59 = vmul.f32 1.442695, %v535_v58 }
 0x3a6   : > { %965 = vpow2.f32 %v536_v59 }
 0x3a8   : > { %v964_v60 = vpop.eup %963 }
 0x3a9   : > { %v424_v61 = vsel %vm301_vm2, %v964_v60, 0.0  ;;  %v645_v2 = vpop.xlane.xlu1 %644 }
 0x3aa   : > { %425 = vadd.xlane.f32.xlu1 %v424_v61  ;;  %v646_v3 = vsub.f32 %v642_v49, %v645_v2 }
 0x3ac   : > { %v647_v4 = vmul.f32 1.442695, %v646_v3 }
 0x3ae   : > { %967 = vpow2.f32 %v647_v4 }
 0x3b0   : > { %v966_v62 = vpop.eup %965 }
 0x3b1   : > { %v538_v63 = vsel %vm301_vm2, %v966_v62, 0.0 }
 0x3b2   : > { %539 = vadd.xlane.f32.xlu0 %v538_v63 }
 0x3b8   : > { %v968_v5 = vpop.eup %967 }
 0x3b9   : > { %v649_v6 = vsel %vm301_vm2, %v968_v5, 0.0 }
 0x3bb   : > { %544 = vrot.lane.b32.xlu1 %v854_v1, %s1002_s24 }
 0x3c8   : > { %433 = vrot.lane.b32.xlu0 %v854_v1, %s1001_s23 }
 0x3df   : > { %650 = vadd.xlane.f32.xlu1 %v649_v6 }
 0x3f0   : > { %655 = vrot.lane.b32.xlu1 %v854_v1, %s1003_s25 }
 0x437   : > { %v426_v7 = vpop.xlane.xlu1 %425 }
 0x438   : > { %969 = vrcp.f32 %v426_v7 }
 0x43b   : > { %v545_v13 = vpop.permute.xlu1 %544 }
 0x43c   : > { %v550_v15 = vsel %vm317_vm3, %v545_v13, 0 }
 0x43f   : > { %v540_v8 = vpop.xlane.xlu0 %539 }
 0x440   : > { %971 = vrcp.f32 %v540_v8 }
 0x442   : > { %v970_v9 = vpop.eup %969 }
 0x443   : > { %v428_v10 = vmul.f32 %v970_v9, %v964_v60  ;;  %v434_v11 = vpop.permute.xlu0 %433 }
 0x444   : > { %v439_v12 = vsel %vm317_vm3, %v434_v11, 0 }
 0x445   : > { %897 = vmatpush3.bf16.msra.mxu0 %v439_v12  ;;  %v429_v14 = vpack.c.bf16 %v428_v10, %v428_v10 }
 0x446   : > { %908 = vmatprep.subr.bf16.mxu0 %v999_v0 }
 0x448   : > { %899 = vmatmul.mubr.msk.bf16.vlgmr.msra.gmra.mrb[4].mxu0 %vm301_vm2, %v429_v14 }
 0x449   : > { %909 = vmatpush3.bf16.msra.mxu0 %v550_v15  ;;  %910 = vmatprep.mubr.msk.bf16.mxu0 %vm1000_vm0, %v999_v0 }
 0x44a   : > { %v972_v16 = vpop.eup %971  ;;  %920 = vmatprep.subr.bf16.mxu0 %v999_v0 }
 0x44b   : > { %v542_v17 = vmul.f32 %v972_v16, %v966_v62 }
 0x44d   : > { %v543_v18 = vpack.c.bf16 %v542_v17, %v542_v17 }
 0x450   : > { %911 = vmatmul.mubr.msk.bf16.vlgmr.msra.gmra.mrb[8].mxu0 %vm301_vm2, %v543_v18 }
 0x451   : > { %922 = vmatprep.mubr.msk.bf16.mxu0 %vm1000_vm0, %v999_v0 }
 0x46c   : > { %v651_v19 = vpop.xlane.xlu1 %650 }
 0x46d   : > { %973 = vrcp.f32 %v651_v19 }
 0x470   : > { %v656_v20 = vpop.permute.xlu1 %655 }
 0x471   : > { %v661_v21 = vsel %vm317_vm3, %v656_v20, 0 }
 0x472   : > { %921 = vmatpush3.bf16.msra.mxu0 %v661_v21 }
 0x477   : > { %v974_v22 = vpop.eup %973 }
 0x478   : > { %v653_v23 = vmul.f32 %v974_v22, %v968_v5 }
 0x47a   : > { %v654_v24 = vpack.c.bf16 %v653_v23, %v653_v23 }
 0x47c   : > { %923 = vmatmul.mubr.msk.bf16.vlgmr.msra.gmra.mrb[12].mxu0 %vm301_vm2, %v654_v24 }
 0x51b   : > { %v475_v25 = vpop.f32.mrb[4].mxu0 }
 0x51c   : > { %704 = vrot.lane.b32.xlu0 %v475_v25, %s1003_s25  ;;  %v900_v26 = vpop.f32.mrb[5].mxu0 }
 0x51d   : > { %v478_v27 = vpop.f32.mrb[6].mxu0 }
 0x51e   : > { %v901_v28 = vpop.f32.mrb[7].mxu0 }
 0x523   : > { %v586_v29 = vpop.f32.mrb[8].mxu0 }
 0x524   : > { %708 = vrot.lane.b32.xlu1 %v586_v29, %s1002_s24  ;;  %v912_v0 = vpop.f32.mrb[9].mxu0 }
 0x525   : > { %v589_v30 = vpop.f32.mrb[10].mxu0 }
 0x526   : > { %v913_v31 = vpop.f32.mrb[11].mxu0 }
 0x54f   : > { %v697_v33 = vpop.f32.mrb[12].mxu0 }
 0x550   : > { %712 = vrot.lane.b32.xlu0 %v697_v33, %s1001_s23  ;;  %v924_v34 = vpop.f32.mrb[13].mxu0 }
 0x551   : > { %v700_v35 = vpop.f32.mrb[14].mxu0 }
 0x552   : > { %v925_v36 = vpop.f32.mrb[15].mxu0 }
 0x58e   : > { %v705_v37 = vpop.permute.xlu0 %704 }
 0x58f   : > { %v715_v39 = vsel %vm253_vm1, %v1098_v32, %v705_v37 }
 0x596   : > { %v709_v38 = vpop.permute.xlu1 %708 }
 0x597   : > { %v717_v40 = vsel %vm716_vm4, %v715_v39, %v709_v38 }
 0x5c2   : > { %v713_v41 = vpop.permute.xlu0 %712 }
 0x5c3   : > { %v719_v42 = vsel %vm718_vm5, %v717_v40, %v713_v41 }
 0x5c4   : > { %v720_v43 = vpack.c.bf16 %v719_v42, %v719_v42 }
 0x5c6   : > { %721 = vst [vmem:[%s248_s5] sm:$0xf] %v720_v43 }
 0x5c7 PF: > { %s13_s14 = sadd.s32 1, %s997_s14   ;;  %s1145_s12 = smov %s993_s13 }
 0x5c8   : > { %p10_p5 = scmp.ge.s32.totalorder %s13_s14, 4   ;;  %s1146_s13 = smov %s1148_s15 }
 0x5ca   :  { %12 = sbr.rel (!%p10_p5) target bundleno = 2 (0x2), region = 68 }

// kernel: kan_transformer_forward.20
= control target key start
LH: loop header
LB: loop body
LE: loop exit
PB: predicated region body
PF: predicated region fallthrough
CT: control target
= control target key end

     0   :  { %13 = vsyncpa [#allocation3], 0  ;;  %s392_s0 = inlined_call_operand.vmem [shape: bf16[16,128], index: 0, kind: input, shape index: {}]   ;;  %s393_s1 = inlined_call_operand.vmem [shape: bf16[16,128], index: 1, kind: input, shape index: {}]   ;;  %s394_s2 = inlined_call_operand.vmem [shape: f32[1,128], index: 2, kind: input, shape index: {}]   ;;  %s395_s3 = inlined_call_operand.vmem [shape: f32[1,128], index: 3, kind: input, shape index: {}]   ;;  %s396_s4 = inlined_call_operand.hbm [shape: f32[6,128], index: 4, kind: input, shape index: {}]   ;;  %s397_s5 = inlined_call_operand.hbm [shape: f32[4,128], index: 5, kind: input, shape index: {}]   ;;  %s398_s6 = inlined_call_operand.vmem [shape: bf16[16,128], index: 6, kind: output, shape index: {0}]   ;;  %s399_s7 = inlined_call_operand.vmem [shape: bf16[16,128], index: 7, kind: output, shape index: {1}]  }
   0x1   :  { %14 = vsyncpa [#allocation5], 0  ;;  %s300_s24 = smov [#allocation2]   ;;  %s301_s26 = smov [#allocation4]  }
   0x2   :  { %s29_s25 = sshll.u32 %s300_s24, 4  ;;  %s39_s27 = sshll.u32 %s301_s26, 4  ;;  %s30_s25 = int_to_ptr.vmem [resolvable:$true] %s29_s25  ;;  %s40_s27 = int_to_ptr.vmem [resolvable:$true] %s39_s27 }
   0x3   :  { %s252_s30 = scalar_lea.hbm %s396_s4, 128 }
   0x4   :  { %p253_p0 = scmp.ne.s32.totalorder %s396_s4, %s252_s30  ;;  %p256_p1 = scmp.lt.u32.totalorder %s252_s30, %s396_s4 }
   0x6   :  { %p258_p2 = pnand %p256_p1, %p253_p0 }
   0x8   :  { %261 = shalt.err (!%p258_p2)
}
   0x9   :  { %s262_s12 = scalar_lea.vmem %s30_s25, 128  ;;  %p267_p4 = scmp.lt.s32.totalorder %s30_s25, %s30_s25 }
   0xa   :  { %p263_p3 = scmp.ne.s32.totalorder %s30_s25, %s262_s12  ;;  %p268_p5 = scmp.lt.s32.totalorder %s262_s12, %s262_s12 }
   0xc   :  { %p269_p6 = por %p268_p5, %p267_p4 }
   0xe   :  { %p270_p7 = pnand %p269_p6, %p263_p3 }
  0x10   :  { %273 = shalt.err (!%p270_p7)
}
  0x11   :  { %32 = dma.hbm_to_vmem [thread:$0]  %s396_s4, 128, %s30_s25, [#allocation3]  }
  0x12   :  { %s274_s17 = scalar_lea.hbm %s397_s5, 64 }
  0x13   :  { %p275_p8 = scmp.ne.s32.totalorder %s397_s5, %s274_s17  ;;  %p278_p9 = scmp.lt.u32.totalorder %s274_s17, %s397_s5 }
  0x15   :  { %p280_p10 = pnand %p278_p9, %p275_p8 }
  0x17   :  { %283 = shalt.err (!%p280_p10)
}
  0x18   :  { %s284_s22 = scalar_lea.vmem %s40_s27, 64  ;;  %p289_p12 = scmp.lt.s32.totalorder %s40_s27, %s40_s27 }
  0x19   :  { %p285_p11 = scmp.ne.s32.totalorder %s40_s27, %s284_s22  ;;  %p290_p13 = scmp.lt.s32.totalorder %s284_s22, %s284_s22 }
  0x1b   :  { %p291_p0 = por %p290_p13, %p289_p12 }
  0x1d   :  { %p292_p1 = pnand %p291_p0, %p285_p11 }
  0x1f   :  { %295 = shalt.err (!%p292_p1)
}
  0x20   :  { %42 = dma.hbm_to_vmem [thread:$0]  %s397_s5, 64, %s40_s27, [#allocation5]  }
  0x21   :  { %296 = dma.done.wait [#allocation3], 128  }
  0x22   :  { %297 = vsyncadd [#allocation3], 4294967168 }
  0x23   :  { %298 = dma.done.wait [#allocation5], 64  }
  0x24   :  { %299 = vsyncadd [#allocation5], 4294967232  ;;  %v225_v0 = vld [vmem:[%s392_s0] sm:$0xff]   ;;  %v112_v21 = vlaneseq  ;;  %v111_v29 = vld [vmem:[#allocation4] sm:$0xf] }
  0x25   :  { %v229_v1 = vld [vmem:[%s393_s1] sm:$0xff]   ;;  %v226_v2 = vunpack.c.l.bf16 %v225_v0  ;;  %v227_v4 = vunpack.c.h.bf16 %v225_v0 }
  0x26   :  { %v230_v3 = vunpack.c.l.bf16 %v229_v1  ;;  %v231_v5 = vunpack.c.h.bf16 %v229_v1  ;;  %v372_v23 = vshrl.u32 %v112_v21, 7  ;;  %v214_v27 = vld [vmem:[%s394_s2] ss:$0 sm:$0xff] }
  0x27   :  { %v110_v28 = vld [vmem:[#allocation2] sm:$0x3f] }
  0x28   :  { %v57_v6 = vadd.f32 %v230_v3, %v226_v2  ;;  %v58_v7 = vadd.f32 %v231_v5, %v227_v4  ;;  %v114_v24 = vsub.s32 5, %v372_v23  ;;  %v128_v25 = vsub.s32 3, %v372_v23  ;;  %v215_v33 = vld [vmem:[%s395_s3] ss:$0 sm:$0xff] }
  0x29   :  { %v120_v30 = vsub.s32 4, %v372_v23  ;;  %v136_v31 = vsub.s32 2, %v372_v23  ;;  %v144_v38 = vsub.s32 1, %v372_v23  ;;  %v152_v46 = vsub.s32 0, %v372_v23 }
  0x2a   :  { %59 = vadd.xlane.f32.xlu0 %v57_v6  ;;  %v115_v34 = vrot.slane %v110_v28, %v114_v24  ;;  %v159_v35 = vrot.slane %v111_v29, %v128_v25  ;;  %v129_v51 = vrot.slane %v110_v28, %v128_v25 }
  0x2b   :  { %v121_v39 = vrot.slane %v110_v28, %v120_v30  ;;  %v165_v40 = vrot.slane %v111_v29, %v136_v31  ;;  %v173_v47 = vrot.slane %v111_v29, %v144_v38  ;;  %v181_v57 = vrot.slane %v111_v29, %v152_v46 }
  0x2c   :  { %v137_v4 = vrot.slane %v110_v28, %v136_v31 }
  0x2e   :  { %61 = vadd.xlane.f32.xlu0 %v58_v7 }
  0xb7   :  { %v60_v8 = vpop.xlane.xlu0 %59 }
  0xb8   :  { %v64_v9 = vmul.f32 0.0078125, %v60_v8 }
  0xba   :  { %v66_v10 = vsub.f32 %v57_v6, %v64_v9 }
  0xbb   :  { %v62_v11 = vpop.xlane.xlu0 %61 }
  0xbc   :  { %v65_v12 = vmul.f32 0.0078125, %v62_v11  ;;  %v68_v13 = vmul.f32 %v66_v10, %v66_v10 }
  0xbe   :  { %v67_v14 = vsub.f32 %v58_v7, %v65_v12  ;;  %70 = vadd.xlane.f32.xlu1 %v68_v13 }
  0xc0   :  { %v69_v15 = vmul.f32 %v67_v14, %v67_v14 }
  0xc2   :  { %72 = vadd.xlane.f32.xlu1 %v69_v15 }
 0x14b   :  { %v71_v16 = vpop.xlane.xlu1 %70 }
 0x14c   :  { %v74_v17 = vmul.f32 0.0078125, %v71_v16  ;;  %v145_v16 = vrot.slane %v110_v28, %v144_v38 }
 0x14e   :  { %v76_v18 = vadd.f32 1e-05, %v74_v17 }
 0x14f   :  { %v73_v19 = vpop.xlane.xlu1 %72 }
 0x150   :  { %244 = vrsqrt.f32 %v76_v18  ;;  %v75_v20 = vmul.f32 0.0078125, %v73_v19 }
 0x152   :  { %v77_v22 = vadd.f32 1e-05, %v75_v20 }
 0x154   :  { %246 = vrsqrt.f32 %v77_v22  ;;  %v153_v22 = vrot.slane %v110_v28, %v152_v46 }
 0x15a   :  { %v245_v26 = vpop.eup %244 }
 0x15b   :  { %v80_v32 = vmul.f32 %v245_v26, %v66_v10 }
 0x15d   :  { %v89_v36 = vmul.f32 %v214_v27, %v80_v32 }
 0x15e   :  { %v247_v37 = vpop.eup %246 }
 0x15f   :  { %v98_v41 = vadd.f32 %v215_v33, %v89_v36  ;;  %v81_v42 = vmul.f32 %v247_v37, %v67_v14 }
 0x161   :  { %v116_v43 = vmul.f32 %v115_v34, %v98_v41  ;;  %v160_v44 = vmul.f32 %v159_v35, %v98_v41  ;;  %v90_v45 = vmul.f32 %v214_v27, %v81_v42 }
 0x163   :  { %v122_v48 = vadd.f32 %v121_v39, %v116_v43  ;;  %v166_v49 = vadd.f32 %v165_v40, %v160_v44  ;;  %v99_v50 = vadd.f32 %v215_v33, %v90_v45 }
 0x165   :  { %v124_v52 = vmul.f32 %v122_v48, %v98_v41  ;;  %v168_v53 = vmul.f32 %v166_v49, %v98_v41  ;;  %v235_v54 = vpack.c.bf16 %v99_v50, %v98_v41  ;;  %v117_v55 = vmul.f32 %v115_v34, %v99_v50 }
 0x166   :  { %v161_v56 = vmul.f32 %v159_v35, %v99_v50 }
 0x167   :  { %v174_v58 = vadd.f32 %v173_v47, %v168_v53  ;;  %236 = vst [vmem:[%s398_s6] sm:$0xff] %v235_v54   ;;  %v123_v59 = vadd.f32 %v121_v39, %v117_v55  ;;  %v130_v61 = vadd.f32 %v129_v51, %v124_v52 }
 0x168   :  { %v167_v60 = vadd.f32 %v165_v40, %v161_v56 }
 0x169   :  { %v176_v62 = vmul.f32 %v174_v58, %v98_v41  ;;  %v125_v63 = vmul.f32 %v123_v59, %v99_v50  ;;  %v132_v5 = vmul.f32 %v130_v61, %v98_v41 }
 0x16a   :  { %v169_v0 = vmul.f32 %v167_v60, %v99_v50 }
 0x16b   :  { %v182_v1 = vadd.f32 %v181_v57, %v176_v62  ;;  %v131_v2 = vadd.f32 %v129_v51, %v125_v63  ;;  %v138_v11 = vadd.f32 %v137_v4, %v132_v5 }
 0x16c   :  { %v175_v3 = vadd.f32 %v173_v47, %v169_v0 }
 0x16d   :  { %v184_v6 = vmul.f32 %v182_v1, %v98_v41  ;;  %v133_v7 = vmul.f32 %v131_v2, %v99_v50  ;;  %v140_v17 = vmul.f32 %v138_v11, %v98_v41 }
 0x16e   :  { %v177_v8 = vmul.f32 %v175_v3, %v99_v50 }
 0x16f   :  { %v186_v9 = vand.u32 2147483647, %v184_v6  ;;  %v139_v12 = vadd.f32 %v137_v4, %v133_v7  ;;  %v146_v20 = vadd.f32 %v145_v16, %v140_v17 }
 0x170   :  { %v183_v10 = vadd.f32 %v181_v57, %v177_v8 }
 0x171   :  { %v188_v13 = vadd.f32 1.0, %v186_v9  ;;  %v141_v18 = vmul.f32 %v139_v12, %v99_v50  ;;  %v148_v23 = vmul.f32 %v146_v20, %v98_v41 }
 0x172   :  { %v185_v14 = vmul.f32 %v183_v10, %v99_v50 }
 0x173   :  { %248 = vrcp.f32 %v188_v13  ;;  %v147_v21 = vadd.f32 %v145_v16, %v141_v18  ;;  %v154_v26 = vadd.f32 %v153_v22, %v148_v23 }
 0x174   :  { %v187_v15 = vand.u32 2147483647, %v185_v14 }
 0x175   :  { %v149_v24 = vmul.f32 %v147_v21, %v99_v50 }
 0x176   :  { %v189_v19 = vadd.f32 1.0, %v187_v15 }
 0x177   :  { %v155_v27 = vadd.f32 %v153_v22, %v149_v24 }
 0x178   :  { %250 = vrcp.f32 %v189_v19 }
 0x17d   :  { %v249_v25 = vpop.eup %248 }
 0x17e   :  { %v191_v30 = vmul.f32 %v249_v25, %v154_v26 }
 0x182   :  { %v251_v29 = vpop.eup %250 }
 0x183   :  { %v193_v31 = vmul.f32 %v251_v29, %v155_v27 }
 0x185   :  { %v240_v32 = vpack.c.bf16 %v193_v31, %v191_v30 }
 0x187   :  { %241 = vst [vmem:[%s399_s7] sm:$0xff] %v240_v32  }
 0x188   :  { %212 = vsyncpa [#allocation3], 1 }
 0x189   :  { %213 = vsyncpa [#allocation5], 1 }

// kernel: kan_transformer_forward.23
= control target key start
LH: loop header
LB: loop body
LE: loop exit
PB: predicated region body
PF: predicated region fallthrough
CT: control target
= control target key end

     0   :  { %s145_s0 = inlined_call_operand.vmem [shape: bf16[16,128], index: 0, kind: input, shape index: {}]   ;;  %s146_s1 = inlined_call_operand.vmem [shape: bf16[16,128], index: 1, kind: input, shape index: {}]   ;;  %s147_s2 = inlined_call_operand.vmem [shape: f32[1,128], index: 2, kind: input, shape index: {}]   ;;  %s148_s3 = inlined_call_operand.vmem [shape: f32[1,128], index: 3, kind: input, shape index: {}]   ;;  %s149_s4 = inlined_call_operand.vmem [shape: bf16[16,128], index: 4, kind: output, shape index: {}]  }
   0x1   :  { %v89_v0 = vld [vmem:[%s145_s0] sm:$0xff]  }
   0x2   :  { %v93_v1 = vld [vmem:[%s146_s1] sm:$0xff]   ;;  %v90_v2 = vunpack.c.l.bf16 %v89_v0  ;;  %v91_v4 = vunpack.c.h.bf16 %v89_v0 }
   0x3   :  { %v94_v3 = vunpack.c.l.bf16 %v93_v1  ;;  %v95_v5 = vunpack.c.h.bf16 %v93_v1  ;;  %v82_v24 = vld [vmem:[%s147_s2] ss:$0 sm:$0xff] }
   0x4   :  { %v83_v28 = vld [vmem:[%s148_s3] ss:$0 sm:$0xff] }
   0x5   :  { %v25_v6 = vadd.f32 %v94_v3, %v90_v2  ;;  %v26_v7 = vadd.f32 %v95_v5, %v91_v4 }
   0x7   :  { %27 = vadd.xlane.f32.xlu0 %v25_v6 }
   0xb   :  { %29 = vadd.xlane.f32.xlu0 %v26_v7 }
  0x94   :  { %v28_v8 = vpop.xlane.xlu0 %27 }
  0x95   :  { %v32_v9 = vmul.f32 0.0078125, %v28_v8 }
  0x97   :  { %v34_v10 = vsub.f32 %v25_v6, %v32_v9 }
  0x98   :  { %v30_v11 = vpop.xlane.xlu0 %29 }
  0x99   :  { %v33_v12 = vmul.f32 0.0078125, %v30_v11  ;;  %v36_v13 = vmul.f32 %v34_v10, %v34_v10 }
  0x9b   :  { %v35_v14 = vsub.f32 %v26_v7, %v33_v12  ;;  %38 = vadd.xlane.f32.xlu1 %v36_v13 }
  0x9d   :  { %v37_v15 = vmul.f32 %v35_v14, %v35_v14 }
  0x9f   :  { %40 = vadd.xlane.f32.xlu1 %v37_v15 }
 0x128   :  { %v39_v16 = vpop.xlane.xlu1 %38 }
 0x129   :  { %v42_v17 = vmul.f32 0.0078125, %v39_v16 }
 0x12b   :  { %v44_v18 = vadd.f32 1e-05, %v42_v17 }
 0x12c   :  { %v41_v19 = vpop.xlane.xlu1 %40 }
 0x12d   :  { %101 = vrsqrt.f32 %v44_v18  ;;  %v43_v20 = vmul.f32 0.0078125, %v41_v19 }
 0x12f   :  { %v45_v21 = vadd.f32 1e-05, %v43_v20 }
 0x131   :  { %103 = vrsqrt.f32 %v45_v21 }
 0x137   :  { %v102_v22 = vpop.eup %101 }
 0x138   :  { %v48_v23 = vmul.f32 %v102_v22, %v34_v10 }
 0x13a   :  { %v57_v26 = vmul.f32 %v82_v24, %v48_v23 }
 0x13b   :  { %v104_v25 = vpop.eup %103 }
 0x13c   :  { %v49_v27 = vmul.f32 %v104_v25, %v35_v14  ;;  %v66_v30 = vadd.f32 %v83_v28, %v57_v26 }
 0x13e   :  { %v58_v29 = vmul.f32 %v82_v24, %v49_v27 }
 0x140   :  { %v67_v31 = vadd.f32 %v83_v28, %v58_v29 }
 0x142   :  { %v99_v32 = vpack.c.bf16 %v67_v31, %v66_v30 }
 0x144   :  { %100 = vst [vmem:[%s149_s4] sm:$0xff] %v99_v32  }

// kernel: kan_transformer_forward.21
= control target key start
LH: loop header
LB: loop body
LE: loop exit
PB: predicated region body
PF: predicated region fallthrough
CT: control target
= control target key end

     0   :  { %10 = vsyncpa [#allocation3], 0  ;;  %s1496_s0 = inlined_call_operand.vmem [shape: bf16[16,128], index: 0, kind: input, shape index: {}]   ;;  %s1497_s1 = inlined_call_operand.vmem [shape: bf16[128,512], index: 1, kind: input, shape index: {}]   ;;  %s1498_s2 = inlined_call_operand.hbm [shape: f32[1,512], index: 2, kind: input, shape index: {}]   ;;  %s1499_s3 = inlined_call_operand.hbm [shape: f32[6,512], index: 3, kind: input, shape index: {}]   ;;  %s1500_s4 = inlined_call_operand.vmem [shape: f32[4,512], index: 4, kind: input, shape index: {}]   ;;  %s1501_s5 = inlined_call_operand.vmem [shape: bf16[16,512], index: 5, kind: output, shape index: {}]  }
   0x1   :  { %11 = vsyncpa [#allocation5], 0  ;;  %s960_s18 = smov [#allocation2]   ;;  %s961_s20 = smov [#allocation4]  }
   0x2   :  { %s22_s19 = sshll.u32 %s960_s18, 4  ;;  %s32_s21 = sshll.u32 %s961_s20, 4  ;;  %s23_s19 = int_to_ptr.vmem [resolvable:$true] %s22_s19  ;;  %s33_s21 = int_to_ptr.vmem [resolvable:$true] %s32_s21 }
   0x3   :  { %s912_s24 = scalar_lea.hbm %s1498_s2, 64 }
   0x4   :  { %p913_p0 = scmp.ne.s32.totalorder %s1498_s2, %s912_s24  ;;  %p916_p1 = scmp.lt.u32.totalorder %s912_s24, %s1498_s2 }
   0x6   :  { %p918_p2 = pnand %p916_p1, %p913_p0 }
   0x8   :  { %921 = shalt.err (!%p918_p2)
}
   0x9   :  { %s922_s29 = scalar_lea.vmem %s23_s19, 64  ;;  %p927_p4 = scmp.lt.s32.totalorder %s23_s19, %s23_s19 }
   0xa   :  { %p923_p3 = scmp.ne.s32.totalorder %s23_s19, %s922_s29  ;;  %p928_p5 = scmp.lt.s32.totalorder %s922_s29, %s922_s29 }
   0xc   :  { %p929_p6 = por %p928_p5, %p927_p4 }
   0xe   :  { %p930_p7 = pnand %p929_p6, %p923_p3 }
  0x10   :  { %933 = shalt.err (!%p930_p7)
}
  0x11   :  { %25 = dma.hbm_to_vmem [thread:$0]  %s1498_s2, 64, %s23_s19, [#allocation3]  }
  0x12   :  { %s934_s9 = scalar_lea.hbm %s1499_s3, 512 }
  0x13   :  { %p935_p8 = scmp.ne.s32.totalorder %s1499_s3, %s934_s9  ;;  %p938_p9 = scmp.lt.u32.totalorder %s934_s9, %s1499_s3 }
  0x15   :  { %p940_p10 = pnand %p938_p9, %p935_p8 }
  0x17   :  { %943 = shalt.err (!%p940_p10)
}
  0x18   :  { %s944_s14 = scalar_lea.vmem %s33_s21, 512  ;;  %p949_p12 = scmp.lt.s32.totalorder %s33_s21, %s33_s21 }
  0x19   :  { %p945_p11 = scmp.ne.s32.totalorder %s33_s21, %s944_s14  ;;  %p950_p13 = scmp.lt.s32.totalorder %s944_s14, %s944_s14 }
  0x1b   :  { %p951_p0 = por %p950_p13, %p949_p12 }
  0x1d   :  { %p952_p1 = pnand %p951_p0, %p945_p11 }
  0x1f   :  { %955 = shalt.err (!%p952_p1)
}
  0x20   :  { %35 = dma.hbm_to_vmem [thread:$0]  %s1499_s3, 512, %s33_s21, [#allocation5]  }
  0x21   :  { %956 = dma.done.wait [#allocation3], 64  }
  0x22   :  { %957 = vsyncadd [#allocation3], 4294967232 }
  0x23   :  { %958 = dma.done.wait [#allocation5], 512  }
  0x24   :  { %959 = vsyncadd [#allocation5], 4294966784  ;;  %v962_v0 = vmov 0   ;;  %v847_v1 = vld [vmem:[%s1497_s1 + $0x4] ss:$16 sps:$4 sm:$0xff]   ;;  %v81_v34 = vlaneseq  ;;  %v1124_v38 = vld [vmem:[%s1500_s4 + $0x8] sm:$0xff] }
  0x25   :  { %299 = vmatprep.mubr.bf16.mxu0 %v962_v0  ;;  %342 = vmatprep.mubr.bf16.mxu1 %v962_v0  ;;  %v849_v2 = vld [vmem:[%s1497_s1 + $0xc] ss:$16 sps:$4 sm:$0xff]   ;;  %v851_v3 = vld [vmem:[%s1497_s1] ss:$16 sps:$4 sm:$0xff]   ;;  %v852_v4 = vld [vmem:[%s1497_s1 + $0x8] ss:$16 sps:$4 sm:$0xff]  }
  0x26   :  { %267 = vmatprep.subr.bf16.mxu0 %v847_v1  ;;  %310 = vmatprep.subr.bf16.mxu1 %v849_v2  ;;  %v853_v5 = vld [vmem:[%s1497_s1 + $0x24] ss:$16 sps:$4 sm:$0xff]   ;;  %v855_v6 = vld [vmem:[%s1497_s1 + $0x2c] ss:$16 sps:$4 sm:$0xff]   ;;  %v857_v7 = vld [vmem:[%s1497_s1 + $0x20] ss:$16 sps:$4 sm:$0xff]  }
  0x27   :  { %268 = vmatpush1.bf16.msra.mxu0 %v851_v3  ;;  %311 = vmatpush1.bf16.msra.mxu1 %v852_v4  ;;  %v858_v8 = vld [vmem:[%s1497_s1 + $0x28] ss:$16 sps:$4 sm:$0xff]   ;;  %v859_v9 = vld [vmem:[%s1497_s1 + $0x44] ss:$16 sps:$4 sm:$0xff]   ;;  %v861_v10 = vld [vmem:[%s1497_s1 + $0x4c] ss:$16 sps:$4 sm:$0xff]  }
  0x28   :  { %269 = vmatprep.subr.bf16.mxu0 %v853_v5  ;;  %312 = vmatprep.subr.bf16.mxu1 %v855_v6  ;;  %v863_v11 = vld [vmem:[%s1497_s1 + $0x40] ss:$16 sps:$4 sm:$0xff]   ;;  %v864_v12 = vld [vmem:[%s1497_s1 + $0x48] ss:$16 sps:$4 sm:$0xff]   ;;  %v865_v13 = vld [vmem:[%s1497_s1 + $0x64] ss:$16 sps:$4 sm:$0xff]  }
  0x29   :  { %v867_v14 = vld [vmem:[%s1497_s1 + $0x6c] ss:$16 sps:$4 sm:$0xff]   ;;  %v869_v15 = vld [vmem:[%s1497_s1 + $0x60] ss:$16 sps:$4 sm:$0xff]   ;;  %v870_v16 = vld [vmem:[%s1497_s1 + $0x68] ss:$16 sps:$4 sm:$0xff]  }
  0x2a   :  { %v871_v17 = vld [vmem:[%s1497_s1 + $0x84] ss:$16 sps:$4 sm:$0xff]   ;;  %v873_v18 = vld [vmem:[%s1497_s1 + $0x8c] ss:$16 sps:$4 sm:$0xff]   ;;  %v875_v19 = vld [vmem:[%s1497_s1 + $0x80] ss:$16 sps:$4 sm:$0xff]  }
  0x2b   :  { %270 = vmatpush1.bf16.msra.mxu0 %v857_v7  ;;  %313 = vmatpush1.bf16.msra.mxu1 %v858_v8  ;;  %v876_v20 = vld [vmem:[%s1497_s1 + $0x88] ss:$16 sps:$4 sm:$0xff]   ;;  %v877_v21 = vld [vmem:[%s1497_s1 + $0xa4] ss:$16 sps:$4 sm:$0xff]   ;;  %v879_v22 = vld [vmem:[%s1497_s1 + $0xac] ss:$16 sps:$4 sm:$0xff]  }
  0x2c   :  { %271 = vmatprep.subr.bf16.mxu0 %v859_v9  ;;  %314 = vmatprep.subr.bf16.mxu1 %v861_v10  ;;  %v881_v23 = vld [vmem:[%s1497_s1 + $0xa0] ss:$16 sps:$4 sm:$0xff]   ;;  %v882_v24 = vld [vmem:[%s1497_s1 + $0xa8] ss:$16 sps:$4 sm:$0xff]   ;;  %v883_v25 = vld [vmem:[%s1497_s1 + $0xc4] ss:$16 sps:$4 sm:$0xff]  }
  0x2d   :  { %v885_v26 = vld [vmem:[%s1497_s1 + $0xcc] ss:$16 sps:$4 sm:$0xff]   ;;  %v887_v27 = vld [vmem:[%s1497_s1 + $0xc0] ss:$16 sps:$4 sm:$0xff]   ;;  %v888_v28 = vld [vmem:[%s1497_s1 + $0xc8] ss:$16 sps:$4 sm:$0xff]  }
  0x2e   :  { %v889_v29 = vld [vmem:[%s1497_s1 + $0xe4] ss:$16 sps:$4 sm:$0xff]   ;;  %v891_v30 = vld [vmem:[%s1497_s1 + $0xec] ss:$16 sps:$4 sm:$0xff]   ;;  %v893_v31 = vld [vmem:[%s1497_s1 + $0xe0] ss:$16 sps:$4 sm:$0xff]  }
  0x2f   :  { %272 = vmatpush1.bf16.msra.mxu0 %v863_v11  ;;  %315 = vmatpush1.bf16.msra.mxu1 %v864_v12  ;;  %v894_v32 = vld [vmem:[%s1497_s1 + $0xe8] ss:$16 sps:$4 sm:$0xff]   ;;  %v895_v33 = vld [vmem:[%s1496_s0] sm:$0xff]   ;;  %v82_v35 = vshrl.u32 %v81_v34, 7  ;;  %v1149_v55 = vld [vmem:[#allocation4 + $0x8] sm:$0x3f] }
  0x30   :  { %273 = vmatprep.subr.bf16.mxu0 %v865_v13  ;;  %316 = vmatprep.subr.bf16.mxu1 %v867_v14  ;;  %v1119_v37 = vld [vmem:[%s1500_s4] sm:$0xff]  ;;  %v1137_v50 = vld [vmem:[#allocation4 + $0x10] sm:$0x3f] }
  0x31   :  { %v95_v36 = vsub.s32 3, %v82_v35  ;;  %v1126_v39 = vsub.s32 0, %v82_v35  ;;  %v91_v40 = vsub.s32 2, %v82_v35  ;;  %v1128_v41 = vsub.s32 5, %v82_v35  ;;  %v79_v42 = vld [vmem:[#allocation2] sm:$0xf] }
  0x32   :  { %v1130_v43 = vld [vmem:[#allocation4] sm:$0x3f]  ;;  %v543_v46 = vsub.s32 7, %v82_v35  ;;  %v1134_v47 = vsub.s32 1, %v82_v35  ;;  %v385_v48 = vsub.s32 4, %v82_v35  ;;  %v587_v56 = vsub.s32 6, %v82_v35 }
  0x33   :  { %274 = vmatpush1.bf16.msra.mxu0 %v869_v15  ;;  %317 = vmatpush1.bf16.msra.mxu1 %v870_v16  ;;  %v540_v44 = vrot.slane %v1119_v37, %v95_v36  ;;  %v548_v45 = vrot.slane %v1124_v38, %v95_v36  ;;  %v584_v49 = vrot.slane %v1119_v37, %v91_v40  ;;  %v1171_v1 = vld [vmem:[#allocation4 + $0x18] sm:$0x3f] }
  0x34   :  { %275 = vmatprep.subr.bf16.mxu0 %v871_v17  ;;  %318 = vmatprep.subr.bf16.mxu1 %v873_v18  ;;  %v592_v51 = vrot.slane %v1124_v38, %v91_v40  ;;  %v1141_v52 = vrot.slane %v79_v42, %v1126_v39  ;;  %v1145_v53 = vrot.slane %v1130_v43, %v1128_v41 }
  0x35   :  { %v1147_v54 = vrot.slane %v79_v42, %v91_v40  ;;  %v1151_v57 = vrot.slane %v540_v44, %v95_v36  ;;  %v1155_v58 = vrot.slane %v1137_v50, %v1128_v41  ;;  %v1157_v59 = vrot.slane %v548_v45, %v95_v36 }
  0x36   :  { %v544_v60 = vrot.slane %v1119_v37, %v543_v46  ;;  %v1161_v61 = vrot.slane %v1130_v43, %v385_v48  ;;  %v1163_v62 = vrot.slane %v584_v49, %v91_v40  ;;  %v1166_v63 = vrot.slane %v1137_v50, %v385_v48 }
  0x37   :  { %276 = vmatpush1.bf16.msra.mxu0 %v875_v19  ;;  %319 = vmatpush1.bf16.msra.mxu1 %v876_v20  ;;  %1509 = vst [vmem:[#allocation8_spill] sm:$0xff] %v1157_v59  ;;  %v1169_v0 = vrot.slane %v79_v42, %v1134_v47  ;;  %v636_v2 = vrot.slane %v1119_v37, %v1134_v47 }
  0x38   :  { %277 = vmatprep.subr.bf16.mxu0 %v877_v21  ;;  %320 = vmatprep.subr.bf16.mxu1 %v879_v22  ;;  %v1175_v3 = vrot.slane %v592_v51, %v91_v40  ;;  %v1179_v4 = vrot.slane %v1149_v55, %v1128_v41  ;;  %v1181_v5 = vrot.slane %v79_v42, %v95_v36 }
  0x39   :  { %v644_v6 = vrot.slane %v1124_v38, %v1134_v47  ;;  %v1186_v7 = vrot.slane %v1149_v55, %v385_v48  ;;  %v588_v8 = vrot.slane %v1119_v37, %v587_v56  ;;  %v552_v9 = vrot.slane %v1124_v38, %v543_v46 }
  0x3a   :  { %1510 = vst [vmem:[#allocation9_spill] sm:$0xff] %v1179_v4  ;;  %1511 = vst [vmem:[#allocation10_spill] sm:$0xff] %v1181_v5  ;;  %v1190_v10 = vrot.slane %v544_v60, %v95_v36  ;;  %v640_v11 = vrot.slane %v1119_v37, %v1128_v41  ;;  %v1196_v12 = vrot.slane %v1171_v1, %v1128_v41 }
  0x3b   :  { %278 = vmatpush1.bf16.msra.mxu0 %v881_v23  ;;  %321 = vmatpush1.bf16.msra.mxu1 %v882_v24  ;;  %v596_v13 = vrot.slane %v1124_v38, %v587_v56  ;;  %v1200_v14 = vrot.slane %v1130_v43, %v95_v36  ;;  %v688_v15 = vrot.slane %v1119_v37, %v1126_v39 }
  0x3c   :  { %279 = vmatprep.subr.bf16.mxu0 %v883_v25  ;;  %322 = vmatprep.subr.bf16.mxu1 %v885_v26  ;;  %1512 = vst [vmem:[#allocation11_spill] sm:$0xff] %v1190_v10  ;;  %1513 = vst [vmem:[#allocation12_spill] sm:$0xff] %v1196_v12  ;;  %v696_v16 = vrot.slane %v1124_v38, %v1126_v39  ;;  %v1207_v17 = vrot.slane %v1171_v1, %v385_v48 }
  0x3d   :  { %v1210_v18 = vrot.slane %v636_v2, %v1134_v47  ;;  %v1213_v19 = vrot.slane %v1137_v50, %v95_v36  ;;  %v692_v20 = vrot.slane %v1119_v37, %v385_v48  ;;  %v648_v21 = vrot.slane %v1124_v38, %v1128_v41 }
  0x3e   :  { %v1219_v22 = vrot.slane %v644_v6, %v1134_v47  ;;  %v1221_v23 = vrot.slane %v588_v8, %v91_v40  ;;  %v1223_v24 = vrot.slane %v552_v9, %v95_v36  ;;  %v700_v25 = vrot.slane %v1124_v38, %v385_v48 }
  0x3f   :  { %280 = vmatpush1.bf16.msra.mxu0 %v887_v27  ;;  %323 = vmatpush1.bf16.msra.mxu1 %v888_v28  ;;  %v1227_v26 = vrot.slane %v1149_v55, %v95_v36  ;;  %v1230_v27 = vrot.slane %v640_v11, %v1134_v47  ;;  %v1233_v28 = vrot.slane %v1171_v1, %v95_v36 }
  0x40   :  { %281 = vmatprep.subr.bf16.mxu0 %v889_v29  ;;  %324 = vmatprep.subr.bf16.mxu1 %v891_v30  ;;  %1514 = vst [vmem:[#allocation13_spill] sm:$0xff] %v1223_v24  ;;  %v1235_v29 = vrot.slane %v596_v13, %v91_v40  ;;  %v1238_v30 = vrot.slane %v1130_v43, %v91_v40 }
  0x41   :  { %v1250_v37 = vrot.slane %v1149_v55, %v91_v40  ;;  %v1253_v36 = vrot.slane %v692_v20, %v1126_v39  ;;  %v1256_v38 = vrot.slane %v1171_v1, %v91_v40  ;;  %v1259_v41 = vrot.slane %v648_v21, %v1134_v47 }
  0x42   :  { %v1266_v44 = vrot.slane %v1130_v43, %v1134_v47  ;;  %v1272_v49 = vrot.slane %v700_v25, %v1126_v39  ;;  %v1283_v56 = vrot.slane %v1149_v55, %v1134_v47 }
  0x43   :  { %282 = vmatpush1.bf16.msra.mxu0 %v893_v31  ;;  %325 = vmatpush1.bf16.msra.mxu1 %v894_v32  ;;  %v1241_v31 = vrot.slane %v688_v15, %v1126_v39  ;;  %v1244_v32 = vrot.slane %v1137_v50, %v91_v40  ;;  %1515 = vst [vmem:[#allocation14_spill] sm:$0xff] %v1256_v38 }
  0x44   :  { %v1276_v40 = vrot.slane %v1137_v50, %v1134_v47 }
  0x46   :  { %300 = vmatmul.mubr.bf16.vlgmr.msra.gmra.mrb[0].mxu0 %v895_v33  ;;  %343 = vmatmul.mubr.bf16.vlgmr.msra.gmra.mrb[0].mxu1 %v895_v33  ;;  %v1247_v33 = vrot.slane %v696_v16, %v1126_v39 }
 0x119   :  { %v301_v34 = vpop.f32.mrb[0].mxu0  ;;  %v344_v35 = vpop.f32.mrb[0].mxu1 }
 0x11a   :  { %v1262_v42 = vadd.f32 %v301_v34, %v1141_v52  ;;  %v1269_v45 = vadd.f32 %v344_v35, %v1147_v54  ;;  %v303_v46 = vpop.f32.mrb[1].mxu0  ;;  %v346_v48 = vpop.f32.mrb[1].mxu1 }
 0x11b   :  { %v1279_v51 = vadd.f32 %v303_v46, %v1169_v0  ;;  %v1286_v60 = vadd.f32 %v346_v48, %v1181_v5  ;;  %v1288_v2 = vpop.f32.mrb[2].mxu0  ;;  %v1290_v6 = vpop.f32.mrb[2].mxu1 }
 0x11c   :  { %v375_v8 = vmul.f32 %v1145_v53, %v1262_v42  ;;  %v573_v9 = vmul.f32 %v1151_v57, %v1262_v42  ;;  %v377_v11 = vmul.f32 %v1155_v58, %v1269_v45  ;;  %v575_v13 = vmul.f32 %v1157_v59, %v1269_v45  ;;  %v1300_v15 = vpop.f32.mrb[3].mxu0  ;;  %v1302_v16 = vpop.f32.mrb[3].mxu1 }
 0x11d   :  { %1516 = vst [vmem:[#allocation15_spill] sm:$0xff] %v1302_v16  ;;  %v376_v20 = vmul.f32 %v1179_v4, %v1279_v51  ;;  %v574_v21 = vmul.f32 %v1190_v10, %v1279_v51  ;;  %v378_v25 = vmul.f32 %v1196_v12, %v1286_v60  ;;  %v576_v34 = vmul.f32 %v1223_v24, %v1286_v60 }
 0x11e   :  { %v399_v35 = vadd.f32 %v1161_v61, %v375_v8  ;;  %v617_v46 = vadd.f32 %v1163_v62, %v573_v9  ;;  %v401_v48 = vadd.f32 %v1166_v63, %v377_v11  ;;  %v619_v16 = vadd.f32 %v1175_v3, %v575_v13 }
 0x11f   :  { %v400_v5 = vadd.f32 %v1186_v7, %v376_v20  ;;  %v618_v4 = vadd.f32 %v1221_v23, %v574_v21  ;;  %v402_v10 = vadd.f32 %v1207_v17, %v378_v25  ;;  %v620_v59 = vadd.f32 %v1235_v29, %v576_v34 }
 0x120   :  { %v407_v12 = vmul.f32 %v399_v35, %v1262_v42  ;;  %v625_v24 = vmul.f32 %v617_v46, %v1262_v42  ;;  %v409_v8 = vmul.f32 %v401_v48, %v1269_v45  ;;  %v627_v9 = vmul.f32 %v619_v16, %v1269_v45 }
 0x121   :  { %v408_v11 = vmul.f32 %v400_v5, %v1279_v51  ;;  %v626_v13 = vmul.f32 %v618_v4, %v1279_v51  ;;  %v410_v20 = vmul.f32 %v402_v10, %v1286_v60  ;;  %v628_v21 = vmul.f32 %v620_v59, %v1286_v60 }
 0x122   :  { %v431_v25 = vadd.f32 %v1200_v14, %v407_v12  ;;  %v669_v34 = vadd.f32 %v1210_v18, %v625_v24  ;;  %v433_v35 = vadd.f32 %v1213_v19, %v409_v8  ;;  %v671_v46 = vadd.f32 %v1219_v22, %v627_v9 }
 0x123   :  { %v432_v48 = vadd.f32 %v1227_v26, %v408_v11  ;;  %v670_v16 = vadd.f32 %v1230_v27, %v626_v13  ;;  %v434_v5 = vadd.f32 %v1233_v28, %v410_v20  ;;  %v672_v4 = vadd.f32 %v1259_v41, %v628_v21 }
 0x124   :  { %v439_v10 = vmul.f32 %v431_v25, %v1262_v42  ;;  %v677_v59 = vmul.f32 %v669_v34, %v1262_v42  ;;  %v441_v12 = vmul.f32 %v433_v35, %v1269_v45  ;;  %v679_v24 = vmul.f32 %v671_v46, %v1269_v45 }
 0x125   :  { %v440_v8 = vmul.f32 %v432_v48, %v1279_v51  ;;  %v678_v9 = vmul.f32 %v670_v16, %v1279_v51  ;;  %v442_v11 = vmul.f32 %v434_v5, %v1286_v60  ;;  %v680_v13 = vmul.f32 %v672_v4, %v1286_v60 }
 0x126   :  { %v463_v20 = vadd.f32 %v1238_v30, %v439_v10  ;;  %v721_v21 = vadd.f32 %v1241_v31, %v677_v59  ;;  %v465_v25 = vadd.f32 %v1244_v32, %v441_v12  ;;  %v723_v34 = vadd.f32 %v1247_v33, %v679_v24 }
 0x127   :  { %v464_v35 = vadd.f32 %v1250_v37, %v440_v8  ;;  %v722_v46 = vadd.f32 %v1253_v36, %v678_v9  ;;  %v466_v48 = vadd.f32 %v1256_v38, %v442_v11  ;;  %v724_v16 = vadd.f32 %v1272_v49, %v680_v13 }
 0x128   :  { %v471_v5 = vmul.f32 %v463_v20, %v1262_v42  ;;  %v729_v4 = vmul.f32 %v721_v21, %v1262_v42  ;;  %v473_v10 = vmul.f32 %v465_v25, %v1269_v45  ;;  %v731_v59 = vmul.f32 %v723_v34, %v1269_v45 }
 0x129   :  { %v472_v12 = vmul.f32 %v464_v35, %v1279_v51  ;;  %v730_v24 = vmul.f32 %v722_v46, %v1279_v51  ;;  %v1360_v8 = vrot.slane %v1171_v1, %v1134_v47  ;;  %v732_v9 = vmul.f32 %v724_v16, %v1286_v60 }
 0x12a   :  { %v495_v11 = vadd.f32 %v1266_v44, %v471_v5  ;;  %v737_v13 = vand.u32 2147483647, %v729_v4  ;;  %v739_v20 = vand.u32 2147483647, %v731_v59  ;;  %v474_v21 = vmul.f32 %v466_v48, %v1286_v60 }
 0x12b   :  { %v497_v25 = vadd.f32 %v1276_v40, %v473_v10  ;;  %v496_v34 = vadd.f32 %v1283_v56, %v472_v12  ;;  %v738_v38 = vand.u32 2147483647, %v730_v24  ;;  %v740_v35 = vand.u32 2147483647, %v732_v9 }
 0x12c   :  { %v1369_v46 = vrot.slane %v1130_v43, %v1126_v39  ;;  %v745_v47 = vadd.f32 1.0, %v737_v13  ;;  %v1373_v16 = vrot.slane %v1137_v50, %v1126_v39  ;;  %v747_v5 = vadd.f32 1.0, %v739_v20  ;;  %v1522_v20 = vld [vmem:[#allocation12_spill] sm:$0xff] }
 0x12d   :  { %v1377_v4 = vrot.slane %v1149_v55, %v1126_v39  ;;  %v746_v48 = vadd.f32 1.0, %v738_v38  ;;  %v1381_v10 = vrot.slane %v1171_v1, %v1126_v39  ;;  %v748_v59 = vadd.f32 1.0, %v740_v35 }
 0x12e   :  { %v503_v12 = vmul.f32 %v495_v11, %v1262_v42  ;;  %896 = vrcp.f32 %v745_v47  ;;  %v498_v43 = vadd.f32 %v1360_v8, %v474_v21  ;;  %v1387_v50 = vadd.f32 %v1288_v2, %v1141_v52  ;;  %v1519_v2 = vld [vmem:[#allocation15_spill] sm:$0xff] }
 0x12f   :  { %v505_v24 = vmul.f32 %v497_v25, %v1269_v45  ;;  %898 = vrcp.f32 %v747_v5  ;;  %v504_v55 = vmul.f32 %v496_v34, %v1279_v51  ;;  %v1393_v38 = vadd.f32 %v1290_v6, %v1147_v54  ;;  %v1517_v45 = vld [vmem:[#allocation8_spill] sm:$0xff]  ;;  %v1518_v54 = vld [vmem:[#allocation10_spill] sm:$0xff]  ;;  %v1523_v25 = vld [vmem:[#allocation13_spill] sm:$0xff] }
 0x130   :  { %900 = vrcp.f32 %v746_v48  ;;  %v379_v39 = vmul.f32 %v1145_v53, %v1387_v50  ;;  %v577_v1 = vmul.f32 %v1151_v57, %v1387_v50  ;;  %v1401_v52 = vadd.f32 %v1300_v15, %v1169_v0  ;;  %v1520_v57 = vld [vmem:[#allocation9_spill] sm:$0xff]  ;;  %v1521_v0 = vld [vmem:[#allocation11_spill] sm:$0xff] }
 0x131   :  { %902 = vrcp.f32 %v748_v59  ;;  %v381_v42 = vmul.f32 %v1155_v58, %v1393_v38  ;;  %v579_v51 = vmul.f32 %v1517_v45, %v1393_v38  ;;  %v1409_v6 = vadd.f32 %v1519_v2, %v1518_v54 }
 0x132   :  { %v403_v53 = vadd.f32 %v1161_v61, %v379_v39  ;;  %v621_v9 = vadd.f32 %v1163_v62, %v577_v1  ;;  %v380_v11 = vmul.f32 %v1520_v57, %v1401_v52  ;;  %v578_v15 = vmul.f32 %v1521_v0, %v1401_v52 }
 0x133   :  { %v405_v13 = vadd.f32 %v1166_v63, %v381_v42  ;;  %v623_v58 = vadd.f32 %v1175_v3, %v579_v51  ;;  %v382_v21 = vmul.f32 %v1522_v20, %v1409_v6  ;;  %v580_v34 = vmul.f32 %v1523_v25, %v1409_v6 }
 0x134   :  { %v411_v61 = vmul.f32 %v403_v53, %v1387_v50  ;;  %v629_v62 = vmul.f32 %v621_v9, %v1387_v50  ;;  %v404_v35 = vadd.f32 %v1186_v7, %v380_v11  ;;  %v622_v47 = vadd.f32 %v1221_v23, %v578_v15 }
 0x135   :  { %v527_v5 = vadd.f32 %v1369_v46, %v503_v12  ;;  %v506_v63 = vmul.f32 %v498_v43, %v1286_v60  ;;  %v631_v3 = vmul.f32 %v623_v58, %v1393_v38  ;;  %v406_v48 = vadd.f32 %v1207_v17, %v382_v21 }
 0x136   :  { %v435_v59 = vadd.f32 %v1200_v14, %v411_v61  ;;  %v673_v39 = vadd.f32 %v1210_v18, %v629_v62  ;;  %v412_v1 = vmul.f32 %v404_v35, %v1401_v52  ;;  %v630_v42 = vmul.f32 %v622_v47, %v1401_v52 }
 0x137   :  { %v529_v7 = vadd.f32 %v1373_v16, %v505_v24  ;;  %v413_v23 = vmul.f32 %v405_v13, %v1393_v38  ;;  %v675_v12 = vadd.f32 %v1219_v22, %v631_v3  ;;  %v624_v60 = vadd.f32 %v1235_v29, %v580_v34 }
 0x138   :  { %v897_v43 = vpop.eup %896  ;;  %v443_v45 = vmul.f32 %v435_v59, %v1387_v50  ;;  %v681_v17 = vmul.f32 %v673_v39, %v1387_v50  ;;  %v436_v14 = vadd.f32 %v1227_v26, %v412_v1  ;;  %v674_v18 = vadd.f32 %v1230_v27, %v630_v42 }
 0x139   :  { %v899_v51 = vpop.eup %898  ;;  %v754_v54 = vmul.f32 %v897_v43, %v527_v5  ;;  %v528_v2 = vadd.f32 %v1377_v4, %v504_v55  ;;  %v683_v24 = vmul.f32 %v675_v12, %v1393_v38  ;;  %v414_v53 = vmul.f32 %v406_v48, %v1409_v6 }
 0x13a   :  { %v901_v22 = vpop.eup %900  ;;  %v758_v9 = vmul.f32 %v899_v51, %v529_v7  ;;  %v530_v29 = vadd.f32 %v1381_v10, %v506_v63  ;;  %v725_v57 = vadd.f32 %v1241_v31, %v681_v17  ;;  %v444_v11 = vmul.f32 %v436_v14, %v1401_v52 }
 0x13b   :  { %v903_v0 = vpop.eup %902  ;;  %v756_v26 = vmul.f32 %v901_v22, %v528_v2  ;;  %v437_v27 = vadd.f32 %v1213_v19, %v413_v23  ;;  %v727_v15 = vadd.f32 %v1247_v33, %v683_v24  ;;  %v682_v55 = vmul.f32 %v674_v18, %v1401_v52  ;;  %v1524_v23 = vld [vmem:[#allocation14_spill] sm:$0xff] }
 0x13c   :  { %v760_v13 = vmul.f32 %v903_v0, %v530_v29  ;;  %v467_v58 = vadd.f32 %v1238_v30, %v443_v45  ;;  %v733_v20 = vmul.f32 %v725_v57, %v1387_v50  ;;  %v632_v21 = vmul.f32 %v624_v60, %v1409_v6 }
 0x13d   :  { %v840_v25 = vpack.c.bf16 %v756_v26, %v754_v54  ;;  %v735_v31 = vmul.f32 %v727_v15, %v1393_v38  ;;  %v726_v34 = vadd.f32 %v1253_v36, %v682_v55  ;;  %v438_v61 = vadd.f32 %v1233_v28, %v414_v53 }
 0x13e   :  { %v841_v62 = vpack.c.bf16 %v760_v13, %v758_v9  ;;  %v741_v19 = vand.u32 2147483647, %v733_v20  ;;  %v468_v33 = vadd.f32 %v1250_v37, %v444_v11  ;;  %v445_v30 = vmul.f32 %v437_v27, %v1393_v38 }
 0x13f   :  { %793 = vst [vmem:[%s1501_s5] sm:$0xff] %v840_v25  ;;  %v734_v35 = vmul.f32 %v726_v34, %v1401_v52  ;;  %v475_v36 = vmul.f32 %v467_v58, %v1387_v50  ;;  %v743_v28 = vand.u32 2147483647, %v735_v31  ;;  %v676_v5 = vadd.f32 %v1259_v41, %v632_v21 }
 0x140   :  { %794 = vst [vmem:[%s1501_s5 + $0x8] sm:$0xff] %v841_v62  ;;  %v749_v47 = vadd.f32 1.0, %v741_v19  ;;  %v446_v37 = vmul.f32 %v438_v61, %v1409_v6  ;;  %v476_v3 = vmul.f32 %v468_v33, %v1401_v52  ;;  %v469_v59 = vadd.f32 %v1244_v32, %v445_v30 }
 0x141   :  { %v742_v63 = vand.u32 2147483647, %v734_v35  ;;  %v684_v48 = vmul.f32 %v676_v5, %v1409_v6  ;;  %v499_v1 = vadd.f32 %v1266_v44, %v475_v36  ;;  %v751_v42 = vadd.f32 1.0, %v743_v28 }
 0x142   :  { %904 = vrcp.f32 %v749_v47  ;;  %v470_v12 = vadd.f32 %v1524_v23, %v446_v37  ;;  %v500_v41 = vadd.f32 %v1283_v56, %v476_v3  ;;  %v477_v43 = vmul.f32 %v469_v59, %v1393_v38 }
 0x143   :  { %v750_v39 = vadd.f32 1.0, %v742_v63  ;;  %v728_v7 = vadd.f32 %v1272_v49, %v684_v48  ;;  %v507_v45 = vmul.f32 %v499_v1, %v1387_v50 }
 0x144   :  { %v478_v32 = vmul.f32 %v470_v12, %v1409_v6  ;;  %v508_v44 = vmul.f32 %v500_v41, %v1401_v52  ;;  %v501_v49 = vadd.f32 %v1276_v40, %v477_v43 }
 0x145   :  { %906 = vrcp.f32 %v750_v39  ;;  %v736_v60 = vmul.f32 %v728_v7, %v1409_v6  ;;  %v531_v51 = vadd.f32 %v1369_v46, %v507_v45 }
 0x146   :  { %908 = vrcp.f32 %v751_v42  ;;  %v502_v56 = vadd.f32 %v1360_v8, %v478_v32  ;;  %v532_v2 = vadd.f32 %v1377_v4, %v508_v44  ;;  %v509_v50 = vmul.f32 %v501_v49, %v1393_v38 }
 0x147   :  { %v744_v17 = vand.u32 2147483647, %v736_v60 }
 0x148   :  { %v510_v22 = vmul.f32 %v502_v56, %v1409_v6  ;;  %v533_v29 = vadd.f32 %v1373_v16, %v509_v50 }
 0x149   :  { %v752_v14 = vadd.f32 1.0, %v744_v17 }
 0x14a   :  { %v534_v8 = vadd.f32 %v1381_v10, %v510_v22 }
 0x14b   :  { %910 = vrcp.f32 %v752_v14 }
 0x14c   :  { %v905_v18 = vpop.eup %904 }
 0x14d   :  { %v762_v54 = vmul.f32 %v905_v18, %v531_v51 }
 0x14f   :  { %v907_v24 = vpop.eup %906 }
 0x150   :  { %v764_v53 = vmul.f32 %v907_v24, %v532_v2  ;;  %v909_v9 = vpop.eup %908 }
 0x151   :  { %v766_v40 = vmul.f32 %v909_v9, %v533_v29 }
 0x152   :  { %v842_v52 = vpack.c.bf16 %v764_v53, %v762_v54 }
 0x154   :  { %795 = vst [vmem:[%s1501_s5 + $0x10] sm:$0xff] %v842_v52 }
 0x155   :  { %v911_v46 = vpop.eup %910 }
 0x156   :  { %v768_v57 = vmul.f32 %v911_v46, %v534_v8 }
 0x158   :  { %v843_v4 = vpack.c.bf16 %v768_v57, %v766_v40 }
 0x15a   :  { %796 = vst [vmem:[%s1501_s5 + $0x18] sm:$0xff] %v843_v4 }
 0x15b   :  { %801 = vsyncpa [#allocation3], 1 }
 0x15c   :  { %802 = vsyncpa [#allocation5], 1 }

// kernel: kan_transformer_forward.22
= control target key start
LH: loop header
LB: loop body
LE: loop exit
PB: predicated region body
PF: predicated region fallthrough
CT: control target
= control target key end

     0   :  { %s660_s1 = inlined_call_operand.vmem [shape: bf16[512,128], index: 1, kind: input, shape index: {}]   ;;  %s661_s0 = inlined_call_operand.vmem [shape: bf16[16,512], index: 0, kind: input, shape index: {}]   ;;  %s662_s2 = inlined_call_operand.vmem [shape: f32[1,128], index: 2, kind: input, shape index: {}]   ;;  %s663_s3 = inlined_call_operand.vmem [shape: bf16[16,128], index: 3, kind: output, shape index: {}]  }
   0x1   :  { %v488_v0 = vld [vmem:[%s660_s1 + $0x40] sm:$0xff]   ;;  %v492_v4 = vld [vmem:[%s660_s1 + $0x48] sm:$0xff]   ;;  %v496_v8 = vld [vmem:[%s660_s1 + $0x50] sm:$0xff]  }
   0x2   :  { %v489_v1 = vld [vmem:[%s660_s1 + $0xc0] sm:$0xff]   ;;  %444 = vmatprep.subr.bf16.mxu0 %v488_v0  ;;  %v493_v5 = vld [vmem:[%s660_s1 + $0xc8] sm:$0xff]   ;;  %v497_v9 = vld [vmem:[%s660_s1 + $0xd0] sm:$0xff]  }
   0x3   :  { %v490_v2 = vld [vmem:[%s660_s1] sm:$0xff]   ;;  %466 = vmatprep.subr.bf16.mxu1 %v489_v1  ;;  %v494_v6 = vld [vmem:[%s660_s1 + $0x8] sm:$0xff]   ;;  %v498_v10 = vld [vmem:[%s660_s1 + $0x10] sm:$0xff]  }
   0x4   :  { %v491_v3 = vld [vmem:[%s660_s1 + $0x80] sm:$0xff]   ;;  %445 = vmatpush3.bf16.msra.mxu0 %v490_v2  ;;  %v495_v7 = vld [vmem:[%s660_s1 + $0x88] sm:$0xff]   ;;  %v499_v11 = vld [vmem:[%s660_s1 + $0x90] sm:$0xff]  }
   0x5   :  { %467 = vmatpush3.bf16.msra.mxu1 %v491_v3  ;;  %446 = vmatprep.subr.bf16.mxu0 %v492_v4  ;;  %v500_v12 = vld [vmem:[%s660_s1 + $0x58] sm:$0xff]   ;;  %v504_v16 = vld [vmem:[%s660_s1 + $0x60] sm:$0xff]   ;;  %v508_v20 = vld [vmem:[%s660_s1 + $0x68] sm:$0xff]  }
   0x6   :  { %468 = vmatprep.subr.bf16.mxu1 %v493_v5  ;;  %v501_v13 = vld [vmem:[%s660_s1 + $0xd8] sm:$0xff]   ;;  %v505_v17 = vld [vmem:[%s660_s1 + $0xe0] sm:$0xff]   ;;  %v509_v21 = vld [vmem:[%s660_s1 + $0xe8] sm:$0xff]  }
   0x7   :  { %v502_v14 = vld [vmem:[%s660_s1 + $0x18] sm:$0xff]   ;;  %v506_v18 = vld [vmem:[%s660_s1 + $0x20] sm:$0xff]   ;;  %v510_v22 = vld [vmem:[%s660_s1 + $0x28] sm:$0xff]  }
   0x8   :  { %447 = vmatpush3.bf16.msra.mxu0 %v494_v6  ;;  %v503_v15 = vld [vmem:[%s660_s1 + $0x98] sm:$0xff]   ;;  %v507_v19 = vld [vmem:[%s660_s1 + $0xa0] sm:$0xff]   ;;  %v511_v23 = vld [vmem:[%s660_s1 + $0xa8] sm:$0xff]  }
   0x9   :  { %469 = vmatpush3.bf16.msra.mxu1 %v495_v7  ;;  %448 = vmatprep.subr.bf16.mxu0 %v496_v8  ;;  %v512_v24 = vld [vmem:[%s660_s1 + $0x70] sm:$0xff]   ;;  %v516_v28 = vld [vmem:[%s660_s1 + $0x78] sm:$0xff]   ;;  %v398_v38 = vld [vmem:[%s662_s2] ss:$0 sm:$0xff] }
   0xa   :  { %470 = vmatprep.subr.bf16.mxu1 %v497_v9  ;;  %v513_v25 = vld [vmem:[%s660_s1 + $0xf0] sm:$0xff]   ;;  %v517_v29 = vld [vmem:[%s660_s1 + $0xf8] sm:$0xff]  }
   0xb   :  { %v514_v26 = vld [vmem:[%s660_s1 + $0x30] sm:$0xff]   ;;  %v518_v30 = vld [vmem:[%s660_s1 + $0x38] sm:$0xff]  }
   0xc   :  { %449 = vmatpush3.bf16.msra.mxu0 %v498_v10  ;;  %v515_v27 = vld [vmem:[%s660_s1 + $0xb0] sm:$0xff]   ;;  %v519_v31 = vld [vmem:[%s660_s1 + $0xb8] sm:$0xff]  }
   0xd   :  { %471 = vmatpush3.bf16.msra.mxu1 %v499_v11  ;;  %450 = vmatprep.subr.bf16.mxu0 %v500_v12  ;;  %v520_v32 = vld [vmem:[%s661_s0] ss:$16 sps:$4 sm:$0xff]   ;;  %v522_v33 = vld [vmem:[%s661_s0 + $0x4] ss:$16 sps:$4 sm:$0xff]   ;;  %v523_v34 = vld [vmem:[%s661_s0 + $0x8] ss:$16 sps:$4 sm:$0xff]  }
   0xe   :  { %472 = vmatprep.subr.bf16.mxu1 %v501_v13  ;;  %v525_v35 = vld [vmem:[%s661_s0 + $0xc] ss:$16 sps:$4 sm:$0xff]   ;;  %334 = vmatprep.mubr.bf16.mxu0 %v522_v33 }
   0xf   :  { %375 = vmatprep.mubr.bf16.mxu1 %v525_v35 }
  0x10   :  { %451 = vmatpush3.bf16.msra.mxu0 %v502_v14 }
  0x11   :  { %473 = vmatpush3.bf16.msra.mxu1 %v503_v15  ;;  %452 = vmatprep.subr.bf16.mxu0 %v504_v16 }
  0x12   :  { %474 = vmatprep.subr.bf16.mxu1 %v505_v17 }
  0x14   :  { %453 = vmatpush3.bf16.msra.mxu0 %v506_v18 }
  0x15   :  { %475 = vmatpush3.bf16.msra.mxu1 %v507_v19  ;;  %454 = vmatprep.subr.bf16.mxu0 %v508_v20 }
  0x16   :  { %476 = vmatprep.subr.bf16.mxu1 %v509_v21 }
  0x18   :  { %455 = vmatpush3.bf16.msra.mxu0 %v510_v22 }
  0x19   :  { %477 = vmatpush3.bf16.msra.mxu1 %v511_v23  ;;  %456 = vmatprep.subr.bf16.mxu0 %v512_v24 }
  0x1a   :  { %478 = vmatprep.subr.bf16.mxu1 %v513_v25 }
  0x1c   :  { %457 = vmatpush3.bf16.msra.mxu0 %v514_v26 }
  0x1d   :  { %479 = vmatpush3.bf16.msra.mxu1 %v515_v27  ;;  %458 = vmatprep.subr.bf16.mxu0 %v516_v28 }
  0x1e   :  { %480 = vmatprep.subr.bf16.mxu1 %v517_v29 }
  0x20   :  { %459 = vmatpush3.bf16.msra.mxu0 %v518_v30 }
  0x21   :  { %481 = vmatpush3.bf16.msra.mxu1 %v519_v31 }
  0x23   :  { %335 = vmatmul.mubr.bf16.vlgmr.msra.gmra.mrb[0].mxu0 %v520_v32 }
  0x24   :  { %376 = vmatmul.mubr.bf16.vlgmr.msra.gmra.mrb[0].mxu1 %v523_v34 }
  0xf6   :  { %v460_v36 = vpop.f32.mrb[0].mxu0 }
  0xf7   :  { %v482_v37 = vpop.f32.mrb[0].mxu1  ;;  %v461_v39 = vpop.f32.mrb[1].mxu0 }
  0xf8   :  { %v462_v40 = vadd.f32 %v461_v39, %v460_v36  ;;  %v483_v41 = vpop.f32.mrb[1].mxu1  ;;  %v463_v42 = vpop.f32.mrb[2].mxu0 }
  0xf9   :  { %v484_v43 = vadd.f32 %v483_v41, %v482_v37  ;;  %v485_v44 = vpop.f32.mrb[2].mxu1  ;;  %v464_v45 = vpop.f32.mrb[3].mxu0 }
  0xfa   :  { %v337_v46 = vadd.f32 %v462_v40, %v398_v38  ;;  %v465_v47 = vadd.f32 %v464_v45, %v463_v42  ;;  %v486_v48 = vpop.f32.mrb[3].mxu1 }
  0xfb   :  { %v487_v49 = vadd.f32 %v486_v48, %v485_v44 }
  0xfc   :  { %v378_v50 = vadd.f32 %v484_v43, %v337_v46  ;;  %v340_v51 = vadd.f32 %v465_v47, %v398_v38 }
  0xfe   :  { %v381_v52 = vadd.f32 %v487_v49, %v340_v51 }
 0x100   :  { %v442_v53 = vpack.c.bf16 %v381_v52, %v378_v50 }
 0x102   :  { %443 = vst [vmem:[%s663_s3] sm:$0xff] %v442_v53  }

// kernel: kan_transformer_forward.26
= control target key start
LH: loop header
LB: loop body
LE: loop exit
PB: predicated region body
PF: predicated region fallthrough
CT: control target
= control target key end

     0   :  { %v208_v0 = vmov 0.0   ;;  %vm209_vm0 = vmmov 0   ;;  %s263_s1 = inlined_call_operand.vmem [shape: bf16[128,128], index: 1, kind: input, shape index: {}]   ;;  %s264_s0 = inlined_call_operand.vmem [shape: bf16[16,128], index: 0, kind: input, shape index: {}]   ;;  %s265_s2 = inlined_call_operand.vmem [shape: f32[1,128], index: 2, kind: input, shape index: {}]   ;;  %s266_s3 = inlined_call_operand.vmem [shape: bf16[16,128], index: 3, kind: output, shape index: {}]  }
   0x1   :  { %177 = vmatprep.subr.bf16.mxu0 %v208_v0  ;;  %v199_v1 = vld [vmem:[%s263_s1] sm:$0xff]   ;;  %193 = vmatprep.mubr.msk.bf16.mxu0 %vm209_vm0, %v208_v0  ;;  %v200_v2 = vld [vmem:[%s263_s1 + $0x8] sm:$0xff]   ;;  %v201_v3 = vld [vmem:[%s263_s1 + $0x10] sm:$0xff]  }
   0x2   :  { %178 = vmatpush3.bf16.msra.mxu0 %v199_v1  ;;  %v202_v4 = vld [vmem:[%s263_s1 + $0x18] sm:$0xff]   ;;  %v203_v5 = vld [vmem:[%s263_s1 + $0x20] sm:$0xff]   ;;  %v204_v6 = vld [vmem:[%s263_s1 + $0x28] sm:$0xff]  }
   0x3   :  { %179 = vmatprep.subr.bf16.mxu0 %v208_v0  ;;  %v205_v7 = vld [vmem:[%s263_s1 + $0x30] sm:$0xff]   ;;  %v206_v8 = vld [vmem:[%s263_s1 + $0x38] sm:$0xff]   ;;  %v207_v9 = vld [vmem:[%s264_s0] sm:$0xff]  }
   0x4   :  { %v149_v10 = vld [vmem:[%s265_s2] ss:$0 sm:$0xff] }
   0x6   :  { %180 = vmatpush3.bf16.msra.mxu0 %v200_v2 }
   0x7   :  { %181 = vmatprep.subr.bf16.mxu0 %v208_v0 }
   0xa   :  { %182 = vmatpush3.bf16.msra.mxu0 %v201_v3 }
   0xb   :  { %183 = vmatprep.subr.bf16.mxu0 %v208_v0 }
   0xe   :  { %184 = vmatpush3.bf16.msra.mxu0 %v202_v4 }
   0xf   :  { %185 = vmatprep.subr.bf16.mxu0 %v208_v0 }
  0x12   :  { %186 = vmatpush3.bf16.msra.mxu0 %v203_v5 }
  0x13   :  { %187 = vmatprep.subr.bf16.mxu0 %v208_v0 }
  0x16   :  { %188 = vmatpush3.bf16.msra.mxu0 %v204_v6 }
  0x17   :  { %189 = vmatprep.subr.bf16.mxu0 %v208_v0 }
  0x1a   :  { %190 = vmatpush3.bf16.msra.mxu0 %v205_v7 }
  0x1b   :  { %191 = vmatprep.subr.bf16.mxu0 %v208_v0 }
  0x1e   :  { %192 = vmatpush3.bf16.msra.mxu0 %v206_v8 }
  0x21   :  { %194 = vmatmul.mubr.bf16.vlgmr.msra.gmra.mrb[0].mxu0 %v207_v9 }
  0xf4   :  { %v128_v11 = vpop.f32.mrb[0].mxu0 }
  0xf5   :  { %v195_v12 = vpop.f32.mrb[1].mxu0  ;;  %v129_v14 = vadd.f32 %v149_v10, %v128_v11 }
  0xf6   :  { %v131_v13 = vpop.f32.mrb[2].mxu0 }
  0xf7   :  { %v132_v15 = vadd.f32 %v149_v10, %v131_v13  ;;  %v196_v16 = vpop.f32.mrb[3].mxu0 }
  0xf9   :  { %v166_v17 = vpack.c.bf16 %v132_v15, %v129_v14 }
  0xfb   :  { %167 = vst [vmem:[%s266_s3] sm:$0xff] %v166_v17  }

// kernel: kan_transformer_forward.27
= control target key start
LH: loop header
LB: loop body
LE: loop exit
PB: predicated region body
PF: predicated region fallthrough
CT: control target
= control target key end

     0   :  { %v88_v21 = vlaneseq  ;;  %s296_s0 = inlined_call_operand.vmem [shape: bf16[16,128], index: 0, kind: input, shape index: {}]   ;;  %s297_s1 = inlined_call_operand.vmem [shape: bf16[16,128], index: 1, kind: input, shape index: {}]   ;;  %s298_s2 = inlined_call_operand.vmem [shape: f32[1,128], index: 2, kind: input, shape index: {}]   ;;  %s299_s4 = inlined_call_operand.vmem [shape: f32[6,128], index: 4, kind: input, shape index: {}]   ;;  %s300_s5 = inlined_call_operand.vmem [shape: f32[4,128], index: 5, kind: input, shape index: {}]   ;;  %s301_s3 = inlined_call_operand.vmem [shape: f32[1,128], index: 3, kind: input, shape index: {}]   ;;  %s302_s6 = inlined_call_operand.vmem [shape: bf16[16,128], index: 6, kind: output, shape index: {0}]   ;;  %s303_s7 = inlined_call_operand.vmem [shape: bf16[16,128], index: 7, kind: output, shape index: {1}]  }
   0x1   :  { %v199_v0 = vld [vmem:[%s296_s0] sm:$0xff]  }
   0x2   :  { %v203_v1 = vld [vmem:[%s297_s1] sm:$0xff]   ;;  %v200_v2 = vunpack.c.l.bf16 %v199_v0  ;;  %v201_v4 = vunpack.c.h.bf16 %v199_v0  ;;  %v270_v23 = vshrl.u32 %v88_v21, 7 }
   0x3   :  { %v204_v3 = vunpack.c.l.bf16 %v203_v1  ;;  %v205_v5 = vunpack.c.h.bf16 %v203_v1  ;;  %v188_v27 = vld [vmem:[%s298_s2] ss:$0 sm:$0xff] }
   0x4   :  { %v90_v24 = vsub.s32 5, %v270_v23  ;;  %v104_v25 = vsub.s32 3, %v270_v23  ;;  %v86_v28 = vld [vmem:[%s299_s4] sm:$0x3f]  ;;  %v96_v30 = vsub.s32 4, %v270_v23  ;;  %v112_v31 = vsub.s32 2, %v270_v23 }
   0x5   :  { %v33_v6 = vadd.f32 %v204_v3, %v200_v2  ;;  %v34_v7 = vadd.f32 %v205_v5, %v201_v4  ;;  %v87_v29 = vld [vmem:[%s300_s5] sm:$0xf]  ;;  %v120_v38 = vsub.s32 1, %v270_v23  ;;  %v128_v46 = vsub.s32 0, %v270_v23 }
   0x6   :  { %v189_v33 = vld [vmem:[%s301_s3] ss:$0 sm:$0xff]  ;;  %v91_v34 = vrot.slane %v86_v28, %v90_v24  ;;  %v135_v35 = vrot.slane %v87_v29, %v104_v25  ;;  %v97_v39 = vrot.slane %v86_v28, %v96_v30  ;;  %v141_v40 = vrot.slane %v87_v29, %v112_v31 }
   0x7   :  { %35 = vadd.xlane.f32.xlu0 %v33_v6  ;;  %v149_v47 = vrot.slane %v87_v29, %v120_v38  ;;  %v105_v51 = vrot.slane %v86_v28, %v104_v25  ;;  %v157_v57 = vrot.slane %v87_v29, %v128_v46  ;;  %v113_v4 = vrot.slane %v86_v28, %v112_v31 }
   0xb   :  { %37 = vadd.xlane.f32.xlu0 %v34_v7 }
  0x94   :  { %v36_v8 = vpop.xlane.xlu0 %35 }
  0x95   :  { %v40_v9 = vmul.f32 0.0078125, %v36_v8 }
  0x97   :  { %v42_v10 = vsub.f32 %v33_v6, %v40_v9 }
  0x98   :  { %v38_v11 = vpop.xlane.xlu0 %37 }
  0x99   :  { %v41_v12 = vmul.f32 0.0078125, %v38_v11  ;;  %v44_v13 = vmul.f32 %v42_v10, %v42_v10 }
  0x9b   :  { %v43_v14 = vsub.f32 %v34_v7, %v41_v12  ;;  %46 = vadd.xlane.f32.xlu1 %v44_v13 }
  0x9d   :  { %v45_v15 = vmul.f32 %v43_v14, %v43_v14 }
  0x9f   :  { %48 = vadd.xlane.f32.xlu1 %v45_v15 }
 0x128   :  { %v47_v16 = vpop.xlane.xlu1 %46 }
 0x129   :  { %v50_v17 = vmul.f32 0.0078125, %v47_v16  ;;  %v121_v16 = vrot.slane %v86_v28, %v120_v38 }
 0x12b   :  { %v52_v18 = vadd.f32 1e-05, %v50_v17 }
 0x12c   :  { %v49_v19 = vpop.xlane.xlu1 %48 }
 0x12d   :  { %216 = vrsqrt.f32 %v52_v18  ;;  %v51_v20 = vmul.f32 0.0078125, %v49_v19 }
 0x12f   :  { %v53_v22 = vadd.f32 1e-05, %v51_v20 }
 0x131   :  { %218 = vrsqrt.f32 %v53_v22  ;;  %v129_v22 = vrot.slane %v86_v28, %v128_v46 }
 0x137   :  { %v217_v26 = vpop.eup %216 }
 0x138   :  { %v56_v32 = vmul.f32 %v217_v26, %v42_v10 }
 0x13a   :  { %v65_v36 = vmul.f32 %v188_v27, %v56_v32 }
 0x13b   :  { %v219_v37 = vpop.eup %218 }
 0x13c   :  { %v74_v41 = vadd.f32 %v189_v33, %v65_v36  ;;  %v57_v42 = vmul.f32 %v219_v37, %v43_v14 }
 0x13e   :  { %v92_v43 = vmul.f32 %v91_v34, %v74_v41  ;;  %v136_v44 = vmul.f32 %v135_v35, %v74_v41  ;;  %v66_v45 = vmul.f32 %v188_v27, %v57_v42 }
 0x140   :  { %v98_v48 = vadd.f32 %v97_v39, %v92_v43  ;;  %v142_v49 = vadd.f32 %v141_v40, %v136_v44  ;;  %v75_v50 = vadd.f32 %v189_v33, %v66_v45 }
 0x142   :  { %v100_v52 = vmul.f32 %v98_v48, %v74_v41  ;;  %v144_v53 = vmul.f32 %v142_v49, %v74_v41  ;;  %v209_v54 = vpack.c.bf16 %v75_v50, %v74_v41  ;;  %v93_v55 = vmul.f32 %v91_v34, %v75_v50 }
 0x143   :  { %v137_v56 = vmul.f32 %v135_v35, %v75_v50 }
 0x144   :  { %v150_v58 = vadd.f32 %v149_v47, %v144_v53  ;;  %210 = vst [vmem:[%s302_s6] sm:$0xff] %v209_v54   ;;  %v99_v59 = vadd.f32 %v97_v39, %v93_v55  ;;  %v106_v61 = vadd.f32 %v105_v51, %v100_v52 }
 0x145   :  { %v143_v60 = vadd.f32 %v141_v40, %v137_v56 }
 0x146   :  { %v152_v62 = vmul.f32 %v150_v58, %v74_v41  ;;  %v101_v63 = vmul.f32 %v99_v59, %v75_v50  ;;  %v108_v5 = vmul.f32 %v106_v61, %v74_v41 }
 0x147   :  { %v145_v0 = vmul.f32 %v143_v60, %v75_v50 }
 0x148   :  { %v158_v1 = vadd.f32 %v157_v57, %v152_v62  ;;  %v107_v2 = vadd.f32 %v105_v51, %v101_v63  ;;  %v114_v11 = vadd.f32 %v113_v4, %v108_v5 }
 0x149   :  { %v151_v3 = vadd.f32 %v149_v47, %v145_v0 }
 0x14a   :  { %v160_v6 = vmul.f32 %v158_v1, %v74_v41  ;;  %v109_v7 = vmul.f32 %v107_v2, %v75_v50  ;;  %v116_v17 = vmul.f32 %v114_v11, %v74_v41 }
 0x14b   :  { %v153_v8 = vmul.f32 %v151_v3, %v75_v50 }
 0x14c   :  { %v162_v9 = vand.u32 2147483647, %v160_v6  ;;  %v115_v12 = vadd.f32 %v113_v4, %v109_v7  ;;  %v122_v20 = vadd.f32 %v121_v16, %v116_v17 }
 0x14d   :  { %v159_v10 = vadd.f32 %v157_v57, %v153_v8 }
 0x14e   :  { %v164_v13 = vadd.f32 1.0, %v162_v9  ;;  %v117_v18 = vmul.f32 %v115_v12, %v75_v50  ;;  %v124_v23 = vmul.f32 %v122_v20, %v74_v41 }
 0x14f   :  { %v161_v14 = vmul.f32 %v159_v10, %v75_v50 }
 0x150   :  { %220 = vrcp.f32 %v164_v13  ;;  %v123_v21 = vadd.f32 %v121_v16, %v117_v18  ;;  %v130_v26 = vadd.f32 %v129_v22, %v124_v23 }
 0x151   :  { %v163_v15 = vand.u32 2147483647, %v161_v14 }
 0x152   :  { %v125_v24 = vmul.f32 %v123_v21, %v75_v50 }
 0x153   :  { %v165_v19 = vadd.f32 1.0, %v163_v15 }
 0x154   :  { %v131_v27 = vadd.f32 %v129_v22, %v125_v24 }
 0x155   :  { %222 = vrcp.f32 %v165_v19 }
 0x15a   :  { %v221_v25 = vpop.eup %220 }
 0x15b   :  { %v167_v30 = vmul.f32 %v221_v25, %v130_v26 }
 0x15f   :  { %v223_v29 = vpop.eup %222 }
 0x160   :  { %v169_v31 = vmul.f32 %v223_v29, %v131_v27 }
 0x162   :  { %v214_v32 = vpack.c.bf16 %v169_v31, %v167_v30 }
 0x164   :  { %215 = vst [vmem:[%s303_s7] sm:$0xff] %v214_v32  }

// kernel: kan_transformer_forward.28
= control target key start
LH: loop header
LB: loop body
LE: loop exit
PB: predicated region body
PF: predicated region fallthrough
CT: control target
= control target key end

     0   :  { %v884_v1 = vmov 0   ;;  %v57_v34 = vlaneseq  ;;  %s1409_s1 = inlined_call_operand.vmem [shape: bf16[128,512], index: 1, kind: input, shape index: {}]   ;;  %s1410_s0 = inlined_call_operand.vmem [shape: bf16[16,128], index: 0, kind: input, shape index: {}]   ;;  %s1411_s4 = inlined_call_operand.vmem [shape: f32[4,512], index: 4, kind: input, shape index: {}]   ;;  %s1412_s2 = inlined_call_operand.vmem [shape: f32[1,512], index: 2, kind: input, shape index: {}]   ;;  %s1413_s3 = inlined_call_operand.vmem [shape: f32[6,512], index: 3, kind: input, shape index: {}]   ;;  %s1414_s5 = inlined_call_operand.vmem [shape: bf16[16,512], index: 5, kind: output, shape index: {}]  }
   0x1   :  { %v819_v0 = vld [vmem:[%s1409_s1 + $0x4] ss:$16 sps:$4 sm:$0xff]   ;;  %275 = vmatprep.mubr.bf16.mxu0 %v884_v1  ;;  %318 = vmatprep.mubr.bf16.mxu1 %v884_v1  ;;  %v821_v2 = vld [vmem:[%s1409_s1 + $0xc] ss:$16 sps:$4 sm:$0xff]   ;;  %v823_v3 = vld [vmem:[%s1409_s1] ss:$16 sps:$4 sm:$0xff]  }
   0x2   :  { %243 = vmatprep.subr.bf16.mxu0 %v819_v0  ;;  %v824_v4 = vld [vmem:[%s1409_s1 + $0x8] ss:$16 sps:$4 sm:$0xff]   ;;  %286 = vmatprep.subr.bf16.mxu1 %v821_v2  ;;  %v825_v5 = vld [vmem:[%s1409_s1 + $0x24] ss:$16 sps:$4 sm:$0xff]   ;;  %v827_v6 = vld [vmem:[%s1409_s1 + $0x2c] ss:$16 sps:$4 sm:$0xff]  }
   0x3   :  { %244 = vmatpush1.bf16.msra.mxu0 %v823_v3  ;;  %287 = vmatpush1.bf16.msra.mxu1 %v824_v4  ;;  %v829_v7 = vld [vmem:[%s1409_s1 + $0x20] ss:$16 sps:$4 sm:$0xff]   ;;  %v830_v8 = vld [vmem:[%s1409_s1 + $0x28] ss:$16 sps:$4 sm:$0xff]   ;;  %v831_v9 = vld [vmem:[%s1409_s1 + $0x44] ss:$16 sps:$4 sm:$0xff]  }
   0x4   :  { %245 = vmatprep.subr.bf16.mxu0 %v825_v5  ;;  %288 = vmatprep.subr.bf16.mxu1 %v827_v6  ;;  %v833_v10 = vld [vmem:[%s1409_s1 + $0x4c] ss:$16 sps:$4 sm:$0xff]   ;;  %v835_v11 = vld [vmem:[%s1409_s1 + $0x40] ss:$16 sps:$4 sm:$0xff]   ;;  %v836_v12 = vld [vmem:[%s1409_s1 + $0x48] ss:$16 sps:$4 sm:$0xff]  }
   0x5   :  { %v837_v13 = vld [vmem:[%s1409_s1 + $0x64] ss:$16 sps:$4 sm:$0xff]   ;;  %v839_v14 = vld [vmem:[%s1409_s1 + $0x6c] ss:$16 sps:$4 sm:$0xff]   ;;  %v841_v15 = vld [vmem:[%s1409_s1 + $0x60] ss:$16 sps:$4 sm:$0xff]  }
   0x6   :  { %v842_v16 = vld [vmem:[%s1409_s1 + $0x68] ss:$16 sps:$4 sm:$0xff]   ;;  %v843_v17 = vld [vmem:[%s1409_s1 + $0x84] ss:$16 sps:$4 sm:$0xff]   ;;  %v845_v18 = vld [vmem:[%s1409_s1 + $0x8c] ss:$16 sps:$4 sm:$0xff]  }
   0x7   :  { %246 = vmatpush1.bf16.msra.mxu0 %v829_v7  ;;  %289 = vmatpush1.bf16.msra.mxu1 %v830_v8  ;;  %v847_v19 = vld [vmem:[%s1409_s1 + $0x80] ss:$16 sps:$4 sm:$0xff]   ;;  %v848_v20 = vld [vmem:[%s1409_s1 + $0x88] ss:$16 sps:$4 sm:$0xff]   ;;  %v849_v21 = vld [vmem:[%s1409_s1 + $0xa4] ss:$16 sps:$4 sm:$0xff]  }
   0x8   :  { %247 = vmatprep.subr.bf16.mxu0 %v831_v9  ;;  %290 = vmatprep.subr.bf16.mxu1 %v833_v10  ;;  %v851_v22 = vld [vmem:[%s1409_s1 + $0xac] ss:$16 sps:$4 sm:$0xff]   ;;  %v853_v23 = vld [vmem:[%s1409_s1 + $0xa0] ss:$16 sps:$4 sm:$0xff]   ;;  %v854_v24 = vld [vmem:[%s1409_s1 + $0xa8] ss:$16 sps:$4 sm:$0xff]  }
   0x9   :  { %v855_v25 = vld [vmem:[%s1409_s1 + $0xc4] ss:$16 sps:$4 sm:$0xff]   ;;  %v857_v26 = vld [vmem:[%s1409_s1 + $0xcc] ss:$16 sps:$4 sm:$0xff]   ;;  %v859_v27 = vld [vmem:[%s1409_s1 + $0xc0] ss:$16 sps:$4 sm:$0xff]  }
   0xa   :  { %v860_v28 = vld [vmem:[%s1409_s1 + $0xc8] ss:$16 sps:$4 sm:$0xff]   ;;  %v861_v29 = vld [vmem:[%s1409_s1 + $0xe4] ss:$16 sps:$4 sm:$0xff]   ;;  %v863_v30 = vld [vmem:[%s1409_s1 + $0xec] ss:$16 sps:$4 sm:$0xff]  }
   0xb   :  { %248 = vmatpush1.bf16.msra.mxu0 %v835_v11  ;;  %291 = vmatpush1.bf16.msra.mxu1 %v836_v12  ;;  %v865_v31 = vld [vmem:[%s1409_s1 + $0xe0] ss:$16 sps:$4 sm:$0xff]   ;;  %v866_v32 = vld [vmem:[%s1409_s1 + $0xe8] ss:$16 sps:$4 sm:$0xff]   ;;  %v58_v35 = vshrl.u32 %v57_v34, 7 }
   0xc   :  { %249 = vmatprep.subr.bf16.mxu0 %v837_v13  ;;  %292 = vmatprep.subr.bf16.mxu1 %v839_v14  ;;  %v867_v33 = vld [vmem:[%s1410_s0] sm:$0xff]   ;;  %v1022_v38 = vld [vmem:[%s1411_s4 + $0x8] sm:$0xff]  ;;  %v1044_v50 = vld [vmem:[%s1413_s3 + $0x10] sm:$0x3f] }
   0xd   :  { %v71_v36 = vsub.s32 3, %v58_v35  ;;  %v1017_v37 = vld [vmem:[%s1411_s4] sm:$0xff]  ;;  %v1024_v39 = vsub.s32 0, %v58_v35  ;;  %v67_v40 = vsub.s32 2, %v58_v35  ;;  %v1026_v41 = vsub.s32 5, %v58_v35 }
   0xe   :  { %v55_v42 = vld [vmem:[%s1412_s2] sm:$0xf]  ;;  %v519_v46 = vsub.s32 7, %v58_v35  ;;  %v1038_v47 = vsub.s32 1, %v58_v35  ;;  %v361_v48 = vsub.s32 4, %v58_v35  ;;  %v563_v56 = vsub.s32 6, %v58_v35 }
   0xf   :  { %250 = vmatpush1.bf16.msra.mxu0 %v841_v15  ;;  %293 = vmatpush1.bf16.msra.mxu1 %v842_v16  ;;  %v1034_v43 = vld [vmem:[%s1413_s3] sm:$0x3f]  ;;  %v516_v44 = vrot.slane %v1017_v37, %v71_v36  ;;  %v524_v45 = vrot.slane %v1022_v38, %v71_v36  ;;  %v560_v49 = vrot.slane %v1017_v37, %v67_v40  ;;  %v1059_v55 = vld [vmem:[%s1413_s3 + $0x8] sm:$0x3f]  ;;  %v1084_v1 = vld [vmem:[%s1413_s3 + $0x18] sm:$0x3f] }
  0x10   :  { %251 = vmatprep.subr.bf16.mxu0 %v843_v17  ;;  %294 = vmatprep.subr.bf16.mxu1 %v845_v18  ;;  %v568_v51 = vrot.slane %v1022_v38, %v67_v40  ;;  %v1048_v52 = vrot.slane %v55_v42, %v1024_v39  ;;  %v1052_v53 = vrot.slane %v1034_v43, %v1026_v41 }
  0x11   :  { %v1054_v54 = vrot.slane %v55_v42, %v67_v40  ;;  %v1061_v57 = vrot.slane %v516_v44, %v71_v36  ;;  %v1065_v58 = vrot.slane %v1044_v50, %v1026_v41  ;;  %v1067_v59 = vrot.slane %v524_v45, %v71_v36 }
  0x12   :  { %v520_v60 = vrot.slane %v1017_v37, %v519_v46  ;;  %v1071_v61 = vrot.slane %v1034_v43, %v361_v48  ;;  %v1073_v62 = vrot.slane %v560_v49, %v67_v40  ;;  %v1076_v63 = vrot.slane %v1044_v50, %v361_v48 }
  0x13   :  { %252 = vmatpush1.bf16.msra.mxu0 %v847_v19  ;;  %295 = vmatpush1.bf16.msra.mxu1 %v848_v20  ;;  %1422 = vst [vmem:[#allocation2_spill] sm:$0xff] %v1067_v59  ;;  %v1079_v0 = vrot.slane %v55_v42, %v1038_v47  ;;  %v612_v2 = vrot.slane %v1017_v37, %v1038_v47 }
  0x14   :  { %253 = vmatprep.subr.bf16.mxu0 %v849_v21  ;;  %296 = vmatprep.subr.bf16.mxu1 %v851_v22  ;;  %v1088_v3 = vrot.slane %v568_v51, %v67_v40  ;;  %v1092_v4 = vrot.slane %v1059_v55, %v1026_v41  ;;  %v1094_v5 = vrot.slane %v55_v42, %v71_v36 }
  0x15   :  { %v620_v6 = vrot.slane %v1022_v38, %v1038_v47  ;;  %v1099_v7 = vrot.slane %v1059_v55, %v361_v48  ;;  %v564_v8 = vrot.slane %v1017_v37, %v563_v56  ;;  %v528_v9 = vrot.slane %v1022_v38, %v519_v46 }
  0x16   :  { %1423 = vst [vmem:[#allocation3_spill] sm:$0xff] %v1092_v4  ;;  %1424 = vst [vmem:[#allocation4_spill] sm:$0xff] %v1094_v5  ;;  %v1103_v10 = vrot.slane %v520_v60, %v71_v36  ;;  %v616_v11 = vrot.slane %v1017_v37, %v1026_v41  ;;  %v1109_v12 = vrot.slane %v1084_v1, %v1026_v41 }
  0x17   :  { %254 = vmatpush1.bf16.msra.mxu0 %v853_v23  ;;  %297 = vmatpush1.bf16.msra.mxu1 %v854_v24  ;;  %v572_v13 = vrot.slane %v1022_v38, %v563_v56  ;;  %v1113_v14 = vrot.slane %v1034_v43, %v71_v36  ;;  %v664_v15 = vrot.slane %v1017_v37, %v1024_v39 }
  0x18   :  { %255 = vmatprep.subr.bf16.mxu0 %v855_v25  ;;  %298 = vmatprep.subr.bf16.mxu1 %v857_v26  ;;  %1425 = vst [vmem:[#allocation5_spill] sm:$0xff] %v1103_v10  ;;  %1426 = vst [vmem:[#allocation6_spill] sm:$0xff] %v1109_v12  ;;  %v672_v16 = vrot.slane %v1022_v38, %v1024_v39  ;;  %v1120_v17 = vrot.slane %v1084_v1, %v361_v48 }
  0x19   :  { %v1123_v18 = vrot.slane %v612_v2, %v1038_v47  ;;  %v1126_v19 = vrot.slane %v1044_v50, %v71_v36  ;;  %v668_v20 = vrot.slane %v1017_v37, %v361_v48  ;;  %v624_v21 = vrot.slane %v1022_v38, %v1026_v41 }
  0x1a   :  { %v1132_v22 = vrot.slane %v620_v6, %v1038_v47  ;;  %v1134_v23 = vrot.slane %v564_v8, %v67_v40  ;;  %v1136_v24 = vrot.slane %v528_v9, %v71_v36  ;;  %v676_v25 = vrot.slane %v1022_v38, %v361_v48 }
  0x1b   :  { %256 = vmatpush1.bf16.msra.mxu0 %v859_v27  ;;  %299 = vmatpush1.bf16.msra.mxu1 %v860_v28  ;;  %v1140_v26 = vrot.slane %v1059_v55, %v71_v36  ;;  %v1143_v27 = vrot.slane %v616_v11, %v1038_v47  ;;  %v1146_v28 = vrot.slane %v1084_v1, %v71_v36 }
  0x1c   :  { %257 = vmatprep.subr.bf16.mxu0 %v861_v29  ;;  %300 = vmatprep.subr.bf16.mxu1 %v863_v30  ;;  %1427 = vst [vmem:[#allocation7_spill] sm:$0xff] %v1136_v24  ;;  %v1148_v29 = vrot.slane %v572_v13, %v67_v40  ;;  %v1151_v30 = vrot.slane %v1034_v43, %v67_v40 }
  0x1d   :  { %v1163_v37 = vrot.slane %v1059_v55, %v67_v40  ;;  %v1166_v36 = vrot.slane %v668_v20, %v1024_v39  ;;  %v1169_v38 = vrot.slane %v1084_v1, %v67_v40  ;;  %v1172_v41 = vrot.slane %v624_v21, %v1038_v47 }
  0x1e   :  { %v1179_v44 = vrot.slane %v1034_v43, %v1038_v47  ;;  %v1185_v49 = vrot.slane %v676_v25, %v1024_v39  ;;  %v1196_v56 = vrot.slane %v1059_v55, %v1038_v47 }
  0x1f   :  { %258 = vmatpush1.bf16.msra.mxu0 %v865_v31  ;;  %301 = vmatpush1.bf16.msra.mxu1 %v866_v32  ;;  %v1154_v31 = vrot.slane %v664_v15, %v1024_v39  ;;  %v1157_v32 = vrot.slane %v1044_v50, %v67_v40  ;;  %1428 = vst [vmem:[#allocation8_spill] sm:$0xff] %v1169_v38 }
  0x20   :  { %v1189_v40 = vrot.slane %v1044_v50, %v1038_v47 }
  0x22   :  { %276 = vmatmul.mubr.bf16.vlgmr.msra.gmra.mrb[0].mxu0 %v867_v33  ;;  %319 = vmatmul.mubr.bf16.vlgmr.msra.gmra.mrb[0].mxu1 %v867_v33  ;;  %v1160_v33 = vrot.slane %v672_v16, %v1024_v39 }
  0xf5   :  { %v277_v34 = vpop.f32.mrb[0].mxu0  ;;  %v320_v35 = vpop.f32.mrb[0].mxu1 }
  0xf6   :  { %v1175_v42 = vadd.f32 %v277_v34, %v1048_v52  ;;  %v1182_v45 = vadd.f32 %v320_v35, %v1054_v54  ;;  %v279_v46 = vpop.f32.mrb[1].mxu0  ;;  %v322_v48 = vpop.f32.mrb[1].mxu1 }
  0xf7   :  { %v1192_v51 = vadd.f32 %v279_v46, %v1079_v0  ;;  %v1199_v60 = vadd.f32 %v322_v48, %v1094_v5  ;;  %v1201_v2 = vpop.f32.mrb[2].mxu0  ;;  %v1203_v6 = vpop.f32.mrb[2].mxu1 }
  0xf8   :  { %v351_v8 = vmul.f32 %v1052_v53, %v1175_v42  ;;  %v549_v9 = vmul.f32 %v1061_v57, %v1175_v42  ;;  %v353_v11 = vmul.f32 %v1065_v58, %v1182_v45  ;;  %v551_v13 = vmul.f32 %v1067_v59, %v1182_v45  ;;  %v1213_v15 = vpop.f32.mrb[3].mxu0  ;;  %v1215_v16 = vpop.f32.mrb[3].mxu1 }
  0xf9   :  { %1429 = vst [vmem:[#allocation9_spill] sm:$0xff] %v1215_v16  ;;  %v352_v20 = vmul.f32 %v1092_v4, %v1192_v51  ;;  %v550_v21 = vmul.f32 %v1103_v10, %v1192_v51  ;;  %v354_v25 = vmul.f32 %v1109_v12, %v1199_v60  ;;  %v552_v34 = vmul.f32 %v1136_v24, %v1199_v60 }
  0xfa   :  { %v375_v35 = vadd.f32 %v1071_v61, %v351_v8  ;;  %v593_v46 = vadd.f32 %v1073_v62, %v549_v9  ;;  %v377_v48 = vadd.f32 %v1076_v63, %v353_v11  ;;  %v595_v16 = vadd.f32 %v1088_v3, %v551_v13 }
  0xfb   :  { %v376_v5 = vadd.f32 %v1099_v7, %v352_v20  ;;  %v594_v4 = vadd.f32 %v1134_v23, %v550_v21  ;;  %v378_v10 = vadd.f32 %v1120_v17, %v354_v25  ;;  %v596_v59 = vadd.f32 %v1148_v29, %v552_v34 }
  0xfc   :  { %v383_v12 = vmul.f32 %v375_v35, %v1175_v42  ;;  %v601_v24 = vmul.f32 %v593_v46, %v1175_v42  ;;  %v385_v8 = vmul.f32 %v377_v48, %v1182_v45  ;;  %v603_v9 = vmul.f32 %v595_v16, %v1182_v45 }
  0xfd   :  { %v384_v11 = vmul.f32 %v376_v5, %v1192_v51  ;;  %v602_v13 = vmul.f32 %v594_v4, %v1192_v51  ;;  %v386_v20 = vmul.f32 %v378_v10, %v1199_v60  ;;  %v604_v21 = vmul.f32 %v596_v59, %v1199_v60 }
  0xfe   :  { %v407_v25 = vadd.f32 %v1113_v14, %v383_v12  ;;  %v645_v34 = vadd.f32 %v1123_v18, %v601_v24  ;;  %v409_v35 = vadd.f32 %v1126_v19, %v385_v8  ;;  %v647_v46 = vadd.f32 %v1132_v22, %v603_v9 }
  0xff   :  { %v408_v48 = vadd.f32 %v1140_v26, %v384_v11  ;;  %v646_v16 = vadd.f32 %v1143_v27, %v602_v13  ;;  %v410_v5 = vadd.f32 %v1146_v28, %v386_v20  ;;  %v648_v4 = vadd.f32 %v1172_v41, %v604_v21 }
 0x100   :  { %v415_v10 = vmul.f32 %v407_v25, %v1175_v42  ;;  %v653_v59 = vmul.f32 %v645_v34, %v1175_v42  ;;  %v417_v12 = vmul.f32 %v409_v35, %v1182_v45  ;;  %v655_v24 = vmul.f32 %v647_v46, %v1182_v45 }
 0x101   :  { %v416_v8 = vmul.f32 %v408_v48, %v1192_v51  ;;  %v654_v9 = vmul.f32 %v646_v16, %v1192_v51  ;;  %v418_v11 = vmul.f32 %v410_v5, %v1199_v60  ;;  %v656_v13 = vmul.f32 %v648_v4, %v1199_v60 }
 0x102   :  { %v439_v20 = vadd.f32 %v1151_v30, %v415_v10  ;;  %v697_v21 = vadd.f32 %v1154_v31, %v653_v59  ;;  %v441_v25 = vadd.f32 %v1157_v32, %v417_v12  ;;  %v699_v34 = vadd.f32 %v1160_v33, %v655_v24 }
 0x103   :  { %v440_v35 = vadd.f32 %v1163_v37, %v416_v8  ;;  %v698_v46 = vadd.f32 %v1166_v36, %v654_v9  ;;  %v442_v48 = vadd.f32 %v1169_v38, %v418_v11  ;;  %v700_v16 = vadd.f32 %v1185_v49, %v656_v13 }
 0x104   :  { %v447_v5 = vmul.f32 %v439_v20, %v1175_v42  ;;  %v705_v4 = vmul.f32 %v697_v21, %v1175_v42  ;;  %v449_v10 = vmul.f32 %v441_v25, %v1182_v45  ;;  %v707_v59 = vmul.f32 %v699_v34, %v1182_v45 }
 0x105   :  { %v448_v12 = vmul.f32 %v440_v35, %v1192_v51  ;;  %v706_v24 = vmul.f32 %v698_v46, %v1192_v51  ;;  %v1273_v8 = vrot.slane %v1084_v1, %v1038_v47  ;;  %v708_v9 = vmul.f32 %v700_v16, %v1199_v60 }
 0x106   :  { %v471_v11 = vadd.f32 %v1179_v44, %v447_v5  ;;  %v713_v13 = vand.u32 2147483647, %v705_v4  ;;  %v715_v20 = vand.u32 2147483647, %v707_v59  ;;  %v450_v21 = vmul.f32 %v442_v48, %v1199_v60 }
 0x107   :  { %v473_v25 = vadd.f32 %v1189_v40, %v449_v10  ;;  %v472_v34 = vadd.f32 %v1196_v56, %v448_v12  ;;  %v714_v38 = vand.u32 2147483647, %v706_v24  ;;  %v716_v35 = vand.u32 2147483647, %v708_v9 }
 0x108   :  { %v1282_v46 = vrot.slane %v1034_v43, %v1024_v39  ;;  %v721_v47 = vadd.f32 1.0, %v713_v13  ;;  %v1286_v16 = vrot.slane %v1044_v50, %v1024_v39  ;;  %v723_v5 = vadd.f32 1.0, %v715_v20  ;;  %v1435_v20 = vld [vmem:[#allocation6_spill] sm:$0xff] }
 0x109   :  { %v1290_v4 = vrot.slane %v1059_v55, %v1024_v39  ;;  %v722_v48 = vadd.f32 1.0, %v714_v38  ;;  %v1294_v10 = vrot.slane %v1084_v1, %v1024_v39  ;;  %v724_v59 = vadd.f32 1.0, %v716_v35 }
 0x10a   :  { %v479_v12 = vmul.f32 %v471_v11, %v1175_v42  ;;  %868 = vrcp.f32 %v721_v47  ;;  %v474_v43 = vadd.f32 %v1273_v8, %v450_v21  ;;  %v1300_v50 = vadd.f32 %v1201_v2, %v1048_v52  ;;  %v1432_v2 = vld [vmem:[#allocation9_spill] sm:$0xff] }
 0x10b   :  { %v481_v24 = vmul.f32 %v473_v25, %v1182_v45  ;;  %870 = vrcp.f32 %v723_v5  ;;  %v480_v55 = vmul.f32 %v472_v34, %v1192_v51  ;;  %v1306_v38 = vadd.f32 %v1203_v6, %v1054_v54  ;;  %v1430_v45 = vld [vmem:[#allocation2_spill] sm:$0xff]  ;;  %v1431_v54 = vld [vmem:[#allocation4_spill] sm:$0xff]  ;;  %v1436_v25 = vld [vmem:[#allocation7_spill] sm:$0xff] }
 0x10c   :  { %872 = vrcp.f32 %v722_v48  ;;  %v355_v39 = vmul.f32 %v1052_v53, %v1300_v50  ;;  %v553_v1 = vmul.f32 %v1061_v57, %v1300_v50  ;;  %v1314_v52 = vadd.f32 %v1213_v15, %v1079_v0  ;;  %v1433_v57 = vld [vmem:[#allocation3_spill] sm:$0xff]  ;;  %v1434_v0 = vld [vmem:[#allocation5_spill] sm:$0xff] }
 0x10d   :  { %874 = vrcp.f32 %v724_v59  ;;  %v357_v42 = vmul.f32 %v1065_v58, %v1306_v38  ;;  %v555_v51 = vmul.f32 %v1430_v45, %v1306_v38  ;;  %v1322_v6 = vadd.f32 %v1432_v2, %v1431_v54 }
 0x10e   :  { %v379_v53 = vadd.f32 %v1071_v61, %v355_v39  ;;  %v597_v9 = vadd.f32 %v1073_v62, %v553_v1  ;;  %v356_v11 = vmul.f32 %v1433_v57, %v1314_v52  ;;  %v554_v15 = vmul.f32 %v1434_v0, %v1314_v52 }
 0x10f   :  { %v381_v13 = vadd.f32 %v1076_v63, %v357_v42  ;;  %v599_v58 = vadd.f32 %v1088_v3, %v555_v51  ;;  %v358_v21 = vmul.f32 %v1435_v20, %v1322_v6  ;;  %v556_v34 = vmul.f32 %v1436_v25, %v1322_v6 }
 0x110   :  { %v387_v61 = vmul.f32 %v379_v53, %v1300_v50  ;;  %v605_v62 = vmul.f32 %v597_v9, %v1300_v50  ;;  %v380_v35 = vadd.f32 %v1099_v7, %v356_v11  ;;  %v598_v47 = vadd.f32 %v1134_v23, %v554_v15 }
 0x111   :  { %v503_v5 = vadd.f32 %v1282_v46, %v479_v12  ;;  %v482_v63 = vmul.f32 %v474_v43, %v1199_v60  ;;  %v607_v3 = vmul.f32 %v599_v58, %v1306_v38  ;;  %v382_v48 = vadd.f32 %v1120_v17, %v358_v21 }
 0x112   :  { %v411_v59 = vadd.f32 %v1113_v14, %v387_v61  ;;  %v649_v39 = vadd.f32 %v1123_v18, %v605_v62  ;;  %v388_v1 = vmul.f32 %v380_v35, %v1314_v52  ;;  %v606_v42 = vmul.f32 %v598_v47, %v1314_v52 }
 0x113   :  { %v505_v7 = vadd.f32 %v1286_v16, %v481_v24  ;;  %v389_v23 = vmul.f32 %v381_v13, %v1306_v38  ;;  %v651_v12 = vadd.f32 %v1132_v22, %v607_v3  ;;  %v600_v60 = vadd.f32 %v1148_v29, %v556_v34 }
 0x114   :  { %v869_v43 = vpop.eup %868  ;;  %v419_v45 = vmul.f32 %v411_v59, %v1300_v50  ;;  %v657_v17 = vmul.f32 %v649_v39, %v1300_v50  ;;  %v412_v14 = vadd.f32 %v1140_v26, %v388_v1  ;;  %v650_v18 = vadd.f32 %v1143_v27, %v606_v42 }
 0x115   :  { %v871_v51 = vpop.eup %870  ;;  %v730_v54 = vmul.f32 %v869_v43, %v503_v5  ;;  %v504_v2 = vadd.f32 %v1290_v4, %v480_v55  ;;  %v659_v24 = vmul.f32 %v651_v12, %v1306_v38  ;;  %v390_v53 = vmul.f32 %v382_v48, %v1322_v6 }
 0x116   :  { %v873_v22 = vpop.eup %872  ;;  %v734_v9 = vmul.f32 %v871_v51, %v505_v7  ;;  %v506_v29 = vadd.f32 %v1294_v10, %v482_v63  ;;  %v701_v57 = vadd.f32 %v1154_v31, %v657_v17  ;;  %v420_v11 = vmul.f32 %v412_v14, %v1314_v52 }
 0x117   :  { %v875_v0 = vpop.eup %874  ;;  %v732_v26 = vmul.f32 %v873_v22, %v504_v2  ;;  %v413_v27 = vadd.f32 %v1126_v19, %v389_v23  ;;  %v703_v15 = vadd.f32 %v1160_v33, %v659_v24  ;;  %v658_v55 = vmul.f32 %v650_v18, %v1314_v52  ;;  %v1437_v23 = vld [vmem:[#allocation8_spill] sm:$0xff] }
 0x118   :  { %v736_v13 = vmul.f32 %v875_v0, %v506_v29  ;;  %v443_v58 = vadd.f32 %v1151_v30, %v419_v45  ;;  %v709_v20 = vmul.f32 %v701_v57, %v1300_v50  ;;  %v608_v21 = vmul.f32 %v600_v60, %v1322_v6 }
 0x119   :  { %v814_v25 = vpack.c.bf16 %v732_v26, %v730_v54  ;;  %v711_v31 = vmul.f32 %v703_v15, %v1306_v38  ;;  %v702_v34 = vadd.f32 %v1166_v36, %v658_v55  ;;  %v414_v61 = vadd.f32 %v1146_v28, %v390_v53 }
 0x11a   :  { %v815_v62 = vpack.c.bf16 %v736_v13, %v734_v9  ;;  %v717_v19 = vand.u32 2147483647, %v709_v20  ;;  %v444_v33 = vadd.f32 %v1163_v37, %v420_v11  ;;  %v421_v30 = vmul.f32 %v413_v27, %v1306_v38 }
 0x11b   :  { %769 = vst [vmem:[%s1414_s5] sm:$0xff] %v814_v25  ;;  %v710_v35 = vmul.f32 %v702_v34, %v1314_v52  ;;  %v451_v36 = vmul.f32 %v443_v58, %v1300_v50  ;;  %v719_v28 = vand.u32 2147483647, %v711_v31  ;;  %v652_v5 = vadd.f32 %v1172_v41, %v608_v21 }
 0x11c   :  { %770 = vst [vmem:[%s1414_s5 + $0x8] sm:$0xff] %v815_v62  ;;  %v725_v47 = vadd.f32 1.0, %v717_v19  ;;  %v422_v37 = vmul.f32 %v414_v61, %v1322_v6  ;;  %v452_v3 = vmul.f32 %v444_v33, %v1314_v52  ;;  %v445_v59 = vadd.f32 %v1157_v32, %v421_v30 }
 0x11d   :  { %v718_v63 = vand.u32 2147483647, %v710_v35  ;;  %v660_v48 = vmul.f32 %v652_v5, %v1322_v6  ;;  %v475_v1 = vadd.f32 %v1179_v44, %v451_v36  ;;  %v727_v42 = vadd.f32 1.0, %v719_v28 }
 0x11e   :  { %876 = vrcp.f32 %v725_v47  ;;  %v446_v12 = vadd.f32 %v1437_v23, %v422_v37  ;;  %v476_v41 = vadd.f32 %v1196_v56, %v452_v3  ;;  %v453_v43 = vmul.f32 %v445_v59, %v1306_v38 }
 0x11f   :  { %v726_v39 = vadd.f32 1.0, %v718_v63  ;;  %v704_v7 = vadd.f32 %v1185_v49, %v660_v48  ;;  %v483_v45 = vmul.f32 %v475_v1, %v1300_v50 }
 0x120   :  { %v454_v32 = vmul.f32 %v446_v12, %v1322_v6  ;;  %v484_v44 = vmul.f32 %v476_v41, %v1314_v52  ;;  %v477_v49 = vadd.f32 %v1189_v40, %v453_v43 }
 0x121   :  { %878 = vrcp.f32 %v726_v39  ;;  %v712_v60 = vmul.f32 %v704_v7, %v1322_v6  ;;  %v507_v51 = vadd.f32 %v1282_v46, %v483_v45 }
 0x122   :  { %880 = vrcp.f32 %v727_v42  ;;  %v478_v56 = vadd.f32 %v1273_v8, %v454_v32  ;;  %v508_v2 = vadd.f32 %v1290_v4, %v484_v44  ;;  %v485_v50 = vmul.f32 %v477_v49, %v1306_v38 }
 0x123   :  { %v720_v17 = vand.u32 2147483647, %v712_v60 }
 0x124   :  { %v486_v22 = vmul.f32 %v478_v56, %v1322_v6  ;;  %v509_v29 = vadd.f32 %v1286_v16, %v485_v50 }
 0x125   :  { %v728_v14 = vadd.f32 1.0, %v720_v17 }
 0x126   :  { %v510_v8 = vadd.f32 %v1294_v10, %v486_v22 }
 0x127   :  { %882 = vrcp.f32 %v728_v14 }
 0x128   :  { %v877_v18 = vpop.eup %876 }
 0x129   :  { %v738_v54 = vmul.f32 %v877_v18, %v507_v51 }
 0x12b   :  { %v879_v24 = vpop.eup %878 }
 0x12c   :  { %v740_v53 = vmul.f32 %v879_v24, %v508_v2  ;;  %v881_v9 = vpop.eup %880 }
 0x12d   :  { %v742_v40 = vmul.f32 %v881_v9, %v509_v29 }
 0x12e   :  { %v816_v52 = vpack.c.bf16 %v740_v53, %v738_v54 }
 0x130   :  { %771 = vst [vmem:[%s1414_s5 + $0x10] sm:$0xff] %v816_v52 }
 0x131   :  { %v883_v46 = vpop.eup %882 }
 0x132   :  { %v744_v57 = vmul.f32 %v883_v46, %v510_v8 }
 0x134   :  { %v817_v4 = vpack.c.bf16 %v744_v57, %v742_v40 }
 0x136   :  { %772 = vst [vmem:[%s1414_s5 + $0x18] sm:$0xff] %v817_v4 }

// kernel: kan_transformer_forward.31
= control target key start
LH: loop header
LB: loop body
LE: loop exit
PB: predicated region body
PF: predicated region fallthrough
CT: control target
= control target key end

     0   :  { %v192_v0 = vmov 0.0   ;;  %vm193_vm0 = vmmov 0   ;;  %vm135_vm1 = vcmask 23552   ;;  %s250_s1 = inlined_call_operand.vmem [shape: bf16[128,3], index: 1, kind: input, shape index: {}]   ;;  %s251_s0 = inlined_call_operand.vmem [shape: bf16[16,128], index: 0, kind: input, shape index: {}]   ;;  %s252_s2 = inlined_call_operand.vmem [shape: f32[1,3], index: 2, kind: input, shape index: {}]   ;;  %s253_s3 = inlined_call_operand.vmem [shape: f32[16,3], index: 3, kind: output, shape index: {}]  }
   0x1   :  { %161 = vmatprep.subr.bf16.mxu0 %v192_v0  ;;  %v183_v1 = vld [vmem:[%s250_s1] sm:$0xff]   ;;  %177 = vmatprep.mubr.msk.bf16.mxu0 %vm193_vm0, %v192_v0  ;;  %v184_v2 = vld [vmem:[%s250_s1 + $0x8] sm:$0xff]   ;;  %v185_v3 = vld [vmem:[%s250_s1 + $0x10] sm:$0xff]  }
   0x2   :  { %162 = vmatpush3.bf16.msra.mxu0 %v183_v1  ;;  %v186_v4 = vld [vmem:[%s250_s1 + $0x18] sm:$0xff]   ;;  %v187_v5 = vld [vmem:[%s250_s1 + $0x20] sm:$0xff]   ;;  %v188_v6 = vld [vmem:[%s250_s1 + $0x28] sm:$0xff]  }
   0x3   :  { %163 = vmatprep.subr.bf16.mxu0 %v192_v0  ;;  %v189_v7 = vld [vmem:[%s250_s1 + $0x30] sm:$0xff]   ;;  %v190_v8 = vld [vmem:[%s250_s1 + $0x38] sm:$0xff]   ;;  %v191_v9 = vld [vmem:[%s251_s0] sm:$0xff]  }
   0x4   :  { %v142_v10 = vld [vmem:[%s252_s2] ss:$0 sm:$0xff] }
   0x6   :  { %164 = vmatpush3.bf16.msra.mxu0 %v184_v2 }
   0x7   :  { %165 = vmatprep.subr.bf16.mxu0 %v192_v0 }
   0xa   :  { %166 = vmatpush3.bf16.msra.mxu0 %v185_v3 }
   0xb   :  { %167 = vmatprep.subr.bf16.mxu0 %v192_v0 }
   0xe   :  { %168 = vmatpush3.bf16.msra.mxu0 %v186_v4 }
   0xf   :  { %169 = vmatprep.subr.bf16.mxu0 %v192_v0 }
  0x12   :  { %170 = vmatpush3.bf16.msra.mxu0 %v187_v5 }
  0x13   :  { %171 = vmatprep.subr.bf16.mxu0 %v192_v0 }
  0x16   :  { %172 = vmatpush3.bf16.msra.mxu0 %v188_v6 }
  0x17   :  { %173 = vmatprep.subr.bf16.mxu0 %v192_v0 }
  0x1a   :  { %174 = vmatpush3.bf16.msra.mxu0 %v189_v7 }
  0x1b   :  { %175 = vmatprep.subr.bf16.mxu0 %v192_v0 }
  0x1e   :  { %176 = vmatpush3.bf16.msra.mxu0 %v190_v8 }
  0x21   :  { %178 = vmatmul.mubr.bf16.vlgmr.msra.gmra.mrb[0].mxu0 %v191_v9 }
  0xf4   :  { %v128_v11 = vpop.f32.mrb[0].mxu0 }
  0xf5   :  { %v129_v12 = vadd.f32 %v142_v10, %v128_v11  ;;  %v179_v13 = vpop.f32.mrb[1].mxu0 }
  0xf6   :  { %v131_v14 = vpop.f32.mrb[2].mxu0 }
  0xf7   :  { %136 = vst.msk [vmem:[%s253_s3] sm:$0xff] %vm135_vm1, %v129_v12  ;;  %v132_v15 = vadd.f32 %v142_v10, %v131_v14  ;;  %v180_v16 = vpop.f32.mrb[3].mxu0 }
  0xf9   :  { %137 = vst.msk [vmem:[%s253_s3 + $0x8] sm:$0xff] %vm135_vm1, %v132_v15 }

</bundles_post_ra>
